<compile_context>
chip_gen: v6e
topology: v6e:2x2x1
jax: 0.10.0
libtpu: 0.0.40
codegen_flags: <defaults>
</compile_context>

<pallas_src>
import functools

import jax
import jax.numpy as jnp
import numpy as np
from jax import lax
from jax.experimental import pallas as pl
from jax.experimental.pallas import tpu as pltpu


def _round_up(x, m):
    return (x + m - 1) // m * m


# ----------------------------------------------------------------------------
# Fused 2-layer LSTM kernel: one block of Tb time steps per grid step.
# ----------------------------------------------------------------------------
def _fused_lstm2_kernel(x_ref,       # (Tb, Bp, Ip)   input tile
                        wih0_ref,    # (Ip, 4*Hp)     VMEM resident
                        whh0_ref,    # (Hp, 4*Hp)     VMEM resident
                        b0_ref,      # (1,  4*Hp)     VMEM resident (bih+bhh)
                        wih1_ref,    # (Hp, 4*Hp)     VMEM resident
                        whh1_ref,    # (Hp, 4*Hp)     VMEM resident
                        b1_ref,      # (1,  4*Hp)     VMEM resident
                        h0_ref, c0_ref,    # (Bp, Hp) carried layer-0 state
                        h1_ref, c1_ref,    # (Bp, Hp) carried layer-1 state
                        pre_ref,     # (Tb, Bp, 4*Hp) scratch, reused by both layers
                        h0seq_ref,   # (Tb, Bp, Hp)   scratch, layer0 -> layer1
                        *, seq_len, has_tail, unroll):
    Tb, Bp, Ip = x_ref.shape
    Hp = h0_ref.shape[-1]
    blk = pl.program_id(0)

    @pl.when(blk == 0)
    def _():
        h0_ref[...] = jnp.zeros_like(h0_ref)
        c0_ref[...] = jnp.zeros_like(c0_ref)
        h1_ref[...] = jnp.zeros_like(h1_ref)
        c1_ref[...] = jnp.zeros_like(c1_ref)

    cdt = wih0_ref.dtype  # MXU operand dtype (f32 default, optionally bf16)

    def recur(whh_ref, out_seq_ref, h_ref, c_ref):
        whh = whh_ref[...]  # load once, reused every recurrent step

        def step(t, carry):
            h, c = carry
            gates = pre_ref[t] + jnp.dot(h.astype(cdt), whh,
                                         preferred_element_type=jnp.float32)
            # Lane-aligned gate slabs (Hp multiple of 128); PyTorch i,f,g,o.
            i_g = jax.nn.sigmoid(gates[:, 0 * Hp:1 * Hp])
            f_g = jax.nn.sigmoid(gates[:, 1 * Hp:2 * Hp])
            g_g = jnp.tanh(gates[:, 2 * Hp:3 * Hp])
            o_g = jax.nn.sigmoid(gates[:, 3 * Hp:4 * Hp])
            c_new = f_g * c + i_g * g_g
            h_new = o_g * jnp.tanh(c_new)
            if has_tail:
                # Only emitted when T % Tb != 0: freeze state on padded steps.
                valid = (blk * Tb + t) < seq_len
                h_new = jnp.where(valid, h_new, h)
                c_new = jnp.where(valid, c_new, c)
            if out_seq_ref is not None:
                out_seq_ref[t] = h_new.astype(out_seq_ref.dtype)
            return (h_new, c_new)

        h_fin, c_fin = lax.fori_loop(0, Tb, step, (h_ref[...], c_ref[...]),
                                     unroll=unroll)
        h_ref[...] = h_fin
        c_ref[...] = c_fin

    # ---- layer 0: hoisted projection over the whole block, then recurrence.
    x2d = x_ref[...].reshape(Tb * Bp, Ip).astype(cdt)
    pre0 = jnp.dot(x2d, wih0_ref[...], preferred_element_type=jnp.float32)
    pre_ref[...] = (pre0 + b0_ref[...]).reshape(Tb, Bp, 4 * Hp)
    recur(whh0_ref, h0seq_ref, h0_ref, c0_ref)

    # ---- layer 1: consumes layer-0's block hidden sequence straight from
    #               VMEM (no HBM round trip), no per-step output writeback.
    h0seq2d = h0seq_ref[...].reshape(Tb * Bp, Hp).astype(cdt)
    pre1 = jnp.dot(h0seq2d, wih1_ref[...], preferred_element_type=jnp.float32)
    pre_ref[...] = (pre1 + b1_ref[...]).reshape(Tb, Bp, 4 * Hp)
    recur(whh1_ref, None, h1_ref, c1_ref)


# ----------------------------------------------------------------------------
# Weight packing (hoist/cache this across calls).
# ----------------------------------------------------------------------------
def _pad_gate_matrix(w, din_p, hp, dtype):
    """w: PyTorch (4H, Din) -> (din_p, 4*hp) with each gate lane-padded."""
    four_h, din = w.shape
    h = four_h // 4
    w = w.reshape(4, h, din)
    w = jnp.pad(w, ((0, 0), (0, hp - h), (0, din_p - din)))
    return jnp.transpose(w, (2, 0, 1)).reshape(din_p, 4 * hp).astype(dtype)


def _pad_gate_bias(bih, bhh, hp):
    b = (bih + bhh).reshape(4, -1)
    h = b.shape[1]
    return jnp.pad(b, ((0, 0), (0, hp - h))).reshape(1, 4 * hp).astype(jnp.float32)


def pack_params(params, *, compute_dtype=jnp.float32):
    """Pack / pad weights once; cache the result across repeated calls."""
    H = params["whh0"].shape[1]
    I = params["wih0"].shape[1]
    Hp = _round_up(H, 128)
    Ip = _round_up(I, 128)
    return {
        "I": I, "H": H, "Ip": Ip, "Hp": Hp, "dtype": compute_dtype,
        "wih0": _pad_gate_matrix(params["wih0"], Ip, Hp, compute_dtype),
        "whh0": _pad_gate_matrix(params["whh0"], Hp, Hp, compute_dtype),
        "b0": _pad_gate_bias(params["bih0"], params["bhh0"], Hp),
        "wih1": _pad_gate_matrix(params["wih1"], Hp, Hp, compute_dtype),
        "whh1": _pad_gate_matrix(params["whh1"], Hp, Hp, compute_dtype),
        "b1": _pad_gate_bias(params["bih1"], params["bhh1"], Hp),
    }


# ----------------------------------------------------------------------------
# Wrapper.
# ----------------------------------------------------------------------------
_VMEM_BUDGET_BYTES = 40 << 20   # safe under v7x's 64 MiB physical VMEM


def _estimate_vmem_bytes(Tb, Bp, Ip, Hp, wbytes):
    weights = (Ip * 4 * Hp + 3 * Hp * 4 * Hp) * wbytes + 2 * 4 * Hp * 4
    x_tiles = 2 * Tb * Bp * Ip * 4                      # double-buffered input
    scratch = (Tb * Bp * 4 * Hp + Tb * Bp * Hp) * 4     # pre + h0seq
    states = 2 * 4 * Bp * Hp * 4                        # carried state blocks
    return weights + x_tiles + scratch + states


def encoder_forward(x, params, *, time_block=64, compute_dtype=jnp.float32,
                    packed=None):
    """x: (B, T, I) float32 (batch_first, like PyTorch).  Returns
    (hidden, cell), each (num_layers=2, B, H) float32 (final LSTM states)."""
    B, T, I = x.shape
    if packed is None:
        packed = pack_params(params, compute_dtype=compute_dtype)
    H, Hp, Ip = packed["H"], packed["Hp"], packed["Ip"]
    wbytes = jnp.dtype(packed["dtype"]).itemsize

    # bf16 MXU operands want a 16-row sublane pack; f32 wants 8.
    Bp = _round_up(B, 16 if wbytes == 2 else 8)

    # Time block: big enough to fill MXU rows / amortize grid overhead, but
    # shrunk until the whole-kernel VMEM footprint fits the v7x-safe budget.
    Tb = max(1, min(time_block, T))
    while Tb > 8 and _estimate_vmem_bytes(Tb, Bp, Ip, Hp, wbytes) > _VMEM_BUDGET_BYTES:
        Tb = max(8, Tb // 2)
    T_pad = _round_up(T, Tb)
    has_tail = (T_pad != T)
    n_blk = T_pad // Tb

    footprint = _estimate_vmem_bytes(Tb, Bp, Ip, Hp, wbytes)
    vmem_limit = int(min(max(footprint + (footprint >> 2) + (2 << 20),
                             16 << 20), 64 << 20))

    # Time-major, tile-padded input: (T_pad, Bp, Ip).
    # TODO(synk): for repeated calls, fuse this layout prep with the producer.
    x_p = jnp.pad(x, ((0, Bp - B), (0, T_pad - T), (0, Ip - I)))
    x_tm = jnp.transpose(x_p, (1, 0, 2)).astype(jnp.float32)

    kernel = functools.partial(_fused_lstm2_kernel, seq_len=T,
                               has_tail=has_tail, unroll=min(Tb, 8))
    state_shape = jax.ShapeDtypeStruct((Bp, Hp), jnp.float32)
    state_spec = pl.BlockSpec((Bp, Hp), lambda i: (0, 0))
    vmem_resident = pl.BlockSpec(memory_space=pltpu.MemorySpace.VMEM)

    h0, c0, h1, c1 = pl.pallas_call(
        kernel,
        out_shape=(state_shape, state_shape, state_shape, state_shape),
        grid=(n_blk,),
        in_specs=[
            pl.BlockSpec((Tb, Bp, Ip), lambda i: (i, 0, 0)),
            vmem_resident, vmem_resident, vmem_resident,   # layer-0 weights
            vmem_resident, vmem_resident, vmem_resident,   # layer-1 weights
        ],
        out_specs=(state_spec, state_spec, state_spec, state_spec),
        scratch_shapes=[
            pltpu.VMEM((Tb, Bp, 4 * Hp), jnp.float32),   # pre (shared by layers)
            pltpu.VMEM((Tb, Bp, Hp), jnp.float32),       # layer0 -> layer1 hseq
        ],
        compiler_params=pltpu.CompilerParams(
            dimension_semantics=("arbitrary",),
            vmem_limit_bytes=vmem_limit),
    )(x_tm, packed["wih0"], packed["whh0"], packed["b0"],
      packed["wih1"], packed["whh1"], packed["b1"])

    hidden = jnp.stack([h0[:B, :H], h1[:B, :H]])
    cell = jnp.stack([c0[:B, :H], c1[:B, :H]])
    return hidden, cell


# ----------------------------------------------------------------------------
# Pure-JAX reference (mirrors PyTorch nn.LSTM math) for a correctness check.
# ----------------------------------------------------------------------------
def encoder_reference(x, params):
    B, T, I = x.shape
    H = params["whh0"].shape[1]

    def layer(inp_seq, wih, whh, bih, bhh):
        def step(carry, x_t):
            h, c = carry
            gates = x_t @ wih.T + h @ whh.T + bih + bhh
            i_g = jax.nn.sigmoid(gates[:, 0 * H:1 * H])
            f_g = jax.nn.sigmoid(gates[:, 1 * H:2 * H])
            g_g = jnp.tanh(gates[:, 2 * H:3 * H])
            o_g = jax.nn.sigmoid(gates[:, 3 * H:4 * H])
            c_new = f_g * c + i_g * g_g
            h_new = o_g * jnp.tanh(c_new)
            return (h_new, c_new), h_new

        init = (jnp.zeros((B, H), jnp.float32), jnp.zeros((B, H), jnp.float32))
        (h_f, c_f), outs = lax.scan(step, init, jnp.transpose(inp_seq, (1, 0, 2)))
        return jnp.transpose(outs, (1, 0, 2)), h_f, c_f

    out0, h0, c0 = layer(x, params["wih0"], params["whh0"],
                         params["bih0"], params["bhh0"])
    _, h1, c1 = layer(out0, params["wih1"], params["whh1"],
                      params["bih1"], params["bhh1"])
    return jnp.stack([h0, h1]), jnp.stack([c0, c1])


def init_params(key, input_size, hidden_size):
    """Deterministic PyTorch-style init: U(-1/sqrt(H), 1/sqrt(H))."""
    k = 1.0 / np.sqrt(hidden_size)
    keys = jax.random.split(key, 8)
    u = lambda kk, shape: jax.random.uniform(kk, shape, jnp.float32, -k, k)
    return {
        "wih0": u(keys[0], (4 * hidden_size, input_size)),
        "whh0": u(keys[1], (4 * hidden_size, hidden_size)),
        "bih0": u(keys[2], (4 * hidden_size,)),
        "bhh0": u(keys[3], (4 * hidden_size,)),
        "wih1": u(keys[4], (4 * hidden_size, hidden_size)),
        "whh1": u(keys[5], (4 * hidden_size, hidden_size)),
        "bih1": u(keys[6], (4 * hidden_size,)),
        "bhh1": u(keys[7], (4 * hidden_size,)),
    }


if __name__ == "__main__":
    B, T, I, H = 2, 8, 4, 32

    key = jax.random.PRNGKey(0)
    kx, kp = jax.random.split(key)
    x = jax.random.normal(kx, (B, T, I), jnp.float32)
    params = init_params(kp, I, H)

    packed = pack_params(params)            # hoist/cache weight packing
    hidden, cell = encoder_forward(x, params, packed=packed)
    jax.block_until_ready((hidden, cell))

    h_ref, c_ref = encoder_reference(x, params)
    np.testing.assert_allclose(np.asarray(hidden), np.asarray(h_ref),
                               rtol=1e-5, atol=1e-5)
    np.testing.assert_allclose(np.asarray(cell), np.asarray(c_ref),
                               rtol=1e-5, atol=1e-5)

    print("KERNEL_OK")
</pallas_src>

<mosaic_0001>
module attributes {stable_mosaic.version = 11 : i64} {
  func.func @_fused_lstm2_kernel(%arg0: i32, %arg1: memref<8x8x128xf32, #tpu.memory_space<vmem>>, %arg2: memref<128x512xf32, #tpu.memory_space<vmem>>, %arg3: memref<128x512xf32, #tpu.memory_space<vmem>>, %arg4: memref<1x512xf32, #tpu.memory_space<vmem>>, %arg5: memref<128x512xf32, #tpu.memory_space<vmem>>, %arg6: memref<128x512xf32, #tpu.memory_space<vmem>>, %arg7: memref<1x512xf32, #tpu.memory_space<vmem>>, %arg8: memref<8x128xf32, #tpu.memory_space<vmem>>, %arg9: memref<8x128xf32, #tpu.memory_space<vmem>>, %arg10: memref<8x128xf32, #tpu.memory_space<vmem>>, %arg11: memref<8x128xf32, #tpu.memory_space<vmem>>, %arg12: memref<8x8x512xf32, #tpu.memory_space<vmem>>, %arg13: memref<8x8x128xf32, #tpu.memory_space<vmem>>) attributes {dimension_semantics = [#tpu.dimension_semantics<arbitrary>], iteration_bounds = array<i64: 1>, scalar_prefetch = 0 : i64, scratch_operands = 2 : i64, tpu.core_type = #tpu.core_type<tc>, window_params = [{transform_indices = @transform_0, window_bounds = array<i64: 8, 8, 128>}, {pipeline_mode = #tpu.pipeline_mode<synchronous>, transform_indices = @transform_1, window_bounds = array<i64: 128, 512>}, {pipeline_mode = #tpu.pipeline_mode<synchronous>, transform_indices = @transform_2, window_bounds = array<i64: 128, 512>}, {pipeline_mode = #tpu.pipeline_mode<synchronous>, transform_indices = @transform_3, window_bounds = array<i64: 1, 512>}, {pipeline_mode = #tpu.pipeline_mode<synchronous>, transform_indices = @transform_4, window_bounds = array<i64: 128, 512>}, {pipeline_mode = #tpu.pipeline_mode<synchronous>, transform_indices = @transform_5, window_bounds = array<i64: 128, 512>}, {pipeline_mode = #tpu.pipeline_mode<synchronous>, transform_indices = @transform_6, window_bounds = array<i64: 1, 512>}, {pipeline_mode = #tpu.pipeline_mode<synchronous>, transform_indices = @transform_7, window_bounds = array<i64: 8, 128>}, {pipeline_mode = #tpu.pipeline_mode<synchronous>, transform_indices = @transform_8, window_bounds = array<i64: 8, 128>}, {pipeline_mode = #tpu.pipeline_mode<synchronous>, transform_indices = @transform_9, window_bounds = array<i64: 8, 128>}, {pipeline_mode = #tpu.pipeline_mode<synchronous>, transform_indices = @transform_10, window_bounds = array<i64: 8, 128>}]} {
    %c0_i32 = arith.constant 0 : i32
    %0 = arith.cmpi eq, %arg0, %c0_i32 : i32
    %1 = arith.extui %0 : i1 to i32
    %c0_i32_0 = arith.constant 0 : i32
    %2 = arith.cmpi ne, %1, %c0_i32_0 : i32
    scf.if %2 {
      %cst_163 = arith.constant 0.000000e+00 : f32
      %543 = vector.broadcast %cst_163 : f32 to vector<8x128xf32>
      %c0_164 = arith.constant 0 : index
      %c0_165 = arith.constant 0 : index
      %544 = vector.load %arg8[%c0_164, %c0_165] : memref<8x128xf32, #tpu.memory_space<vmem>>, vector<8x128xf32>
      tpu.vector_store %arg8[%c0_164, %c0_165], %543 {strides = array<i32>} : memref<8x128xf32, #tpu.memory_space<vmem>>, vector<8x128xf32>,
      %cst_166 = arith.constant 0.000000e+00 : f32
      %545 = vector.broadcast %cst_166 : f32 to vector<8x128xf32>
      %c0_167 = arith.constant 0 : index
      %c0_168 = arith.constant 0 : index
      %546 = vector.load %arg9[%c0_167, %c0_168] : memref<8x128xf32, #tpu.memory_space<vmem>>, vector<8x128xf32>
      tpu.vector_store %arg9[%c0_167, %c0_168], %545 {strides = array<i32>} : memref<8x128xf32, #tpu.memory_space<vmem>>, vector<8x128xf32>,
      %cst_169 = arith.constant 0.000000e+00 : f32
      %547 = vector.broadcast %cst_169 : f32 to vector<8x128xf32>
      %c0_170 = arith.constant 0 : index
      %c0_171 = arith.constant 0 : index
      %548 = vector.load %arg10[%c0_170, %c0_171] : memref<8x128xf32, #tpu.memory_space<vmem>>, vector<8x128xf32>
      tpu.vector_store %arg10[%c0_170, %c0_171], %547 {strides = array<i32>} : memref<8x128xf32, #tpu.memory_space<vmem>>, vector<8x128xf32>,
      %cst_172 = arith.constant 0.000000e+00 : f32
      %549 = vector.broadcast %cst_172 : f32 to vector<8x128xf32>
      %c0_173 = arith.constant 0 : index
      %c0_174 = arith.constant 0 : index
      %550 = vector.load %arg11[%c0_173, %c0_174] : memref<8x128xf32, #tpu.memory_space<vmem>>, vector<8x128xf32>
      tpu.vector_store %arg11[%c0_173, %c0_174], %549 {strides = array<i32>} : memref<8x128xf32, #tpu.memory_space<vmem>>, vector<8x128xf32>,
    } else {
    }
    %c0 = arith.constant 0 : index
    %c0_1 = arith.constant 0 : index
    %c0_2 = arith.constant 0 : index
    %3 = vector.load %arg1[%c0, %c0_1, %c0_2] : memref<8x8x128xf32, #tpu.memory_space<vmem>>, vector<8x8x128xf32>
    %4 = vector.shape_cast %3 : vector<8x8x128xf32> to vector<64x128xf32>
    %c0_3 = arith.constant 0 : index
    %c0_4 = arith.constant 0 : index
    %5 = vector.load %arg2[%c0_3, %c0_4] : memref<128x512xf32, #tpu.memory_space<vmem>>, vector<128x512xf32>
    %cst = arith.constant dense<0.000000e+00> : vector<64x512xf32>
    %6 = tpu.matmul %4, %5, %cst {dimension_numbers = #tpu.dot_dimension_numbers<[1], [0], [0], [1], [0, 0, 1, 1], [], []>} : vector<64x128xf32>, vector<128x512xf32>, vector<64x512xf32> -> vector<64x512xf32>
    %c0_5 = arith.constant 0 : index
    %c0_6 = arith.constant 0 : index
    %7 = vector.load %arg4[%c0_5, %c0_6] : memref<1x512xf32, #tpu.memory_space<vmem>>, vector<1x512xf32>
    %8 = vector.broadcast %7 : vector<1x512xf32> to vector<64x512xf32>
    %9 = arith.addf %6, %8 : vector<64x512xf32>
    %10 = vector.shape_cast %9 : vector<64x512xf32> to vector<8x8x512xf32>
    %c0_7 = arith.constant 0 : index
    %c0_8 = arith.constant 0 : index
    %c0_9 = arith.constant 0 : index
    %11 = vector.load %arg12[%c0_7, %c0_8, %c0_9] : memref<8x8x512xf32, #tpu.memory_space<vmem>>, vector<8x8x512xf32>
    tpu.vector_store %arg12[%c0_7, %c0_8, %c0_9], %10 {strides = array<i32>} : memref<8x8x512xf32, #tpu.memory_space<vmem>>, vector<8x8x512xf32>,
    %c0_10 = arith.constant 0 : index
    %c0_11 = arith.constant 0 : index
    %12 = vector.load %arg3[%c0_10, %c0_11] : memref<128x512xf32, #tpu.memory_space<vmem>>, vector<128x512xf32>
    %c0_12 = arith.constant 0 : index
    %c0_13 = arith.constant 0 : index
    %13 = vector.load %arg8[%c0_12, %c0_13] : memref<8x128xf32, #tpu.memory_space<vmem>>, vector<8x128xf32>
    %c0_14 = arith.constant 0 : index
    %c0_15 = arith.constant 0 : index
    %14 = vector.load %arg9[%c0_14, %c0_15] : memref<8x128xf32, #tpu.memory_space<vmem>>, vector<8x128xf32>
    %c0_i32_16 = arith.constant 0 : i32
    %15 = arith.index_cast %c0_i32_16 : i32 to index
    %c0_17 = arith.constant 0 : index
    %c0_18 = arith.constant 0 : index
    %16 = vector.load %arg12[%15, %c0_17, %c0_18] : memref<8x8x512xf32, #tpu.memory_space<vmem>>, vector<1x8x512xf32>
    %17 = vector.shape_cast %16 : vector<1x8x512xf32> to vector<8x512xf32>
    %cst_19 = arith.constant dense<0.000000e+00> : vector<8x512xf32>
    %18 = tpu.matmul %13, %12, %cst_19 {dimension_numbers = #tpu.dot_dimension_numbers<[1], [0], [0], [1], [0, 0, 1, 1], [], []>} : vector<8x128xf32>, vector<128x512xf32>, vector<8x512xf32> -> vector<8x512xf32>
    %19 = arith.addf %17, %18 : vector<8x512xf32>
    %20 = vector.extract_strided_slice %19 {offsets = [0, 0], sizes = [8, 128], strides = [1, 1]} : vector<8x512xf32> to vector<8x128xf32>
    %21 = arith.negf %20 : vector<8x128xf32>
    %22 = math.exp %21 : vector<8x128xf32>
    %cst_20 = arith.constant 1.000000e+00 : f32
    %23 = vector.broadcast %cst_20 : f32 to vector<8x128xf32>
    %24 = arith.addf %23, %22 : vector<8x128xf32>
    %25 = arith.divf %23, %24 : vector<8x128xf32>
    %26 = vector.extract_strided_slice %19 {offsets = [0, 128], sizes = [8, 128], strides = [1, 1]} : vector<8x512xf32> to vector<8x128xf32>
    %27 = arith.negf %26 : vector<8x128xf32>
    %28 = math.exp %27 : vector<8x128xf32>
    %cst_21 = arith.constant 1.000000e+00 : f32
    %29 = vector.broadcast %cst_21 : f32 to vector<8x128xf32>
    %30 = arith.addf %29, %28 : vector<8x128xf32>
    %31 = arith.divf %29, %30 : vector<8x128xf32>
    %32 = vector.extract_strided_slice %19 {offsets = [0, 256], sizes = [8, 128], strides = [1, 1]} : vector<8x512xf32> to vector<8x128xf32>
    %33 = math.tanh %32 : vector<8x128xf32>
    %34 = vector.extract_strided_slice %19 {offsets = [0, 384], sizes = [8, 128], strides = [1, 1]} : vector<8x512xf32> to vector<8x128xf32>
    %35 = arith.negf %34 : vector<8x128xf32>
    %36 = math.exp %35 : vector<8x128xf32>
    %cst_22 = arith.constant 1.000000e+00 : f32
    %37 = vector.broadcast %cst_22 : f32 to vector<8x128xf32>
    %38 = arith.addf %37, %36 : vector<8x128xf32>
    %39 = arith.divf %37, %38 : vector<8x128xf32>
    %40 = arith.mulf %31, %14 : vector<8x128xf32>
    %41 = arith.mulf %25, %33 : vector<8x128xf32>
    %42 = arith.addf %40, %41 : vector<8x128xf32>
    %43 = math.tanh %42 : vector<8x128xf32>
    %44 = arith.mulf %39, %43 : vector<8x128xf32>
    %45 = arith.index_cast %c0_i32_16 : i32 to index
    %c0_23 = arith.constant 0 : index
    %c0_24 = arith.constant 0 : index
    %46 = vector.load %arg13[%45, %c0_23, %c0_24] : memref<8x8x128xf32, #tpu.memory_space<vmem>>, vector<1x8x128xf32>
    %47 = vector.shape_cast %46 : vector<1x8x128xf32> to vector<8x128xf32>
    %48 = vector.shape_cast %44 : vector<8x128xf32> to vector<1x8x128xf32>
    tpu.vector_store %arg13[%45, %c0_23, %c0_24], %48 {strides = array<i32>} : memref<8x8x128xf32, #tpu.memory_space<vmem>>, vector<1x8x128xf32>,
    %c1_i32 = arith.constant 1 : i32
    %49 = arith.index_cast %c1_i32 : i32 to index
    %c0_25 = arith.constant 0 : index
    %c0_26 = arith.constant 0 : index
    %50 = vector.load %arg12[%49, %c0_25, %c0_26] : memref<8x8x512xf32, #tpu.memory_space<vmem>>, vector<1x8x512xf32>
    %51 = vector.shape_cast %50 : vector<1x8x512xf32> to vector<8x512xf32>
    %cst_27 = arith.constant dense<0.000000e+00> : vector<8x512xf32>
    %52 = tpu.matmul %44, %12, %cst_27 {dimension_numbers = #tpu.dot_dimension_numbers<[1], [0], [0], [1], [0, 0, 1, 1], [], []>} : vector<8x128xf32>, vector<128x512xf32>, vector<8x512xf32> -> vector<8x512xf32>
    %53 = arith.addf %51, %52 : vector<8x512xf32>
    %54 = vector.extract_strided_slice %53 {offsets = [0, 0], sizes = [8, 128], strides = [1, 1]} : vector<8x512xf32> to vector<8x128xf32>
    %55 = arith.negf %54 : vector<8x128xf32>
    %56 = math.exp %55 : vector<8x128xf32>
    %cst_28 = arith.constant 1.000000e+00 : f32
    %57 = vector.broadcast %cst_28 : f32 to vector<8x128xf32>
    %58 = arith.addf %57, %56 : vector<8x128xf32>
    %59 = arith.divf %57, %58 : vector<8x128xf32>
    %60 = vector.extract_strided_slice %53 {offsets = [0, 128], sizes = [8, 128], strides = [1, 1]} : vector<8x512xf32> to vector<8x128xf32>
    %61 = arith.negf %60 : vector<8x128xf32>
    %62 = math.exp %61 : vector<8x128xf32>
    %cst_29 = arith.constant 1.000000e+00 : f32
    %63 = vector.broadcast %cst_29 : f32 to vector<8x128xf32>
    %64 = arith.addf %63, %62 : vector<8x128xf32>
    %65 = arith.divf %63, %64 : vector<8x128xf32>
    %66 = vector.extract_strided_slice %53 {offsets = [0, 256], sizes = [8, 128], strides = [1, 1]} : vector<8x512xf32> to vector<8x128xf32>
    %67 = math.tanh %66 : vector<8x128xf32>
    %68 = vector.extract_strided_slice %53 {offsets = [0, 384], sizes = [8, 128], strides = [1, 1]} : vector<8x512xf32> to vector<8x128xf32>
    %69 = arith.negf %68 : vector<8x128xf32>
    %70 = math.exp %69 : vector<8x128xf32>
    %cst_30 = arith.constant 1.000000e+00 : f32
    %71 = vector.broadcast %cst_30 : f32 to vector<8x128xf32>
    %72 = arith.addf %71, %70 : vector<8x128xf32>
    %73 = arith.divf %71, %72 : vector<8x128xf32>
    %74 = arith.mulf %65, %42 : vector<8x128xf32>
    %75 = arith.mulf %59, %67 : vector<8x128xf32>
    %76 = arith.addf %74, %75 : vector<8x128xf32>
    %77 = math.tanh %76 : vector<8x128xf32>
    %78 = arith.mulf %73, %77 : vector<8x128xf32>
    %79 = arith.index_cast %c1_i32 : i32 to index
    %c0_31 = arith.constant 0 : index
    %c0_32 = arith.constant 0 : index
    %80 = vector.load %arg13[%79, %c0_31, %c0_32] : memref<8x8x128xf32, #tpu.memory_space<vmem>>, vector<1x8x128xf32>
    %81 = vector.shape_cast %80 : vector<1x8x128xf32> to vector<8x128xf32>
    %82 = vector.shape_cast %78 : vector<8x128xf32> to vector<1x8x128xf32>
    tpu.vector_store %arg13[%79, %c0_31, %c0_32], %82 {strides = array<i32>} : memref<8x8x128xf32, #tpu.memory_space<vmem>>, vector<1x8x128xf32>,
    %c2_i32 = arith.constant 2 : i32
    %83 = arith.index_cast %c2_i32 : i32 to index
    %c0_33 = arith.constant 0 : index
    %c0_34 = arith.constant 0 : index
    %84 = vector.load %arg12[%83, %c0_33, %c0_34] : memref<8x8x512xf32, #tpu.memory_space<vmem>>, vector<1x8x512xf32>
    %85 = vector.shape_cast %84 : vector<1x8x512xf32> to vector<8x512xf32>
    %cst_35 = arith.constant dense<0.000000e+00> : vector<8x512xf32>
    %86 = tpu.matmul %78, %12, %cst_35 {dimension_numbers = #tpu.dot_dimension_numbers<[1], [0], [0], [1], [0, 0, 1, 1], [], []>} : vector<8x128xf32>, vector<128x512xf32>, vector<8x512xf32> -> vector<8x512xf32>
    %87 = arith.addf %85, %86 : vector<8x512xf32>
    %88 = vector.extract_strided_slice %87 {offsets = [0, 0], sizes = [8, 128], strides = [1, 1]} : vector<8x512xf32> to vector<8x128xf32>
    %89 = arith.negf %88 : vector<8x128xf32>
    %90 = math.exp %89 : vector<8x128xf32>
    %cst_36 = arith.constant 1.000000e+00 : f32
    %91 = vector.broadcast %cst_36 : f32 to vector<8x128xf32>
    %92 = arith.addf %91, %90 : vector<8x128xf32>
    %93 = arith.divf %91, %92 : vector<8x128xf32>
    %94 = vector.extract_strided_slice %87 {offsets = [0, 128], sizes = [8, 128], strides = [1, 1]} : vector<8x512xf32> to vector<8x128xf32>
    %95 = arith.negf %94 : vector<8x128xf32>
    %96 = math.exp %95 : vector<8x128xf32>
    %cst_37 = arith.constant 1.000000e+00 : f32
    %97 = vector.broadcast %cst_37 : f32 to vector<8x128xf32>
    %98 = arith.addf %97, %96 : vector<8x128xf32>
    %99 = arith.divf %97, %98 : vector<8x128xf32>
    %100 = vector.extract_strided_slice %87 {offsets = [0, 256], sizes = [8, 128], strides = [1, 1]} : vector<8x512xf32> to vector<8x128xf32>
    %101 = math.tanh %100 : vector<8x128xf32>
    %102 = vector.extract_strided_slice %87 {offsets = [0, 384], sizes = [8, 128], strides = [1, 1]} : vector<8x512xf32> to vector<8x128xf32>
    %103 = arith.negf %102 : vector<8x128xf32>
    %104 = math.exp %103 : vector<8x128xf32>
    %cst_38 = arith.constant 1.000000e+00 : f32
    %105 = vector.broadcast %cst_38 : f32 to vector<8x128xf32>
    %106 = arith.addf %105, %104 : vector<8x128xf32>
    %107 = arith.divf %105, %106 : vector<8x128xf32>
    %108 = arith.mulf %99, %76 : vector<8x128xf32>
    %109 = arith.mulf %93, %101 : vector<8x128xf32>
    %110 = arith.addf %108, %109 : vector<8x128xf32>
    %111 = math.tanh %110 : vector<8x128xf32>
    %112 = arith.mulf %107, %111 : vector<8x128xf32>
    %113 = arith.index_cast %c2_i32 : i32 to index
    %c0_39 = arith.constant 0 : index
    %c0_40 = arith.constant 0 : index
    %114 = vector.load %arg13[%113, %c0_39, %c0_40] : memref<8x8x128xf32, #tpu.memory_space<vmem>>, vector<1x8x128xf32>
    %115 = vector.shape_cast %114 : vector<1x8x128xf32> to vector<8x128xf32>
    %116 = vector.shape_cast %112 : vector<8x128xf32> to vector<1x8x128xf32>
    tpu.vector_store %arg13[%113, %c0_39, %c0_40], %116 {strides = array<i32>} : memref<8x8x128xf32, #tpu.memory_space<vmem>>, vector<1x8x128xf32>,
    %c3_i32 = arith.constant 3 : i32
    %117 = arith.index_cast %c3_i32 : i32 to index
    %c0_41 = arith.constant 0 : index
    %c0_42 = arith.constant 0 : index
    %118 = vector.load %arg12[%117, %c0_41, %c0_42] : memref<8x8x512xf32, #tpu.memory_space<vmem>>, vector<1x8x512xf32>
    %119 = vector.shape_cast %118 : vector<1x8x512xf32> to vector<8x512xf32>
    %cst_43 = arith.constant dense<0.000000e+00> : vector<8x512xf32>
    %120 = tpu.matmul %112, %12, %cst_43 {dimension_numbers = #tpu.dot_dimension_numbers<[1], [0], [0], [1], [0, 0, 1, 1], [], []>} : vector<8x128xf32>, vector<128x512xf32>, vector<8x512xf32> -> vector<8x512xf32>
    %121 = arith.addf %119, %120 : vector<8x512xf32>
    %122 = vector.extract_strided_slice %121 {offsets = [0, 0], sizes = [8, 128], strides = [1, 1]} : vector<8x512xf32> to vector<8x128xf32>
    %123 = arith.negf %122 : vector<8x128xf32>
    %124 = math.exp %123 : vector<8x128xf32>
    %cst_44 = arith.constant 1.000000e+00 : f32
    %125 = vector.broadcast %cst_44 : f32 to vector<8x128xf32>
    %126 = arith.addf %125, %124 : vector<8x128xf32>
    %127 = arith.divf %125, %126 : vector<8x128xf32>
    %128 = vector.extract_strided_slice %121 {offsets = [0, 128], sizes = [8, 128], strides = [1, 1]} : vector<8x512xf32> to vector<8x128xf32>
    %129 = arith.negf %128 : vector<8x128xf32>
    %130 = math.exp %129 : vector<8x128xf32>
    %cst_45 = arith.constant 1.000000e+00 : f32
    %131 = vector.broadcast %cst_45 : f32 to vector<8x128xf32>
    %132 = arith.addf %131, %130 : vector<8x128xf32>
    %133 = arith.divf %131, %132 : vector<8x128xf32>
    %134 = vector.extract_strided_slice %121 {offsets = [0, 256], sizes = [8, 128], strides = [1, 1]} : vector<8x512xf32> to vector<8x128xf32>
    %135 = math.tanh %134 : vector<8x128xf32>
    %136 = vector.extract_strided_slice %121 {offsets = [0, 384], sizes = [8, 128], strides = [1, 1]} : vector<8x512xf32> to vector<8x128xf32>
    %137 = arith.negf %136 : vector<8x128xf32>
    %138 = math.exp %137 : vector<8x128xf32>
    %cst_46 = arith.constant 1.000000e+00 : f32
    %139 = vector.broadcast %cst_46 : f32 to vector<8x128xf32>
    %140 = arith.addf %139, %138 : vector<8x128xf32>
    %141 = arith.divf %139, %140 : vector<8x128xf32>
    %142 = arith.mulf %133, %110 : vector<8x128xf32>
    %143 = arith.mulf %127, %135 : vector<8x128xf32>
    %144 = arith.addf %142, %143 : vector<8x128xf32>
    %145 = math.tanh %144 : vector<8x128xf32>
    %146 = arith.mulf %141, %145 : vector<8x128xf32>
    %147 = arith.index_cast %c3_i32 : i32 to index
    %c0_47 = arith.constant 0 : index
    %c0_48 = arith.constant 0 : index
    %148 = vector.load %arg13[%147, %c0_47, %c0_48] : memref<8x8x128xf32, #tpu.memory_space<vmem>>, vector<1x8x128xf32>
    %149 = vector.shape_cast %148 : vector<1x8x128xf32> to vector<8x128xf32>
    %150 = vector.shape_cast %146 : vector<8x128xf32> to vector<1x8x128xf32>
    tpu.vector_store %arg13[%147, %c0_47, %c0_48], %150 {strides = array<i32>} : memref<8x8x128xf32, #tpu.memory_space<vmem>>, vector<1x8x128xf32>,
    %c4_i32 = arith.constant 4 : i32
    %151 = arith.index_cast %c4_i32 : i32 to index
    %c0_49 = arith.constant 0 : index
    %c0_50 = arith.constant 0 : index
    %152 = vector.load %arg12[%151, %c0_49, %c0_50] : memref<8x8x512xf32, #tpu.memory_space<vmem>>, vector<1x8x512xf32>
    %153 = vector.shape_cast %152 : vector<1x8x512xf32> to vector<8x512xf32>
    %cst_51 = arith.constant dense<0.000000e+00> : vector<8x512xf32>
    %154 = tpu.matmul %146, %12, %cst_51 {dimension_numbers = #tpu.dot_dimension_numbers<[1], [0], [0], [1], [0, 0, 1, 1], [], []>} : vector<8x128xf32>, vector<128x512xf32>, vector<8x512xf32> -> vector<8x512xf32>
    %155 = arith.addf %153, %154 : vector<8x512xf32>
    %156 = vector.extract_strided_slice %155 {offsets = [0, 0], sizes = [8, 128], strides = [1, 1]} : vector<8x512xf32> to vector<8x128xf32>
    %157 = arith.negf %156 : vector<8x128xf32>
    %158 = math.exp %157 : vector<8x128xf32>
    %cst_52 = arith.constant 1.000000e+00 : f32
    %159 = vector.broadcast %cst_52 : f32 to vector<8x128xf32>
    %160 = arith.addf %159, %158 : vector<8x128xf32>
    %161 = arith.divf %159, %160 : vector<8x128xf32>
    %162 = vector.extract_strided_slice %155 {offsets = [0, 128], sizes = [8, 128], strides = [1, 1]} : vector<8x512xf32> to vector<8x128xf32>
    %163 = arith.negf %162 : vector<8x128xf32>
    %164 = math.exp %163 : vector<8x128xf32>
    %cst_53 = arith.constant 1.000000e+00 : f32
    %165 = vector.broadcast %cst_53 : f32 to vector<8x128xf32>
    %166 = arith.addf %165, %164 : vector<8x128xf32>
    %167 = arith.divf %165, %166 : vector<8x128xf32>
    %168 = vector.extract_strided_slice %155 {offsets = [0, 256], sizes = [8, 128], strides = [1, 1]} : vector<8x512xf32> to vector<8x128xf32>
    %169 = math.tanh %168 : vector<8x128xf32>
    %170 = vector.extract_strided_slice %155 {offsets = [0, 384], sizes = [8, 128], strides = [1, 1]} : vector<8x512xf32> to vector<8x128xf32>
    %171 = arith.negf %170 : vector<8x128xf32>
    %172 = math.exp %171 : vector<8x128xf32>
    %cst_54 = arith.constant 1.000000e+00 : f32
    %173 = vector.broadcast %cst_54 : f32 to vector<8x128xf32>
    %174 = arith.addf %173, %172 : vector<8x128xf32>
    %175 = arith.divf %173, %174 : vector<8x128xf32>
    %176 = arith.mulf %167, %144 : vector<8x128xf32>
    %177 = arith.mulf %161, %169 : vector<8x128xf32>
    %178 = arith.addf %176, %177 : vector<8x128xf32>
    %179 = math.tanh %178 : vector<8x128xf32>
    %180 = arith.mulf %175, %179 : vector<8x128xf32>
    %181 = arith.index_cast %c4_i32 : i32 to index
    %c0_55 = arith.constant 0 : index
    %c0_56 = arith.constant 0 : index
    %182 = vector.load %arg13[%181, %c0_55, %c0_56] : memref<8x8x128xf32, #tpu.memory_space<vmem>>, vector<1x8x128xf32>
    %183 = vector.shape_cast %182 : vector<1x8x128xf32> to vector<8x128xf32>
    %184 = vector.shape_cast %180 : vector<8x128xf32> to vector<1x8x128xf32>
    tpu.vector_store %arg13[%181, %c0_55, %c0_56], %184 {strides = array<i32>} : memref<8x8x128xf32, #tpu.memory_space<vmem>>, vector<1x8x128xf32>,
    %c5_i32 = arith.constant 5 : i32
    %185 = arith.index_cast %c5_i32 : i32 to index
    %c0_57 = arith.constant 0 : index
    %c0_58 = arith.constant 0 : index
    %186 = vector.load %arg12[%185, %c0_57, %c0_58] : memref<8x8x512xf32, #tpu.memory_space<vmem>>, vector<1x8x512xf32>
    %187 = vector.shape_cast %186 : vector<1x8x512xf32> to vector<8x512xf32>
    %cst_59 = arith.constant dense<0.000000e+00> : vector<8x512xf32>
    %188 = tpu.matmul %180, %12, %cst_59 {dimension_numbers = #tpu.dot_dimension_numbers<[1], [0], [0], [1], [0, 0, 1, 1], [], []>} : vector<8x128xf32>, vector<128x512xf32>, vector<8x512xf32> -> vector<8x512xf32>
    %189 = arith.addf %187, %188 : vector<8x512xf32>
    %190 = vector.extract_strided_slice %189 {offsets = [0, 0], sizes = [8, 128], strides = [1, 1]} : vector<8x512xf32> to vector<8x128xf32>
    %191 = arith.negf %190 : vector<8x128xf32>
    %192 = math.exp %191 : vector<8x128xf32>
    %cst_60 = arith.constant 1.000000e+00 : f32
    %193 = vector.broadcast %cst_60 : f32 to vector<8x128xf32>
    %194 = arith.addf %193, %192 : vector<8x128xf32>
    %195 = arith.divf %193, %194 : vector<8x128xf32>
    %196 = vector.extract_strided_slice %189 {offsets = [0, 128], sizes = [8, 128], strides = [1, 1]} : vector<8x512xf32> to vector<8x128xf32>
    %197 = arith.negf %196 : vector<8x128xf32>
    %198 = math.exp %197 : vector<8x128xf32>
    %cst_61 = arith.constant 1.000000e+00 : f32
    %199 = vector.broadcast %cst_61 : f32 to vector<8x128xf32>
    %200 = arith.addf %199, %198 : vector<8x128xf32>
    %201 = arith.divf %199, %200 : vector<8x128xf32>
    %202 = vector.extract_strided_slice %189 {offsets = [0, 256], sizes = [8, 128], strides = [1, 1]} : vector<8x512xf32> to vector<8x128xf32>
    %203 = math.tanh %202 : vector<8x128xf32>
    %204 = vector.extract_strided_slice %189 {offsets = [0, 384], sizes = [8, 128], strides = [1, 1]} : vector<8x512xf32> to vector<8x128xf32>
    %205 = arith.negf %204 : vector<8x128xf32>
    %206 = math.exp %205 : vector<8x128xf32>
    %cst_62 = arith.constant 1.000000e+00 : f32
    %207 = vector.broadcast %cst_62 : f32 to vector<8x128xf32>
    %208 = arith.addf %207, %206 : vector<8x128xf32>
    %209 = arith.divf %207, %208 : vector<8x128xf32>
    %210 = arith.mulf %201, %178 : vector<8x128xf32>
    %211 = arith.mulf %195, %203 : vector<8x128xf32>
    %212 = arith.addf %210, %211 : vector<8x128xf32>
    %213 = math.tanh %212 : vector<8x128xf32>
    %214 = arith.mulf %209, %213 : vector<8x128xf32>
    %215 = arith.index_cast %c5_i32 : i32 to index
    %c0_63 = arith.constant 0 : index
    %c0_64 = arith.constant 0 : index
    %216 = vector.load %arg13[%215, %c0_63, %c0_64] : memref<8x8x128xf32, #tpu.memory_space<vmem>>, vector<1x8x128xf32>
    %217 = vector.shape_cast %216 : vector<1x8x128xf32> to vector<8x128xf32>
    %218 = vector.shape_cast %214 : vector<8x128xf32> to vector<1x8x128xf32>
    tpu.vector_store %arg13[%215, %c0_63, %c0_64], %218 {strides = array<i32>} : memref<8x8x128xf32, #tpu.memory_space<vmem>>, vector<1x8x128xf32>,
    %c6_i32 = arith.constant 6 : i32
    %219 = arith.index_cast %c6_i32 : i32 to index
    %c0_65 = arith.constant 0 : index
    %c0_66 = arith.constant 0 : index
    %220 = vector.load %arg12[%219, %c0_65, %c0_66] : memref<8x8x512xf32, #tpu.memory_space<vmem>>, vector<1x8x512xf32>
    %221 = vector.shape_cast %220 : vector<1x8x512xf32> to vector<8x512xf32>
    %cst_67 = arith.constant dense<0.000000e+00> : vector<8x512xf32>
    %222 = tpu.matmul %214, %12, %cst_67 {dimension_numbers = #tpu.dot_dimension_numbers<[1], [0], [0], [1], [0, 0, 1, 1], [], []>} : vector<8x128xf32>, vector<128x512xf32>, vector<8x512xf32> -> vector<8x512xf32>
    %223 = arith.addf %221, %222 : vector<8x512xf32>
    %224 = vector.extract_strided_slice %223 {offsets = [0, 0], sizes = [8, 128], strides = [1, 1]} : vector<8x512xf32> to vector<8x128xf32>
    %225 = arith.negf %224 : vector<8x128xf32>
    %226 = math.exp %225 : vector<8x128xf32>
    %cst_68 = arith.constant 1.000000e+00 : f32
    %227 = vector.broadcast %cst_68 : f32 to vector<8x128xf32>
    %228 = arith.addf %227, %226 : vector<8x128xf32>
    %229 = arith.divf %227, %228 : vector<8x128xf32>
    %230 = vector.extract_strided_slice %223 {offsets = [0, 128], sizes = [8, 128], strides = [1, 1]} : vector<8x512xf32> to vector<8x128xf32>
    %231 = arith.negf %230 : vector<8x128xf32>
    %232 = math.exp %231 : vector<8x128xf32>
    %cst_69 = arith.constant 1.000000e+00 : f32
    %233 = vector.broadcast %cst_69 : f32 to vector<8x128xf32>
    %234 = arith.addf %233, %232 : vector<8x128xf32>
    %235 = arith.divf %233, %234 : vector<8x128xf32>
    %236 = vector.extract_strided_slice %223 {offsets = [0, 256], sizes = [8, 128], strides = [1, 1]} : vector<8x512xf32> to vector<8x128xf32>
    %237 = math.tanh %236 : vector<8x128xf32>
    %238 = vector.extract_strided_slice %223 {offsets = [0, 384], sizes = [8, 128], strides = [1, 1]} : vector<8x512xf32> to vector<8x128xf32>
    %239 = arith.negf %238 : vector<8x128xf32>
    %240 = math.exp %239 : vector<8x128xf32>
    %cst_70 = arith.constant 1.000000e+00 : f32
    %241 = vector.broadcast %cst_70 : f32 to vector<8x128xf32>
    %242 = arith.addf %241, %240 : vector<8x128xf32>
    %243 = arith.divf %241, %242 : vector<8x128xf32>
    %244 = arith.mulf %235, %212 : vector<8x128xf32>
    %245 = arith.mulf %229, %237 : vector<8x128xf32>
    %246 = arith.addf %244, %245 : vector<8x128xf32>
    %247 = math.tanh %246 : vector<8x128xf32>
    %248 = arith.mulf %243, %247 : vector<8x128xf32>
    %249 = arith.index_cast %c6_i32 : i32 to index
    %c0_71 = arith.constant 0 : index
    %c0_72 = arith.constant 0 : index
    %250 = vector.load %arg13[%249, %c0_71, %c0_72] : memref<8x8x128xf32, #tpu.memory_space<vmem>>, vector<1x8x128xf32>
    %251 = vector.shape_cast %250 : vector<1x8x128xf32> to vector<8x128xf32>
    %252 = vector.shape_cast %248 : vector<8x128xf32> to vector<1x8x128xf32>
    tpu.vector_store %arg13[%249, %c0_71, %c0_72], %252 {strides = array<i32>} : memref<8x8x128xf32, #tpu.memory_space<vmem>>, vector<1x8x128xf32>,
    %c7_i32 = arith.constant 7 : i32
    %253 = arith.index_cast %c7_i32 : i32 to index
    %c0_73 = arith.constant 0 : index
    %c0_74 = arith.constant 0 : index
    %254 = vector.load %arg12[%253, %c0_73, %c0_74] : memref<8x8x512xf32, #tpu.memory_space<vmem>>, vector<1x8x512xf32>
    %255 = vector.shape_cast %254 : vector<1x8x512xf32> to vector<8x512xf32>
    %cst_75 = arith.constant dense<0.000000e+00> : vector<8x512xf32>
    %256 = tpu.matmul %248, %12, %cst_75 {dimension_numbers = #tpu.dot_dimension_numbers<[1], [0], [0], [1], [0, 0, 1, 1], [], []>} : vector<8x128xf32>, vector<128x512xf32>, vector<8x512xf32> -> vector<8x512xf32>
    %257 = arith.addf %255, %256 : vector<8x512xf32>
    %258 = vector.extract_strided_slice %257 {offsets = [0, 0], sizes = [8, 128], strides = [1, 1]} : vector<8x512xf32> to vector<8x128xf32>
    %259 = arith.negf %258 : vector<8x128xf32>
    %260 = math.exp %259 : vector<8x128xf32>
    %cst_76 = arith.constant 1.000000e+00 : f32
    %261 = vector.broadcast %cst_76 : f32 to vector<8x128xf32>
    %262 = arith.addf %261, %260 : vector<8x128xf32>
    %263 = arith.divf %261, %262 : vector<8x128xf32>
    %264 = vector.extract_strided_slice %257 {offsets = [0, 128], sizes = [8, 128], strides = [1, 1]} : vector<8x512xf32> to vector<8x128xf32>
    %265 = arith.negf %264 : vector<8x128xf32>
    %266 = math.exp %265 : vector<8x128xf32>
    %cst_77 = arith.constant 1.000000e+00 : f32
    %267 = vector.broadcast %cst_77 : f32 to vector<8x128xf32>
    %268 = arith.addf %267, %266 : vector<8x128xf32>
    %269 = arith.divf %267, %268 : vector<8x128xf32>
    %270 = vector.extract_strided_slice %257 {offsets = [0, 256], sizes = [8, 128], strides = [1, 1]} : vector<8x512xf32> to vector<8x128xf32>
    %271 = math.tanh %270 : vector<8x128xf32>
    %272 = vector.extract_strided_slice %257 {offsets = [0, 384], sizes = [8, 128], strides = [1, 1]} : vector<8x512xf32> to vector<8x128xf32>
    %273 = arith.negf %272 : vector<8x128xf32>
    %274 = math.exp %273 : vector<8x128xf32>
    %cst_78 = arith.constant 1.000000e+00 : f32
    %275 = vector.broadcast %cst_78 : f32 to vector<8x128xf32>
    %276 = arith.addf %275, %274 : vector<8x128xf32>
    %277 = arith.divf %275, %276 : vector<8x128xf32>
    %278 = arith.mulf %269, %246 : vector<8x128xf32>
    %279 = arith.mulf %263, %271 : vector<8x128xf32>
    %280 = arith.addf %278, %279 : vector<8x128xf32>
    %281 = math.tanh %280 : vector<8x128xf32>
    %282 = arith.mulf %277, %281 : vector<8x128xf32>
    %283 = arith.index_cast %c7_i32 : i32 to index
    %c0_79 = arith.constant 0 : index
    %c0_80 = arith.constant 0 : index
    %284 = vector.load %arg13[%283, %c0_79, %c0_80] : memref<8x8x128xf32, #tpu.memory_space<vmem>>, vector<1x8x128xf32>
    %285 = vector.shape_cast %284 : vector<1x8x128xf32> to vector<8x128xf32>
    %286 = vector.shape_cast %282 : vector<8x128xf32> to vector<1x8x128xf32>
    tpu.vector_store %arg13[%283, %c0_79, %c0_80], %286 {strides = array<i32>} : memref<8x8x128xf32, #tpu.memory_space<vmem>>, vector<1x8x128xf32>,
    %c8_i32 = arith.constant 8 : i32
    %c0_81 = arith.constant 0 : index
    %c0_82 = arith.constant 0 : index
    %287 = vector.load %arg8[%c0_81, %c0_82] : memref<8x128xf32, #tpu.memory_space<vmem>>, vector<8x128xf32>
    tpu.vector_store %arg8[%c0_81, %c0_82], %282 {strides = array<i32>} : memref<8x128xf32, #tpu.memory_space<vmem>>, vector<8x128xf32>,
    %c0_83 = arith.constant 0 : index
    %c0_84 = arith.constant 0 : index
    %288 = vector.load %arg9[%c0_83, %c0_84] : memref<8x128xf32, #tpu.memory_space<vmem>>, vector<8x128xf32>
    tpu.vector_store %arg9[%c0_83, %c0_84], %280 {strides = array<i32>} : memref<8x128xf32, #tpu.memory_space<vmem>>, vector<8x128xf32>,
    %c0_85 = arith.constant 0 : index
    %c0_86 = arith.constant 0 : index
    %c0_87 = arith.constant 0 : index
    %289 = vector.load %arg13[%c0_85, %c0_86, %c0_87] : memref<8x8x128xf32, #tpu.memory_space<vmem>>, vector<8x8x128xf32>
    %290 = vector.shape_cast %289 : vector<8x8x128xf32> to vector<64x128xf32>
    %c0_88 = arith.constant 0 : index
    %c0_89 = arith.constant 0 : index
    %291 = vector.load %arg5[%c0_88, %c0_89] : memref<128x512xf32, #tpu.memory_space<vmem>>, vector<128x512xf32>
    %cst_90 = arith.constant dense<0.000000e+00> : vector<64x512xf32>
    %292 = tpu.matmul %290, %291, %cst_90 {dimension_numbers = #tpu.dot_dimension_numbers<[1], [0], [0], [1], [0, 0, 1, 1], [], []>} : vector<64x128xf32>, vector<128x512xf32>, vector<64x512xf32> -> vector<64x512xf32>
    %c0_91 = arith.constant 0 : index
    %c0_92 = arith.constant 0 : index
    %293 = vector.load %arg7[%c0_91, %c0_92] : memref<1x512xf32, #tpu.memory_space<vmem>>, vector<1x512xf32>
    %294 = vector.broadcast %293 : vector<1x512xf32> to vector<64x512xf32>
    %295 = arith.addf %292, %294 : vector<64x512xf32>
    %296 = vector.shape_cast %295 : vector<64x512xf32> to vector<8x8x512xf32>
    %c0_93 = arith.constant 0 : index
    %c0_94 = arith.constant 0 : index
    %c0_95 = arith.constant 0 : index
    %297 = vector.load %arg12[%c0_93, %c0_94, %c0_95] : memref<8x8x512xf32, #tpu.memory_space<vmem>>, vector<8x8x512xf32>
    tpu.vector_store %arg12[%c0_93, %c0_94, %c0_95], %296 {strides = array<i32>} : memref<8x8x512xf32, #tpu.memory_space<vmem>>, vector<8x8x512xf32>,
    %c0_96 = arith.constant 0 : index
    %c0_97 = arith.constant 0 : index
    %298 = vector.load %arg6[%c0_96, %c0_97] : memref<128x512xf32, #tpu.memory_space<vmem>>, vector<128x512xf32>
    %c0_98 = arith.constant 0 : index
    %c0_99 = arith.constant 0 : index
    %299 = vector.load %arg10[%c0_98, %c0_99] : memref<8x128xf32, #tpu.memory_space<vmem>>, vector<8x128xf32>
    %c0_100 = arith.constant 0 : index
    %c0_101 = arith.constant 0 : index
    %300 = vector.load %arg11[%c0_100, %c0_101] : memref<8x128xf32, #tpu.memory_space<vmem>>, vector<8x128xf32>
    %c0_i32_102 = arith.constant 0 : i32
    %301 = arith.index_cast %c0_i32_102 : i32 to index
    %c0_103 = arith.constant 0 : index
    %c0_104 = arith.constant 0 : index
    %302 = vector.load %arg12[%301, %c0_103, %c0_104] : memref<8x8x512xf32, #tpu.memory_space<vmem>>, vector<1x8x512xf32>
    %303 = vector.shape_cast %302 : vector<1x8x512xf32> to vector<8x512xf32>
    %cst_105 = arith.constant dense<0.000000e+00> : vector<8x512xf32>
    %304 = tpu.matmul %299, %298, %cst_105 {dimension_numbers = #tpu.dot_dimension_numbers<[1], [0], [0], [1], [0, 0, 1, 1], [], []>} : vector<8x128xf32>, vector<128x512xf32>, vector<8x512xf32> -> vector<8x512xf32>
    %305 = arith.addf %303, %304 : vector<8x512xf32>
    %306 = vector.extract_strided_slice %305 {offsets = [0, 0], sizes = [8, 128], strides = [1, 1]} : vector<8x512xf32> to vector<8x128xf32>
    %307 = arith.negf %306 : vector<8x128xf32>
    %308 = math.exp %307 : vector<8x128xf32>
    %cst_106 = arith.constant 1.000000e+00 : f32
    %309 = vector.broadcast %cst_106 : f32 to vector<8x128xf32>
    %310 = arith.addf %309, %308 : vector<8x128xf32>
    %311 = arith.divf %309, %310 : vector<8x128xf32>
    %312 = vector.extract_strided_slice %305 {offsets = [0, 128], sizes = [8, 128], strides = [1, 1]} : vector<8x512xf32> to vector<8x128xf32>
    %313 = arith.negf %312 : vector<8x128xf32>
    %314 = math.exp %313 : vector<8x128xf32>
    %cst_107 = arith.constant 1.000000e+00 : f32
    %315 = vector.broadcast %cst_107 : f32 to vector<8x128xf32>
    %316 = arith.addf %315, %314 : vector<8x128xf32>
    %317 = arith.divf %315, %316 : vector<8x128xf32>
    %318 = vector.extract_strided_slice %305 {offsets = [0, 256], sizes = [8, 128], strides = [1, 1]} : vector<8x512xf32> to vector<8x128xf32>
    %319 = math.tanh %318 : vector<8x128xf32>
    %320 = vector.extract_strided_slice %305 {offsets = [0, 384], sizes = [8, 128], strides = [1, 1]} : vector<8x512xf32> to vector<8x128xf32>
    %321 = arith.negf %320 : vector<8x128xf32>
    %322 = math.exp %321 : vector<8x128xf32>
    %cst_108 = arith.constant 1.000000e+00 : f32
    %323 = vector.broadcast %cst_108 : f32 to vector<8x128xf32>
    %324 = arith.addf %323, %322 : vector<8x128xf32>
    %325 = arith.divf %323, %324 : vector<8x128xf32>
    %326 = arith.mulf %317, %300 : vector<8x128xf32>
    %327 = arith.mulf %311, %319 : vector<8x128xf32>
    %328 = arith.addf %326, %327 : vector<8x128xf32>
    %329 = math.tanh %328 : vector<8x128xf32>
    %330 = arith.mulf %325, %329 : vector<8x128xf32>
    %c1_i32_109 = arith.constant 1 : i32
    %331 = arith.index_cast %c1_i32_109 : i32 to index
    %c0_110 = arith.constant 0 : index
    %c0_111 = arith.constant 0 : index
    %332 = vector.load %arg12[%331, %c0_110, %c0_111] : memref<8x8x512xf32, #tpu.memory_space<vmem>>, vector<1x8x512xf32>
    %333 = vector.shape_cast %332 : vector<1x8x512xf32> to vector<8x512xf32>
    %cst_112 = arith.constant dense<0.000000e+00> : vector<8x512xf32>
    %334 = tpu.matmul %330, %298, %cst_112 {dimension_numbers = #tpu.dot_dimension_numbers<[1], [0], [0], [1], [0, 0, 1, 1], [], []>} : vector<8x128xf32>, vector<128x512xf32>, vector<8x512xf32> -> vector<8x512xf32>
    %335 = arith.addf %333, %334 : vector<8x512xf32>
    %336 = vector.extract_strided_slice %335 {offsets = [0, 0], sizes = [8, 128], strides = [1, 1]} : vector<8x512xf32> to vector<8x128xf32>
    %337 = arith.negf %336 : vector<8x128xf32>
    %338 = math.exp %337 : vector<8x128xf32>
    %cst_113 = arith.constant 1.000000e+00 : f32
    %339 = vector.broadcast %cst_113 : f32 to vector<8x128xf32>
    %340 = arith.addf %339, %338 : vector<8x128xf32>
    %341 = arith.divf %339, %340 : vector<8x128xf32>
    %342 = vector.extract_strided_slice %335 {offsets = [0, 128], sizes = [8, 128], strides = [1, 1]} : vector<8x512xf32> to vector<8x128xf32>
    %343 = arith.negf %342 : vector<8x128xf32>
    %344 = math.exp %343 : vector<8x128xf32>
    %cst_114 = arith.constant 1.000000e+00 : f32
    %345 = vector.broadcast %cst_114 : f32 to vector<8x128xf32>
    %346 = arith.addf %345, %344 : vector<8x128xf32>
    %347 = arith.divf %345, %346 : vector<8x128xf32>
    %348 = vector.extract_strided_slice %335 {offsets = [0, 256], sizes = [8, 128], strides = [1, 1]} : vector<8x512xf32> to vector<8x128xf32>
    %349 = math.tanh %348 : vector<8x128xf32>
    %350 = vector.extract_strided_slice %335 {offsets = [0, 384], sizes = [8, 128], strides = [1, 1]} : vector<8x512xf32> to vector<8x128xf32>
    %351 = arith.negf %350 : vector<8x128xf32>
    %352 = math.exp %351 : vector<8x128xf32>
    %cst_115 = arith.constant 1.000000e+00 : f32
    %353 = vector.broadcast %cst_115 : f32 to vector<8x128xf32>
    %354 = arith.addf %353, %352 : vector<8x128xf32>
    %355 = arith.divf %353, %354 : vector<8x128xf32>
    %356 = arith.mulf %347, %328 : vector<8x128xf32>
    %357 = arith.mulf %341, %349 : vector<8x128xf32>
    %358 = arith.addf %356, %357 : vector<8x128xf32>
    %359 = math.tanh %358 : vector<8x128xf32>
    %360 = arith.mulf %355, %359 : vector<8x128xf32>
    %c2_i32_116 = arith.constant 2 : i32
    %361 = arith.index_cast %c2_i32_116 : i32 to index
    %c0_117 = arith.constant 0 : index
    %c0_118 = arith.constant 0 : index
    %362 = vector.load %arg12[%361, %c0_117, %c0_118] : memref<8x8x512xf32, #tpu.memory_space<vmem>>, vector<1x8x512xf32>
    %363 = vector.shape_cast %362 : vector<1x8x512xf32> to vector<8x512xf32>
    %cst_119 = arith.constant dense<0.000000e+00> : vector<8x512xf32>
    %364 = tpu.matmul %360, %298, %cst_119 {dimension_numbers = #tpu.dot_dimension_numbers<[1], [0], [0], [1], [0, 0, 1, 1], [], []>} : vector<8x128xf32>, vector<128x512xf32>, vector<8x512xf32> -> vector<8x512xf32>
    %365 = arith.addf %363, %364 : vector<8x512xf32>
    %366 = vector.extract_strided_slice %365 {offsets = [0, 0], sizes = [8, 128], strides = [1, 1]} : vector<8x512xf32> to vector<8x128xf32>
    %367 = arith.negf %366 : vector<8x128xf32>
    %368 = math.exp %367 : vector<8x128xf32>
    %cst_120 = arith.constant 1.000000e+00 : f32
    %369 = vector.broadcast %cst_120 : f32 to vector<8x128xf32>
    %370 = arith.addf %369, %368 : vector<8x128xf32>
    %371 = arith.divf %369, %370 : vector<8x128xf32>
    %372 = vector.extract_strided_slice %365 {offsets = [0, 128], sizes = [8, 128], strides = [1, 1]} : vector<8x512xf32> to vector<8x128xf32>
    %373 = arith.negf %372 : vector<8x128xf32>
    %374 = math.exp %373 : vector<8x128xf32>
    %cst_121 = arith.constant 1.000000e+00 : f32
    %375 = vector.broadcast %cst_121 : f32 to vector<8x128xf32>
    %376 = arith.addf %375, %374 : vector<8x128xf32>
    %377 = arith.divf %375, %376 : vector<8x128xf32>
    %378 = vector.extract_strided_slice %365 {offsets = [0, 256], sizes = [8, 128], strides = [1, 1]} : vector<8x512xf32> to vector<8x128xf32>
    %379 = math.tanh %378 : vector<8x128xf32>
    %380 = vector.extract_strided_slice %365 {offsets = [0, 384], sizes = [8, 128], strides = [1, 1]} : vector<8x512xf32> to vector<8x128xf32>
    %381 = arith.negf %380 : vector<8x128xf32>
    %382 = math.exp %381 : vector<8x128xf32>
    %cst_122 = arith.constant 1.000000e+00 : f32
    %383 = vector.broadcast %cst_122 : f32 to vector<8x128xf32>
    %384 = arith.addf %383, %382 : vector<8x128xf32>
    %385 = arith.divf %383, %384 : vector<8x128xf32>
    %386 = arith.mulf %377, %358 : vector<8x128xf32>
    %387 = arith.mulf %371, %379 : vector<8x128xf32>
    %388 = arith.addf %386, %387 : vector<8x128xf32>
    %389 = math.tanh %388 : vector<8x128xf32>
    %390 = arith.mulf %385, %389 : vector<8x128xf32>
    %c3_i32_123 = arith.constant 3 : i32
    %391 = arith.index_cast %c3_i32_123 : i32 to index
    %c0_124 = arith.constant 0 : index
    %c0_125 = arith.constant 0 : index
    %392 = vector.load %arg12[%391, %c0_124, %c0_125] : memref<8x8x512xf32, #tpu.memory_space<vmem>>, vector<1x8x512xf32>
    %393 = vector.shape_cast %392 : vector<1x8x512xf32> to vector<8x512xf32>
    %cst_126 = arith.constant dense<0.000000e+00> : vector<8x512xf32>
    %394 = tpu.matmul %390, %298, %cst_126 {dimension_numbers = #tpu.dot_dimension_numbers<[1], [0], [0], [1], [0, 0, 1, 1], [], []>} : vector<8x128xf32>, vector<128x512xf32>, vector<8x512xf32> -> vector<8x512xf32>
    %395 = arith.addf %393, %394 : vector<8x512xf32>
    %396 = vector.extract_strided_slice %395 {offsets = [0, 0], sizes = [8, 128], strides = [1, 1]} : vector<8x512xf32> to vector<8x128xf32>
    %397 = arith.negf %396 : vector<8x128xf32>
    %398 = math.exp %397 : vector<8x128xf32>
    %cst_127 = arith.constant 1.000000e+00 : f32
    %399 = vector.broadcast %cst_127 : f32 to vector<8x128xf32>
    %400 = arith.addf %399, %398 : vector<8x128xf32>
    %401 = arith.divf %399, %400 : vector<8x128xf32>
    %402 = vector.extract_strided_slice %395 {offsets = [0, 128], sizes = [8, 128], strides = [1, 1]} : vector<8x512xf32> to vector<8x128xf32>
    %403 = arith.negf %402 : vector<8x128xf32>
    %404 = math.exp %403 : vector<8x128xf32>
    %cst_128 = arith.constant 1.000000e+00 : f32
    %405 = vector.broadcast %cst_128 : f32 to vector<8x128xf32>
    %406 = arith.addf %405, %404 : vector<8x128xf32>
    %407 = arith.divf %405, %406 : vector<8x128xf32>
    %408 = vector.extract_strided_slice %395 {offsets = [0, 256], sizes = [8, 128], strides = [1, 1]} : vector<8x512xf32> to vector<8x128xf32>
    %409 = math.tanh %408 : vector<8x128xf32>
    %410 = vector.extract_strided_slice %395 {offsets = [0, 384], sizes = [8, 128], strides = [1, 1]} : vector<8x512xf32> to vector<8x128xf32>
    %411 = arith.negf %410 : vector<8x128xf32>
    %412 = math.exp %411 : vector<8x128xf32>
    %cst_129 = arith.constant 1.000000e+00 : f32
    %413 = vector.broadcast %cst_129 : f32 to vector<8x128xf32>
    %414 = arith.addf %413, %412 : vector<8x128xf32>
    %415 = arith.divf %413, %414 : vector<8x128xf32>
    %416 = arith.mulf %407, %388 : vector<8x128xf32>
    %417 = arith.mulf %401, %409 : vector<8x128xf32>
    %418 = arith.addf %416, %417 : vector<8x128xf32>
    %419 = math.tanh %418 : vector<8x128xf32>
    %420 = arith.mulf %415, %419 : vector<8x128xf32>
    %c4_i32_130 = arith.constant 4 : i32
    %421 = arith.index_cast %c4_i32_130 : i32 to index
    %c0_131 = arith.constant 0 : index
    %c0_132 = arith.constant 0 : index
    %422 = vector.load %arg12[%421, %c0_131, %c0_132] : memref<8x8x512xf32, #tpu.memory_space<vmem>>, vector<1x8x512xf32>
    %423 = vector.shape_cast %422 : vector<1x8x512xf32> to vector<8x512xf32>
    %cst_133 = arith.constant dense<0.000000e+00> : vector<8x512xf32>
    %424 = tpu.matmul %420, %298, %cst_133 {dimension_numbers = #tpu.dot_dimension_numbers<[1], [0], [0], [1], [0, 0, 1, 1], [], []>} : vector<8x128xf32>, vector<128x512xf32>, vector<8x512xf32> -> vector<8x512xf32>
    %425 = arith.addf %423, %424 : vector<8x512xf32>
    %426 = vector.extract_strided_slice %425 {offsets = [0, 0], sizes = [8, 128], strides = [1, 1]} : vector<8x512xf32> to vector<8x128xf32>
    %427 = arith.negf %426 : vector<8x128xf32>
    %428 = math.exp %427 : vector<8x128xf32>
    %cst_134 = arith.constant 1.000000e+00 : f32
    %429 = vector.broadcast %cst_134 : f32 to vector<8x128xf32>
    %430 = arith.addf %429, %428 : vector<8x128xf32>
    %431 = arith.divf %429, %430 : vector<8x128xf32>
    %432 = vector.extract_strided_slice %425 {offsets = [0, 128], sizes = [8, 128], strides = [1, 1]} : vector<8x512xf32> to vector<8x128xf32>
    %433 = arith.negf %432 : vector<8x128xf32>
    %434 = math.exp %433 : vector<8x128xf32>
    %cst_135 = arith.constant 1.000000e+00 : f32
    %435 = vector.broadcast %cst_135 : f32 to vector<8x128xf32>
    %436 = arith.addf %435, %434 : vector<8x128xf32>
    %437 = arith.divf %435, %436 : vector<8x128xf32>
    %438 = vector.extract_strided_slice %425 {offsets = [0, 256], sizes = [8, 128], strides = [1, 1]} : vector<8x512xf32> to vector<8x128xf32>
    %439 = math.tanh %438 : vector<8x128xf32>
    %440 = vector.extract_strided_slice %425 {offsets = [0, 384], sizes = [8, 128], strides = [1, 1]} : vector<8x512xf32> to vector<8x128xf32>
    %441 = arith.negf %440 : vector<8x128xf32>
    %442 = math.exp %441 : vector<8x128xf32>
    %cst_136 = arith.constant 1.000000e+00 : f32
    %443 = vector.broadcast %cst_136 : f32 to vector<8x128xf32>
    %444 = arith.addf %443, %442 : vector<8x128xf32>
    %445 = arith.divf %443, %444 : vector<8x128xf32>
    %446 = arith.mulf %437, %418 : vector<8x128xf32>
    %447 = arith.mulf %431, %439 : vector<8x128xf32>
    %448 = arith.addf %446, %447 : vector<8x128xf32>
    %449 = math.tanh %448 : vector<8x128xf32>
    %450 = arith.mulf %445, %449 : vector<8x128xf32>
    %c5_i32_137 = arith.constant 5 : i32
    %451 = arith.index_cast %c5_i32_137 : i32 to index
    %c0_138 = arith.constant 0 : index
    %c0_139 = arith.constant 0 : index
    %452 = vector.load %arg12[%451, %c0_138, %c0_139] : memref<8x8x512xf32, #tpu.memory_space<vmem>>, vector<1x8x512xf32>
    %453 = vector.shape_cast %452 : vector<1x8x512xf32> to vector<8x512xf32>
    %cst_140 = arith.constant dense<0.000000e+00> : vector<8x512xf32>
    %454 = tpu.matmul %450, %298, %cst_140 {dimension_numbers = #tpu.dot_dimension_numbers<[1], [0], [0], [1], [0, 0, 1, 1], [], []>} : vector<8x128xf32>, vector<128x512xf32>, vector<8x512xf32> -> vector<8x512xf32>
    %455 = arith.addf %453, %454 : vector<8x512xf32>
    %456 = vector.extract_strided_slice %455 {offsets = [0, 0], sizes = [8, 128], strides = [1, 1]} : vector<8x512xf32> to vector<8x128xf32>
    %457 = arith.negf %456 : vector<8x128xf32>
    %458 = math.exp %457 : vector<8x128xf32>
    %cst_141 = arith.constant 1.000000e+00 : f32
    %459 = vector.broadcast %cst_141 : f32 to vector<8x128xf32>
    %460 = arith.addf %459, %458 : vector<8x128xf32>
    %461 = arith.divf %459, %460 : vector<8x128xf32>
    %462 = vector.extract_strided_slice %455 {offsets = [0, 128], sizes = [8, 128], strides = [1, 1]} : vector<8x512xf32> to vector<8x128xf32>
    %463 = arith.negf %462 : vector<8x128xf32>
    %464 = math.exp %463 : vector<8x128xf32>
    %cst_142 = arith.constant 1.000000e+00 : f32
    %465 = vector.broadcast %cst_142 : f32 to vector<8x128xf32>
    %466 = arith.addf %465, %464 : vector<8x128xf32>
    %467 = arith.divf %465, %466 : vector<8x128xf32>
    %468 = vector.extract_strided_slice %455 {offsets = [0, 256], sizes = [8, 128], strides = [1, 1]} : vector<8x512xf32> to vector<8x128xf32>
    %469 = math.tanh %468 : vector<8x128xf32>
    %470 = vector.extract_strided_slice %455 {offsets = [0, 384], sizes = [8, 128], strides = [1, 1]} : vector<8x512xf32> to vector<8x128xf32>
    %471 = arith.negf %470 : vector<8x128xf32>
    %472 = math.exp %471 : vector<8x128xf32>
    %cst_143 = arith.constant 1.000000e+00 : f32
    %473 = vector.broadcast %cst_143 : f32 to vector<8x128xf32>
    %474 = arith.addf %473, %472 : vector<8x128xf32>
    %475 = arith.divf %473, %474 : vector<8x128xf32>
    %476 = arith.mulf %467, %448 : vector<8x128xf32>
    %477 = arith.mulf %461, %469 : vector<8x128xf32>
    %478 = arith.addf %476, %477 : vector<8x128xf32>
    %479 = math.tanh %478 : vector<8x128xf32>
    %480 = arith.mulf %475, %479 : vector<8x128xf32>
    %c6_i32_144 = arith.constant 6 : i32
    %481 = arith.index_cast %c6_i32_144 : i32 to index
    %c0_145 = arith.constant 0 : index
    %c0_146 = arith.constant 0 : index
    %482 = vector.load %arg12[%481, %c0_145, %c0_146] : memref<8x8x512xf32, #tpu.memory_space<vmem>>, vector<1x8x512xf32>
    %483 = vector.shape_cast %482 : vector<1x8x512xf32> to vector<8x512xf32>
    %cst_147 = arith.constant dense<0.000000e+00> : vector<8x512xf32>
    %484 = tpu.matmul %480, %298, %cst_147 {dimension_numbers = #tpu.dot_dimension_numbers<[1], [0], [0], [1], [0, 0, 1, 1], [], []>} : vector<8x128xf32>, vector<128x512xf32>, vector<8x512xf32> -> vector<8x512xf32>
    %485 = arith.addf %483, %484 : vector<8x512xf32>
    %486 = vector.extract_strided_slice %485 {offsets = [0, 0], sizes = [8, 128], strides = [1, 1]} : vector<8x512xf32> to vector<8x128xf32>
    %487 = arith.negf %486 : vector<8x128xf32>
    %488 = math.exp %487 : vector<8x128xf32>
    %cst_148 = arith.constant 1.000000e+00 : f32
    %489 = vector.broadcast %cst_148 : f32 to vector<8x128xf32>
    %490 = arith.addf %489, %488 : vector<8x128xf32>
    %491 = arith.divf %489, %490 : vector<8x128xf32>
    %492 = vector.extract_strided_slice %485 {offsets = [0, 128], sizes = [8, 128], strides = [1, 1]} : vector<8x512xf32> to vector<8x128xf32>
    %493 = arith.negf %492 : vector<8x128xf32>
    %494 = math.exp %493 : vector<8x128xf32>
    %cst_149 = arith.constant 1.000000e+00 : f32
    %495 = vector.broadcast %cst_149 : f32 to vector<8x128xf32>
    %496 = arith.addf %495, %494 : vector<8x128xf32>
    %497 = arith.divf %495, %496 : vector<8x128xf32>
    %498 = vector.extract_strided_slice %485 {offsets = [0, 256], sizes = [8, 128], strides = [1, 1]} : vector<8x512xf32> to vector<8x128xf32>
    %499 = math.tanh %498 : vector<8x128xf32>
    %500 = vector.extract_strided_slice %485 {offsets = [0, 384], sizes = [8, 128], strides = [1, 1]} : vector<8x512xf32> to vector<8x128xf32>
    %501 = arith.negf %500 : vector<8x128xf32>
    %502 = math.exp %501 : vector<8x128xf32>
    %cst_150 = arith.constant 1.000000e+00 : f32
    %503 = vector.broadcast %cst_150 : f32 to vector<8x128xf32>
    %504 = arith.addf %503, %502 : vector<8x128xf32>
    %505 = arith.divf %503, %504 : vector<8x128xf32>
    %506 = arith.mulf %497, %478 : vector<8x128xf32>
    %507 = arith.mulf %491, %499 : vector<8x128xf32>
    %508 = arith.addf %506, %507 : vector<8x128xf32>
    %509 = math.tanh %508 : vector<8x128xf32>
    %510 = arith.mulf %505, %509 : vector<8x128xf32>
    %c7_i32_151 = arith.constant 7 : i32
    %511 = arith.index_cast %c7_i32_151 : i32 to index
    %c0_152 = arith.constant 0 : index
    %c0_153 = arith.constant 0 : index
    %512 = vector.load %arg12[%511, %c0_152, %c0_153] : memref<8x8x512xf32, #tpu.memory_space<vmem>>, vector<1x8x512xf32>
    %513 = vector.shape_cast %512 : vector<1x8x512xf32> to vector<8x512xf32>
    %cst_154 = arith.constant dense<0.000000e+00> : vector<8x512xf32>
    %514 = tpu.matmul %510, %298, %cst_154 {dimension_numbers = #tpu.dot_dimension_numbers<[1], [0], [0], [1], [0, 0, 1, 1], [], []>} : vector<8x128xf32>, vector<128x512xf32>, vector<8x512xf32> -> vector<8x512xf32>
    %515 = arith.addf %513, %514 : vector<8x512xf32>
    %516 = vector.extract_strided_slice %515 {offsets = [0, 0], sizes = [8, 128], strides = [1, 1]} : vector<8x512xf32> to vector<8x128xf32>
    %517 = arith.negf %516 : vector<8x128xf32>
    %518 = math.exp %517 : vector<8x128xf32>
    %cst_155 = arith.constant 1.000000e+00 : f32
    %519 = vector.broadcast %cst_155 : f32 to vector<8x128xf32>
    %520 = arith.addf %519, %518 : vector<8x128xf32>
    %521 = arith.divf %519, %520 : vector<8x128xf32>
    %522 = vector.extract_strided_slice %515 {offsets = [0, 128], sizes = [8, 128], strides = [1, 1]} : vector<8x512xf32> to vector<8x128xf32>
    %523 = arith.negf %522 : vector<8x128xf32>
    %524 = math.exp %523 : vector<8x128xf32>
    %cst_156 = arith.constant 1.000000e+00 : f32
    %525 = vector.broadcast %cst_156 : f32 to vector<8x128xf32>
    %526 = arith.addf %525, %524 : vector<8x128xf32>
    %527 = arith.divf %525, %526 : vector<8x128xf32>
    %528 = vector.extract_strided_slice %515 {offsets = [0, 256], sizes = [8, 128], strides = [1, 1]} : vector<8x512xf32> to vector<8x128xf32>
    %529 = math.tanh %528 : vector<8x128xf32>
    %530 = vector.extract_strided_slice %515 {offsets = [0, 384], sizes = [8, 128], strides = [1, 1]} : vector<8x512xf32> to vector<8x128xf32>
    %531 = arith.negf %530 : vector<8x128xf32>
    %532 = math.exp %531 : vector<8x128xf32>
    %cst_157 = arith.constant 1.000000e+00 : f32
    %533 = vector.broadcast %cst_157 : f32 to vector<8x128xf32>
    %534 = arith.addf %533, %532 : vector<8x128xf32>
    %535 = arith.divf %533, %534 : vector<8x128xf32>
    %536 = arith.mulf %527, %508 : vector<8x128xf32>
    %537 = arith.mulf %521, %529 : vector<8x128xf32>
    %538 = arith.addf %536, %537 : vector<8x128xf32>
    %539 = math.tanh %538 : vector<8x128xf32>
    %540 = arith.mulf %535, %539 : vector<8x128xf32>
    %c8_i32_158 = arith.constant 8 : i32
    %c0_159 = arith.constant 0 : index
    %c0_160 = arith.constant 0 : index
    %541 = vector.load %arg10[%c0_159, %c0_160] : memref<8x128xf32, #tpu.memory_space<vmem>>, vector<8x128xf32>
    tpu.vector_store %arg10[%c0_159, %c0_160], %540 {strides = array<i32>} : memref<8x128xf32, #tpu.memory_space<vmem>>, vector<8x128xf32>,
    %c0_161 = arith.constant 0 : index
    %c0_162 = arith.constant 0 : index
    %542 = vector.load %arg11[%c0_161, %c0_162] : memref<8x128xf32, #tpu.memory_space<vmem>>, vector<8x128xf32>
    tpu.vector_store %arg11[%c0_161, %c0_162], %538 {strides = array<i32>} : memref<8x128xf32, #tpu.memory_space<vmem>>, vector<8x128xf32>,
    return
  }
  func.func @transform_0(%arg0: i32) -> (i32, i32, i32) {
    %c0_i32 = arith.constant 0 : i32
    %c0_i32_0 = arith.constant 0 : i32
    %c0_i32_1 = arith.constant 0 : i32
    return %arg0, %c0_i32, %c0_i32_0 : i32, i32, i32
  }
  func.func @transform_1(%arg0: i32) -> (i32, i32) {
    %c0_i32 = arith.constant 0 : i32
    %c0_i32_0 = arith.constant 0 : i32
    %c0_i32_1 = arith.constant 0 : i32
    return %c0_i32, %c0_i32_0 : i32, i32
  }
  func.func @transform_2(%arg0: i32) -> (i32, i32) {
    %c0_i32 = arith.constant 0 : i32
    %c0_i32_0 = arith.constant 0 : i32
    %c0_i32_1 = arith.constant 0 : i32
    return %c0_i32, %c0_i32_0 : i32, i32
  }
  func.func @transform_3(%arg0: i32) -> (i32, i32) {
    %c0_i32 = arith.constant 0 : i32
    %c0_i32_0 = arith.constant 0 : i32
    %c0_i32_1 = arith.constant 0 : i32
    return %c0_i32, %c0_i32_0 : i32, i32
  }
  func.func @transform_4(%arg0: i32) -> (i32, i32) {
    %c0_i32 = arith.constant 0 : i32
    %c0_i32_0 = arith.constant 0 : i32
    %c0_i32_1 = arith.constant 0 : i32
    return %c0_i32, %c0_i32_0 : i32, i32
  }
  func.func @transform_5(%arg0: i32) -> (i32, i32) {
    %c0_i32 = arith.constant 0 : i32
    %c0_i32_0 = arith.constant 0 : i32
    %c0_i32_1 = arith.constant 0 : i32
    return %c0_i32, %c0_i32_0 : i32, i32
  }
  func.func @transform_6(%arg0: i32) -> (i32, i32) {
    %c0_i32 = arith.constant 0 : i32
    %c0_i32_0 = arith.constant 0 : i32
    %c0_i32_1 = arith.constant 0 : i32
    return %c0_i32, %c0_i32_0 : i32, i32
  }
  func.func @transform_7(%arg0: i32) -> (i32, i32) {
    %c0_i32 = arith.constant 0 : i32
    %c0_i32_0 = arith.constant 0 : i32
    %c0_i32_1 = arith.constant 0 : i32
    return %c0_i32, %c0_i32_0 : i32, i32
  }
  func.func @transform_8(%arg0: i32) -> (i32, i32) {
    %c0_i32 = arith.constant 0 : i32
    %c0_i32_0 = arith.constant 0 : i32
    %c0_i32_1 = arith.constant 0 : i32
    return %c0_i32, %c0_i32_0 : i32, i32
  }
  func.func @transform_9(%arg0: i32) -> (i32, i32) {
    %c0_i32 = arith.constant 0 : i32
    %c0_i32_0 = arith.constant 0 : i32
    %c0_i32_1 = arith.constant 0 : i32
    return %c0_i32, %c0_i32_0 : i32, i32
  }
  func.func @transform_10(%arg0: i32) -> (i32, i32) {
    %c0_i32 = arith.constant 0 : i32
    %c0_i32_0 = arith.constant 0 : i32
    %c0_i32_1 = arith.constant 0 : i32
    return %c0_i32, %c0_i32_0 : i32, i32
  }
}

</mosaic_0001>

<bundles_post_ra>
// kernel: tpu_custom_call.1
= control target key start
LH: loop header
LB: loop body
LE: loop exit
PB: predicated region body
PF: predicated region fallthrough
CT: control target
= control target key end

     0   :  { %16 = vsyncpa [#allocation5], 0  ;;  %s6529_s0 = inlined_call_operand.hbm [shape: f32[8,8,128], index: 0, kind: input, shape index: {}]   ;;  %s6530_s1 = inlined_call_operand.hbm [shape: f32[128,512], index: 1, kind: input, shape index: {}]   ;;  %s6531_s2 = inlined_call_operand.hbm [shape: f32[128,512], index: 2, kind: input, shape index: {}]   ;;  %s6532_s3 = inlined_call_operand.vmem [shape: f32[1,512], index: 3, kind: input, shape index: {}]   ;;  %s6533_s4 = inlined_call_operand.hbm [shape: f32[128,512], index: 4, kind: input, shape index: {}]   ;;  %s6534_s5 = inlined_call_operand.hbm [shape: f32[128,512], index: 5, kind: input, shape index: {}]   ;;  %s6535_s6 = inlined_call_operand.vmem [shape: f32[1,512], index: 6, kind: input, shape index: {}]   ;;  %s6536_s7 = inlined_call_operand.hbm [shape: f32[8,128], index: 7, kind: output, shape index: {0}]   ;;  %s6537_s8 = inlined_call_operand.hbm [shape: f32[8,128], index: 8, kind: output, shape index: {1}]   ;;  %s6538_s9 = inlined_call_operand.hbm [shape: f32[8,128], index: 9, kind: output, shape index: {2}]   ;;  %s6539_s10 = inlined_call_operand.hbm [shape: f32[8,128], index: 10, kind: output, shape index: {3}]  }
   0x1   :  { %17 = vsyncpa [#allocation8], 0 }
   0x2   :  { %18 = vsyncpa [#allocation11], 0 }
   0x3   :  { %19 = vsyncpa [#allocation6], 0 }
   0x4   :  { %20 = vsyncpa [#allocation15], 0 }
   0x5   :  { %21 = vsyncpa [#allocation18], 0  ;;  %s4451_s13 = smov [#allocation7]  }
   0x6   :  { %s39_s14 = sshll.u32 %s4451_s13, 4  ;;  %s40_s14 = int_to_ptr.vmem [resolvable:$true] %s39_s14 }
   0x7   :  { %s4267_s15 = scalar_lea.vmem %s40_s14, 8192  ;;  %p4272_p1 = scmp.lt.s32.totalorder %s40_s14, %s40_s14 }
   0x8   :  { %p4268_p0 = scmp.ne.s32.totalorder %s40_s14, %s4267_s15  ;;  %p4273_p2 = scmp.lt.s32.totalorder %s4267_s15, %s4267_s15 }
   0xa   :  { %p4274_p3 = por %p4273_p2, %p4272_p1 }
   0xc   :  { %p4275_p4 = pnand %p4274_p3, %p4268_p0 }
   0xe   :  { %4278 = shalt.err (!%p4275_p4)
}
   0xf   :  { %s4452_s16 = smov 512   ;;  %s4453_s17 = smov 32  }
  0x10   :  { %45 = dma.hbm_to_vmem [thread:$0]  %s6530_s1, 8192, %s40_s14, [#allocation8], %s4452_s16, %s4452_s16, %s4453_s17  }
  0x11   :  { %s4454_s20 = smov [#allocation10]   ;;  %s4455_s22 = smov [#allocation4]  }
  0x12   :  { %s65_s21 = sshll.u32 %s4454_s20, 4  ;;  %s27_s23 = sshll.u32 %s4455_s22, 4  ;;  %s66_s21 = int_to_ptr.vmem [resolvable:$true] %s65_s21  ;;  %s28_s23 = int_to_ptr.vmem [resolvable:$true] %s27_s23 }
  0x13   :  { %s4287_s24 = scalar_lea.vmem %s66_s21, 8192  ;;  %p4292_p6 = scmp.lt.s32.totalorder %s66_s21, %s66_s21 }
  0x14   :  { %p4288_p5 = scmp.ne.s32.totalorder %s66_s21, %s4287_s24  ;;  %p4293_p7 = scmp.lt.s32.totalorder %s4287_s24, %s4287_s24 }
  0x16   :  { %p4294_p8 = por %p4293_p7, %p4292_p6 }
  0x18   :  { %p4295_p9 = pnand %p4294_p8, %p4288_p5 }
  0x1a   :  { %4298 = shalt.err (!%p4295_p9)
}
  0x1b   :  { %71 = dma.hbm_to_vmem [thread:$0]  %s6533_s4, 8192, %s66_s21, [#allocation11], %s4452_s16, %s4452_s16, %s4453_s17  }
  0x1c   :  { %s4307_s1 = scalar_lea.vmem %s28_s23, 1024  ;;  %p4312_p11 = scmp.lt.s32.totalorder %s28_s23, %s28_s23 }
  0x1d   :  { %p4308_p10 = scmp.ne.s32.totalorder %s28_s23, %s4307_s1  ;;  %p4313_p12 = scmp.lt.s32.totalorder %s4307_s1, %s4307_s1 }
  0x1f   :  { %p4314_p13 = por %p4313_p12, %p4312_p11 }
  0x21   :  { %p4315_p0 = pnand %p4314_p13, %p4308_p10 }
  0x23   :  { %4318 = shalt.err (!%p4315_p0)
}
  0x24   :  { %s4456_s27 = smov 128   ;;  %s4457_s28 = smov 8  }
  0x25   :  { %33 = dma.hbm_to_vmem [thread:$0]  %s6529_s0, 1024, %s28_s23, [#allocation5], %s4456_s27, %s4456_s27, %s4457_s28  }
  0x26   :  { %s4458_s11 = smov [#allocation9]   ;;  %s4459_s13 = smov [#allocation12]  }
  0x27   :  { %s51_s12 = sshll.u32 %s4458_s11, 4  ;;  %s77_s14 = sshll.u32 %s4459_s13, 4  ;;  %s52_s12 = int_to_ptr.vmem [resolvable:$true] %s51_s12  ;;  %s78_s14 = int_to_ptr.vmem [resolvable:$true] %s77_s14 }
  0x28   :  { %s4327_s4 = scalar_lea.vmem %s52_s12, 8192  ;;  %p4332_p2 = scmp.lt.s32.totalorder %s52_s12, %s52_s12 }
  0x29   :  { %p4328_p1 = scmp.ne.s32.totalorder %s52_s12, %s4327_s4  ;;  %p4333_p3 = scmp.lt.s32.totalorder %s4327_s4, %s4327_s4 }
  0x2b   :  { %p4334_p4 = por %p4333_p3, %p4332_p2 }
  0x2d   :  { %p4335_p5 = pnand %p4334_p4, %p4328_p1 }
  0x2f   :  { %4338 = shalt.err (!%p4335_p5)
}
  0x30   :  { %57 = dma.hbm_to_vmem [thread:$0]  %s6531_s2, 8192, %s52_s12, [#allocation8], %s4452_s16, %s4452_s16, %s4453_s17  }
  0x31   :  { %s4347_s0 = scalar_lea.vmem %s78_s14, 8192  ;;  %p4352_p7 = scmp.lt.s32.totalorder %s78_s14, %s78_s14 }
  0x32   :  { %p4348_p6 = scmp.ne.s32.totalorder %s78_s14, %s4347_s0  ;;  %p4353_p8 = scmp.lt.s32.totalorder %s4347_s0, %s4347_s0 }
  0x34   :  { %p4354_p9 = por %p4353_p8, %p4352_p7 }
  0x36   :  { %p4355_p10 = pnand %p4354_p9, %p4348_p6 }
  0x38   :  { %4358 = shalt.err (!%p4355_p10)
}
  0x39   :  { %83 = dma.hbm_to_vmem [thread:$0]  %s6534_s5, 8192, %s78_s14, [#allocation11], %s4452_s16, %s4452_s16, %s4453_s17  }
  0x3a   :  { %4439 = dma.done.wait [#allocation5], 1024  }
  0x3b   :  { %4440 = vsyncadd [#allocation5], 4294966272 }
  0x3c   :  { %4441 = dma.done.wait [#allocation8], 16384  }
  0x3d   :  { %4442 = vsyncadd [#allocation8], 4294950912 }
  0x3e   :  { %4443 = dma.done.wait [#allocation11], 16384  }
  0x3f   :  { %4444 = vsyncadd [#allocation11], 4294950912  ;;  %v6540_v0 = vmov 0.0   ;;  %v178_v1 = vld [vmem:[#allocation7 + $0x1e8] sm:$0xff]  ;;  %v180_v2 = vld [vmem:[#allocation7 + $0x1f8] sm:$0xff]  ;;  %s4462_s21 = smov [#allocation13]  }
  0x40   :  { %267 = vmatprep.mubr.f32.mxu0 %v6540_v0  ;;  %380 = vmatprep.mubr.f32.mxu1 %v6540_v0  ;;  %v177_v3 = vld [vmem:[#allocation7 + $0x1e0] sm:$0xff]  ;;  %v179_v4 = vld [vmem:[#allocation7 + $0x1f0] sm:$0xff]  ;;  %v174_v5 = vld [vmem:[#allocation7 + $0x1c8] sm:$0xff]  ;;  %s3761_s22 = sshll.u32 %s4462_s21, 4  ;;  %s3762_s22 = int_to_ptr.vmem [resolvable:$true] %s3761_s22 }
  0x41   :  { %203 = vmatprep.subr.mxu0 %v178_v1  ;;  %316 = vmatprep.subr.mxu1 %v180_v2  ;;  %v176_v6 = vld [vmem:[#allocation7 + $0x1d8] sm:$0xff]  ;;  %v173_v7 = vld [vmem:[#allocation7 + $0x1c0] sm:$0xff]  ;;  %v175_v8 = vld [vmem:[#allocation7 + $0x1d0] sm:$0xff] }
  0x42   :  { %204 = vmatpush1.msra.mxu0 %v177_v3  ;;  %317 = vmatpush1.msra.mxu1 %v179_v4  ;;  %v170_v9 = vld [vmem:[#allocation7 + $0x1a8] sm:$0xff]  ;;  %v172_v10 = vld [vmem:[#allocation7 + $0x1b8] sm:$0xff]  ;;  %v169_v11 = vld [vmem:[#allocation7 + $0x1a0] sm:$0xff] }
  0x43   :  { %205 = vmatprep.subr.mxu0 %v174_v5  ;;  %318 = vmatprep.subr.mxu1 %v176_v6  ;;  %v171_v12 = vld [vmem:[#allocation7 + $0x1b0] sm:$0xff]  ;;  %v166_v13 = vld [vmem:[#allocation7 + $0x188] sm:$0xff]  ;;  %v168_v14 = vld [vmem:[#allocation7 + $0x198] sm:$0xff] }
  0x44   :  { %206 = vmatpush1.msra.mxu0 %v173_v7  ;;  %319 = vmatpush1.msra.mxu1 %v175_v8  ;;  %v165_v15 = vld [vmem:[#allocation7 + $0x180] sm:$0xff]  ;;  %v167_v16 = vld [vmem:[#allocation7 + $0x190] sm:$0xff]  ;;  %v162_v17 = vld [vmem:[#allocation7 + $0x168] sm:$0xff] }
  0x45   :  { %207 = vmatprep.subr.mxu0 %v170_v9  ;;  %320 = vmatprep.subr.mxu1 %v172_v10  ;;  %v164_v18 = vld [vmem:[#allocation7 + $0x178] sm:$0xff]  ;;  %v161_v19 = vld [vmem:[#allocation7 + $0x160] sm:$0xff]  ;;  %v163_v20 = vld [vmem:[#allocation7 + $0x170] sm:$0xff] }
  0x46   :  { %208 = vmatpush1.msra.mxu0 %v169_v11  ;;  %321 = vmatpush1.msra.mxu1 %v171_v12  ;;  %v158_v21 = vld [vmem:[#allocation7 + $0x148] sm:$0xff]  ;;  %v160_v22 = vld [vmem:[#allocation7 + $0x158] sm:$0xff]  ;;  %v157_v23 = vld [vmem:[#allocation7 + $0x140] sm:$0xff] }
  0x47   :  { %209 = vmatprep.subr.mxu0 %v166_v13  ;;  %322 = vmatprep.subr.mxu1 %v168_v14  ;;  %v159_v24 = vld [vmem:[#allocation7 + $0x150] sm:$0xff]  ;;  %v154_v25 = vld [vmem:[#allocation7 + $0x128] sm:$0xff]  ;;  %v156_v26 = vld [vmem:[#allocation7 + $0x138] sm:$0xff] }
  0x48   :  { %210 = vmatpush1.msra.mxu0 %v165_v15  ;;  %323 = vmatpush1.msra.mxu1 %v167_v16  ;;  %v153_v27 = vld [vmem:[#allocation7 + $0x120] sm:$0xff]  ;;  %v155_v28 = vld [vmem:[#allocation7 + $0x130] sm:$0xff]  ;;  %v150_v29 = vld [vmem:[#allocation7 + $0x108] sm:$0xff] }
  0x49   :  { %211 = vmatprep.subr.mxu0 %v162_v17  ;;  %324 = vmatprep.subr.mxu1 %v164_v18  ;;  %v152_v30 = vld [vmem:[#allocation7 + $0x118] sm:$0xff]  ;;  %v149_v31 = vld [vmem:[#allocation7 + $0x100] sm:$0xff]  ;;  %v151_v32 = vld [vmem:[#allocation7 + $0x110] sm:$0xff] }
  0x4a   :  { %212 = vmatpush1.msra.mxu0 %v161_v19  ;;  %325 = vmatpush1.msra.mxu1 %v163_v20  ;;  %v146_v33 = vld [vmem:[#allocation7 + $0xe8] sm:$0xff]  ;;  %v148_v34 = vld [vmem:[#allocation7 + $0xf8] sm:$0xff]  ;;  %v145_v35 = vld [vmem:[#allocation7 + $0xe0] sm:$0xff] }
  0x4b   :  { %213 = vmatprep.subr.mxu0 %v158_v21  ;;  %326 = vmatprep.subr.mxu1 %v160_v22  ;;  %v147_v36 = vld [vmem:[#allocation7 + $0xf0] sm:$0xff]  ;;  %v142_v37 = vld [vmem:[#allocation7 + $0xc8] sm:$0xff]  ;;  %v144_v38 = vld [vmem:[#allocation7 + $0xd8] sm:$0xff] }
  0x4c   :  { %214 = vmatpush1.msra.mxu0 %v157_v23  ;;  %327 = vmatpush1.msra.mxu1 %v159_v24  ;;  %v141_v39 = vld [vmem:[#allocation7 + $0xc0] sm:$0xff]  ;;  %v143_v40 = vld [vmem:[#allocation7 + $0xd0] sm:$0xff]  ;;  %v138_v41 = vld [vmem:[#allocation7 + $0xa8] sm:$0xff] }
  0x4d   :  { %215 = vmatprep.subr.mxu0 %v154_v25  ;;  %328 = vmatprep.subr.mxu1 %v156_v26  ;;  %v140_v42 = vld [vmem:[#allocation7 + $0xb8] sm:$0xff]  ;;  %v137_v43 = vld [vmem:[#allocation7 + $0xa0] sm:$0xff]  ;;  %v139_v44 = vld [vmem:[#allocation7 + $0xb0] sm:$0xff] }
  0x4e   :  { %216 = vmatpush1.msra.mxu0 %v153_v27  ;;  %329 = vmatpush1.msra.mxu1 %v155_v28  ;;  %v134_v45 = vld [vmem:[#allocation7 + $0x88] sm:$0xff]  ;;  %v136_v46 = vld [vmem:[#allocation7 + $0x98] sm:$0xff]  ;;  %v133_v47 = vld [vmem:[#allocation7 + $0x80] sm:$0xff] }
  0x4f   :  { %217 = vmatprep.subr.mxu0 %v150_v29  ;;  %330 = vmatprep.subr.mxu1 %v152_v30  ;;  %v135_v48 = vld [vmem:[#allocation7 + $0x90] sm:$0xff]  ;;  %v130_v49 = vld [vmem:[#allocation7 + $0x68] sm:$0xff]  ;;  %v132_v50 = vld [vmem:[#allocation7 + $0x78] sm:$0xff] }
  0x50   :  { %218 = vmatpush1.msra.mxu0 %v149_v31  ;;  %331 = vmatpush1.msra.mxu1 %v151_v32  ;;  %v129_v51 = vld [vmem:[#allocation7 + $0x60] sm:$0xff]  ;;  %v131_v52 = vld [vmem:[#allocation7 + $0x70] sm:$0xff]  ;;  %v126_v53 = vld [vmem:[#allocation7 + $0x48] sm:$0xff] }
  0x51   :  { %219 = vmatprep.subr.mxu0 %v146_v33  ;;  %332 = vmatprep.subr.mxu1 %v148_v34  ;;  %v128_v54 = vld [vmem:[#allocation7 + $0x58] sm:$0xff]  ;;  %v125_v55 = vld [vmem:[#allocation7 + $0x40] sm:$0xff]  ;;  %v127_v56 = vld [vmem:[#allocation7 + $0x50] sm:$0xff] }
  0x52   :  { %220 = vmatpush1.msra.mxu0 %v145_v35  ;;  %333 = vmatpush1.msra.mxu1 %v147_v36  ;;  %v122_v57 = vld [vmem:[#allocation7 + $0x28] sm:$0xff]  ;;  %v124_v58 = vld [vmem:[#allocation7 + $0x38] sm:$0xff]  ;;  %v121_v59 = vld [vmem:[#allocation7 + $0x20] sm:$0xff] }
  0x53   :  { %221 = vmatprep.subr.mxu0 %v142_v37  ;;  %334 = vmatprep.subr.mxu1 %v144_v38  ;;  %v123_v60 = vld [vmem:[#allocation7 + $0x30] sm:$0xff]  ;;  %v118_v61 = vld [vmem:[#allocation7 + $0x8] sm:$0xff]  ;;  %v120_v62 = vld [vmem:[#allocation7 + $0x18] sm:$0xff] }
  0x54   :  { %222 = vmatpush1.msra.mxu0 %v141_v39  ;;  %335 = vmatpush1.msra.mxu1 %v143_v40  ;;  %v117_v63 = vld [vmem:[#allocation7] sm:$0xff]  ;;  %v119_v1 = vld [vmem:[#allocation7 + $0x10] sm:$0xff]  ;;  %v4549_v3 = vld [vmem:[#allocation9 + $0x1e8] sm:$0xff] }
  0x55   :  { %223 = vmatprep.subr.mxu0 %v138_v41  ;;  %336 = vmatprep.subr.mxu1 %v140_v42  ;;  %v109_v2 = vld [vmem:[#allocation4] sm:$0xff]  ;;  %6746 = vst [vmem:[#allocation25_spill] sm:$0xff] %v4549_v3  ;;  %v4551_v4 = vld [vmem:[#allocation9 + $0x1f8] sm:$0xff]  ;;  %v4555_v6 = vld [vmem:[#allocation9 + $0x1f0] sm:$0xff] }
  0x56   :  { %224 = vmatpush1.msra.mxu0 %v137_v43  ;;  %337 = vmatpush1.msra.mxu1 %v139_v44  ;;  %6747 = vst [vmem:[#allocation26_spill] sm:$0xff] %v4551_v4  ;;  %v4553_v5 = vld [vmem:[#allocation9 + $0x1e0] sm:$0xff]  ;;  %v4557_v7 = vld [vmem:[#allocation9 + $0x1c8] sm:$0xff]  ;;  %v4559_v8 = vld [vmem:[#allocation9 + $0x1d8] sm:$0xff] }
  0x57   :  { %225 = vmatprep.subr.mxu0 %v134_v45  ;;  %338 = vmatprep.subr.mxu1 %v136_v46  ;;  %v4565_v9 = vld [vmem:[#allocation9 + $0x1c0] sm:$0xff]  ;;  %v4567_v10 = vld [vmem:[#allocation9 + $0x1d0] sm:$0xff]  ;;  %v110_v11 = vld [vmem:[#allocation4 + $0x8] sm:$0xff] }
  0x58   :  { %226 = vmatpush1.msra.mxu0 %v133_v47  ;;  %339 = vmatpush1.msra.mxu1 %v135_v48  ;;  %v4573_v12 = vld [vmem:[#allocation9 + $0x1a8] sm:$0xff]  ;;  %v4575_v13 = vld [vmem:[#allocation9 + $0x1b8] sm:$0xff]  ;;  %v4579_v14 = vld [vmem:[#allocation9 + $0x1a0] sm:$0xff] }
  0x59   :  { %227 = vmatprep.subr.mxu0 %v130_v49  ;;  %340 = vmatprep.subr.mxu1 %v132_v50  ;;  %v4581_v15 = vld [vmem:[#allocation9 + $0x1b0] sm:$0xff]  ;;  %v4583_v16 = vld [vmem:[#allocation9 + $0x188] sm:$0xff]  ;;  %v4585_v17 = vld [vmem:[#allocation9 + $0x198] sm:$0xff] }
  0x5a   :  { %228 = vmatpush1.msra.mxu0 %v129_v51  ;;  %341 = vmatpush1.msra.mxu1 %v131_v52  ;;  %v4591_v18 = vld [vmem:[#allocation9 + $0x180] sm:$0xff]  ;;  %v4593_v19 = vld [vmem:[#allocation9 + $0x190] sm:$0xff]  ;;  %v4599_v21 = vld [vmem:[#allocation9 + $0x168] sm:$0xff] }
  0x5b   :  { %229 = vmatprep.subr.mxu0 %v126_v53  ;;  %342 = vmatprep.subr.mxu1 %v128_v54  ;;  %v111_v20 = vld [vmem:[#allocation4 + $0x10] sm:$0xff]  ;;  %v4601_v22 = vld [vmem:[#allocation9 + $0x178] sm:$0xff]  ;;  %v4605_v23 = vld [vmem:[#allocation9 + $0x160] sm:$0xff] }
  0x5c   :  { %230 = vmatpush1.msra.mxu0 %v125_v55  ;;  %343 = vmatpush1.msra.mxu1 %v127_v56  ;;  %v4607_v24 = vld [vmem:[#allocation9 + $0x170] sm:$0xff]  ;;  %v4609_v25 = vld [vmem:[#allocation9 + $0x148] sm:$0xff]  ;;  %v4611_v26 = vld [vmem:[#allocation9 + $0x158] sm:$0xff] }
  0x5d   :  { %231 = vmatprep.subr.mxu0 %v122_v57  ;;  %344 = vmatprep.subr.mxu1 %v124_v58  ;;  %v4617_v27 = vld [vmem:[#allocation9 + $0x140] sm:$0xff]  ;;  %v4619_v28 = vld [vmem:[#allocation9 + $0x150] sm:$0xff]  ;;  %v112_v29 = vld [vmem:[#allocation4 + $0x18] sm:$0xff] }
  0x5e   :  { %232 = vmatpush1.msra.mxu0 %v121_v59  ;;  %345 = vmatpush1.msra.mxu1 %v123_v60  ;;  %v4625_v30 = vld [vmem:[#allocation9 + $0x128] sm:$0xff]  ;;  %v4627_v31 = vld [vmem:[#allocation9 + $0x138] sm:$0xff]  ;;  %v4631_v32 = vld [vmem:[#allocation9 + $0x120] sm:$0xff] }
  0x5f   :  { %233 = vmatprep.subr.mxu0 %v118_v61  ;;  %346 = vmatprep.subr.mxu1 %v120_v62  ;;  %v4633_v33 = vld [vmem:[#allocation9 + $0x130] sm:$0xff]  ;;  %v4635_v34 = vld [vmem:[#allocation9 + $0x108] sm:$0xff]  ;;  %v4637_v35 = vld [vmem:[#allocation9 + $0x118] sm:$0xff] }
  0x60   :  { %234 = vmatpush1.msra.mxu0 %v117_v63  ;;  %347 = vmatpush1.msra.mxu1 %v119_v1  ;;  %v4643_v36 = vld [vmem:[#allocation9 + $0x100] sm:$0xff]  ;;  %v4645_v37 = vld [vmem:[#allocation9 + $0x110] sm:$0xff]  ;;  %v4651_v39 = vld [vmem:[#allocation9 + $0xe8] sm:$0xff] }
  0x61   :  { %268 = vmatmul.mubr.f32.vlgmr.msra.gmra.mxu0 %v109_v2  ;;  %381 = vmatmul.mubr.f32.vlgmr.msra.gmra.mxu1 %v109_v2  ;;  %v113_v38 = vld [vmem:[#allocation4 + $0x20] sm:$0xff]  ;;  %v4653_v40 = vld [vmem:[#allocation9 + $0xf8] sm:$0xff]  ;;  %v4659_v42 = vld [vmem:[#allocation9 + $0xf0] sm:$0xff] }
  0x62   :  { %531 = vmatprep.subr.mxu0 %v4549_v3  ;;  %602 = vmatprep.subr.mxu1 %v4551_v4  ;;  %v4657_v41 = vld [vmem:[#allocation9 + $0xe0] sm:$0xff]  ;;  %v4661_v43 = vld [vmem:[#allocation9 + $0xc8] sm:$0xff]  ;;  %v4663_v44 = vld [vmem:[#allocation9 + $0xd8] sm:$0xff] }
  0x63   :  { %532 = vmatpush1.msra.mxu0 %v4553_v5  ;;  %603 = vmatpush1.msra.mxu1 %v4555_v6  ;;  %v4669_v45 = vld [vmem:[#allocation9 + $0xc0] sm:$0xff]  ;;  %v4671_v46 = vld [vmem:[#allocation9 + $0xd0] sm:$0xff]  ;;  %v114_v47 = vld [vmem:[#allocation4 + $0x28] sm:$0xff] }
  0x64   :  { %533 = vmatprep.subr.mxu0 %v4557_v7  ;;  %604 = vmatprep.subr.mxu1 %v4559_v8  ;;  %v4677_v48 = vld [vmem:[#allocation9 + $0xa8] sm:$0xff]  ;;  %v4679_v49 = vld [vmem:[#allocation9 + $0xb8] sm:$0xff]  ;;  %v4683_v50 = vld [vmem:[#allocation9 + $0xa0] sm:$0xff] }
  0x65   :  { %273 = vmatprep.mubr.f32.mxu0 %v6540_v0  ;;  %386 = vmatprep.mubr.f32.mxu1 %v6540_v0  ;;  %v4685_v51 = vld [vmem:[#allocation9 + $0xb0] sm:$0xff]  ;;  %v4687_v52 = vld [vmem:[#allocation9 + $0x88] sm:$0xff]  ;;  %v4689_v53 = vld [vmem:[#allocation9 + $0x98] sm:$0xff] }
  0x66   :  { %534 = vmatpush1.msra.mxu0 %v4565_v9  ;;  %605 = vmatpush1.msra.mxu1 %v4567_v10  ;;  %6748 = vst [vmem:[#allocation27_spill] sm:$0xff] %v4685_v51  ;;  %6749 = vst [vmem:[#allocation28_spill] sm:$0xff] %v4687_v52  ;;  %v4695_v54 = vld [vmem:[#allocation9 + $0x80] sm:$0xff]  ;;  %v4697_v55 = vld [vmem:[#allocation9 + $0x90] sm:$0xff] }
  0x67   :  { %274 = vmatmul.mubr.f32.gmra.mxu0 %v110_v11  ;;  %387 = vmatmul.mubr.f32.gmra.mxu1 %v110_v11  ;;  %6750 = vst [vmem:[#allocation29_spill] sm:$0xff] %v4689_v53  ;;  %6751 = vst [vmem:[#allocation30_spill] sm:$0xff] %v4695_v54  ;;  %v115_v56 = vld [vmem:[#allocation4 + $0x30] sm:$0xff]  ;;  %v4703_v57 = vld [vmem:[#allocation9 + $0x68] sm:$0xff] }
  0x68   :  { %535 = vmatprep.subr.mxu0 %v4573_v12  ;;  %606 = vmatprep.subr.mxu1 %v4575_v13  ;;  %6752 = vst [vmem:[#allocation31_spill] sm:$0xff] %v4697_v55  ;;  %6753 = vst [vmem:[#allocation32_spill] sm:$0xff] %v4703_v57  ;;  %v4705_v58 = vld [vmem:[#allocation9 + $0x78] sm:$0xff]  ;;  %v4709_v59 = vld [vmem:[#allocation9 + $0x60] sm:$0xff] }
  0x69   :  { %536 = vmatpush1.msra.mxu0 %v4579_v14  ;;  %607 = vmatpush1.msra.mxu1 %v4581_v15  ;;  %6754 = vst [vmem:[#allocation33_spill] sm:$0xff] %v4705_v58  ;;  %6755 = vst [vmem:[#allocation34_spill] sm:$0xff] %v4709_v59  ;;  %v4711_v60 = vld [vmem:[#allocation9 + $0x70] sm:$0xff]  ;;  %v4713_v61 = vld [vmem:[#allocation9 + $0x48] sm:$0xff] }
  0x6a   :  { %537 = vmatprep.subr.mxu0 %v4583_v16  ;;  %608 = vmatprep.subr.mxu1 %v4585_v17  ;;  %6756 = vst [vmem:[#allocation35_spill] sm:$0xff] %v4711_v60  ;;  %6757 = vst [vmem:[#allocation36_spill] sm:$0xff] %v4713_v61  ;;  %v4715_v62 = vld [vmem:[#allocation9 + $0x58] sm:$0xff]  ;;  %v4721_v63 = vld [vmem:[#allocation9 + $0x40] sm:$0xff] }
  0x6b   :  { %279 = vmatprep.mubr.f32.mxu0 %v6540_v0  ;;  %392 = vmatprep.mubr.f32.mxu1 %v6540_v0  ;;  %6758 = vst [vmem:[#allocation37_spill] sm:$0xff] %v4715_v62  ;;  %6759 = vst [vmem:[#allocation38_spill] sm:$0xff] %v4721_v63  ;;  %v4723_v1 = vld [vmem:[#allocation9 + $0x50] sm:$0xff]  ;;  %v116_v2 = vld [vmem:[#allocation4 + $0x38] sm:$0xff] }
  0x6c   :  { %538 = vmatpush1.msra.mxu0 %v4591_v18  ;;  %609 = vmatpush1.msra.mxu1 %v4593_v19  ;;  %6760 = vst [vmem:[#allocation39_spill] sm:$0xff] %v4723_v1  ;;  %v4729_v11 = vld [vmem:[#allocation9 + $0x28] sm:$0xff] }
  0x6d   :  { %280 = vmatmul.mubr.f32.gmra.mxu0 %v111_v20  ;;  %393 = vmatmul.mubr.f32.gmra.mxu1 %v111_v20  ;;  %6761 = vst [vmem:[#allocation40_spill] sm:$0xff] %v4729_v11  ;;  %v4731_v20 = vld [vmem:[#allocation9 + $0x38] sm:$0xff] }
  0x6e   :  { %539 = vmatprep.subr.mxu0 %v4599_v21  ;;  %610 = vmatprep.subr.mxu1 %v4601_v22  ;;  %6762 = vst [vmem:[#allocation41_spill] sm:$0xff] %v4731_v20 }
  0x6f   :  { %540 = vmatpush1.msra.mxu0 %v4605_v23  ;;  %611 = vmatpush1.msra.mxu1 %v4607_v24 }
  0x70   :  { %541 = vmatprep.subr.mxu0 %v4609_v25  ;;  %612 = vmatprep.subr.mxu1 %v4611_v26 }
  0x71   :  { %285 = vmatprep.mubr.f32.mxu0 %v6540_v0  ;;  %398 = vmatprep.mubr.f32.mxu1 %v6540_v0 }
  0x72   :  { %542 = vmatpush1.msra.mxu0 %v4617_v27  ;;  %613 = vmatpush1.msra.mxu1 %v4619_v28 }
  0x73   :  { %286 = vmatmul.mubr.f32.gmra.mxu0 %v112_v29  ;;  %399 = vmatmul.mubr.f32.gmra.mxu1 %v112_v29  ;;  %v4735_v29 = vld [vmem:[#allocation9 + $0x20] sm:$0xff] }
  0x74   :  { %543 = vmatprep.subr.mxu0 %v4625_v30  ;;  %614 = vmatprep.subr.mxu1 %v4627_v31  ;;  %6763 = vst [vmem:[#allocation42_spill] sm:$0xff] %v4735_v29 }
  0x75   :  { %544 = vmatpush1.msra.mxu0 %v4631_v32  ;;  %615 = vmatpush1.msra.mxu1 %v4633_v33 }
  0x76   :  { %545 = vmatprep.subr.mxu0 %v4635_v34  ;;  %616 = vmatprep.subr.mxu1 %v4637_v35 }
  0x77   :  { %291 = vmatprep.mubr.f32.mxu0 %v6540_v0  ;;  %404 = vmatprep.mubr.f32.mxu1 %v6540_v0 }
  0x78   :  { %546 = vmatpush1.msra.mxu0 %v4643_v36  ;;  %617 = vmatpush1.msra.mxu1 %v4645_v37 }
  0x79   :  { %292 = vmatmul.mubr.f32.gmra.mxu0 %v113_v38  ;;  %405 = vmatmul.mubr.f32.gmra.mxu1 %v113_v38  ;;  %v4737_v38 = vld [vmem:[#allocation9 + $0x30] sm:$0xff] }
  0x7a   :  { %547 = vmatprep.subr.mxu0 %v4651_v39  ;;  %618 = vmatprep.subr.mxu1 %v4653_v40  ;;  %6764 = vst [vmem:[#allocation43_spill] sm:$0xff] %v4737_v38 }
  0x7b   :  { %548 = vmatpush1.msra.mxu0 %v4657_v41  ;;  %619 = vmatpush1.msra.mxu1 %v4659_v42 }
  0x7c   :  { %549 = vmatprep.subr.mxu0 %v4661_v43  ;;  %620 = vmatprep.subr.mxu1 %v4663_v44 }
  0x7d   :  { %297 = vmatprep.mubr.f32.mxu0 %v6540_v0  ;;  %410 = vmatprep.mubr.f32.mxu1 %v6540_v0 }
  0x7e   :  { %550 = vmatpush1.msra.mxu0 %v4669_v45  ;;  %621 = vmatpush1.msra.mxu1 %v4671_v46 }
  0x7f   :  { %298 = vmatmul.mubr.f32.gmra.mxu0 %v114_v47  ;;  %411 = vmatmul.mubr.f32.gmra.mxu1 %v114_v47  ;;  %v4739_v47 = vld [vmem:[#allocation9 + $0x8] sm:$0xff] }
  0x80   :  { %551 = vmatprep.subr.mxu0 %v4677_v48  ;;  %622 = vmatprep.subr.mxu1 %v4679_v49  ;;  %6765 = vst [vmem:[#allocation44_spill] sm:$0xff] %v4739_v47 }
  0x81   :  { %552 = vmatpush1.msra.mxu0 %v4683_v50  ;;  %623 = vmatpush1.msra.mxu1 %v4685_v51 }
  0x82   :  { %553 = vmatprep.subr.mxu0 %v4687_v52  ;;  %624 = vmatprep.subr.mxu1 %v4689_v53 }
  0x83   :  { %303 = vmatprep.mubr.f32.mxu0 %v6540_v0  ;;  %416 = vmatprep.mubr.f32.mxu1 %v6540_v0 }
  0x84   :  { %554 = vmatpush1.msra.mxu0 %v4695_v54  ;;  %625 = vmatpush1.msra.mxu1 %v4697_v55 }
  0x85   :  { %304 = vmatmul.mubr.f32.gmra.mxu0 %v115_v56  ;;  %417 = vmatmul.mubr.f32.gmra.mxu1 %v115_v56  ;;  %v4741_v56 = vld [vmem:[#allocation9 + $0x18] sm:$0xff] }
  0x86   :  { %555 = vmatprep.subr.mxu0 %v4703_v57  ;;  %626 = vmatprep.subr.mxu1 %v4705_v58  ;;  %6766 = vst [vmem:[#allocation45_spill] sm:$0xff] %v4741_v56 }
  0x87   :  { %556 = vmatpush1.msra.mxu0 %v4709_v59  ;;  %627 = vmatpush1.msra.mxu1 %v4711_v60 }
  0x88   :  { %557 = vmatprep.subr.mxu0 %v4713_v61  ;;  %628 = vmatprep.subr.mxu1 %v4715_v62 }
  0x89   :  { %309 = vmatprep.mubr.f32.mxu0 %v6540_v0  ;;  %422 = vmatprep.mubr.f32.mxu1 %v6540_v0  ;;  %v4745_v0 = vld [vmem:[#allocation9] sm:$0xff] }
  0x8a   :  { %558 = vmatpush1.msra.mxu0 %v4721_v63  ;;  %629 = vmatpush1.msra.mxu1 %v4723_v1  ;;  %6767 = vst [vmem:[#allocation46_spill] sm:$0xff] %v4745_v0  ;;  %v4749_v1 = vld [vmem:[#allocation9 + $0x10] sm:$0xff] }
  0x8b   :  { %310 = vmatmul.mubr.f32.gmra.mxu0 %v116_v2  ;;  %423 = vmatmul.mubr.f32.gmra.mxu1 %v116_v2  ;;  %6768 = vst [vmem:[#allocation47_spill] sm:$0xff] %v4749_v1  ;;  %v6769_v2 = vmov 0.0  }
  0x8c   :  { %559 = vmatprep.subr.mxu0 %v4729_v11  ;;  %630 = vmatprep.subr.mxu1 %v4731_v20 }
  0x8d   :  { %560 = vmatpush1.msra.mxu0 %v4735_v29  ;;  %631 = vmatpush1.msra.mxu1 %v4737_v38 }
  0x8e   :  { %561 = vmatprep.subr.mxu0 %v4739_v47  ;;  %632 = vmatprep.subr.mxu1 %v4741_v56 }
  0x8f   :  { %562 = vmatpush1.msra.mxu0 %v4745_v0  ;;  %595 = vmatprep.mubr.f32.mxu0 %v6769_v2 }
  0x90   :  { %633 = vmatpush1.msra.mxu1 %v4749_v1  ;;  %666 = vmatprep.mubr.f32.mxu1 %v6769_v2 }
  0x91   :  { %596 = vmatmul.mubr.f32.vlgmr.msra.gmra.mxu0 %v6769_v2  ;;  %667 = vmatmul.mubr.f32.vlgmr.msra.gmra.mxu1 %v6769_v2 }
  0x92   :  { %707 = vmatprep.subr.mxu0 %v4549_v3  ;;  %778 = vmatprep.subr.mxu1 %v4551_v4 }
  0x93   :  { %708 = vmatpush1.msra.mxu0 %v4553_v5  ;;  %779 = vmatpush1.msra.mxu1 %v4555_v6 }
  0x94   :  { %709 = vmatprep.subr.mxu0 %v4557_v7  ;;  %780 = vmatprep.subr.mxu1 %v4559_v8 }
  0x95   :  { %710 = vmatpush1.msra.mxu0 %v4565_v9  ;;  %781 = vmatpush1.msra.mxu1 %v4567_v10 }
  0x96   :  { %711 = vmatprep.subr.mxu0 %v4573_v12  ;;  %782 = vmatprep.subr.mxu1 %v4575_v13 }
  0x97   :  { %712 = vmatpush1.msra.mxu0 %v4579_v14  ;;  %783 = vmatpush1.msra.mxu1 %v4581_v15 }
  0x98   :  { %713 = vmatprep.subr.mxu0 %v4583_v16  ;;  %784 = vmatprep.subr.mxu1 %v4585_v17 }
  0x99   :  { %714 = vmatpush1.msra.mxu0 %v4591_v18  ;;  %785 = vmatpush1.msra.mxu1 %v4593_v19 }
  0x9a   :  { %715 = vmatprep.subr.mxu0 %v4599_v21  ;;  %786 = vmatprep.subr.mxu1 %v4601_v22 }
  0x9b   :  { %716 = vmatpush1.msra.mxu0 %v4605_v23  ;;  %787 = vmatpush1.msra.mxu1 %v4607_v24 }
  0x9c   :  { %717 = vmatprep.subr.mxu0 %v4609_v25  ;;  %788 = vmatprep.subr.mxu1 %v4611_v26 }
  0x9d   :  { %718 = vmatpush1.msra.mxu0 %v4617_v27  ;;  %789 = vmatpush1.msra.mxu1 %v4619_v28 }
  0x9e   :  { %719 = vmatprep.subr.mxu0 %v4625_v30  ;;  %790 = vmatprep.subr.mxu1 %v4627_v31 }
  0x9f   :  { %720 = vmatpush1.msra.mxu0 %v4631_v32  ;;  %791 = vmatpush1.msra.mxu1 %v4633_v33 }
  0xa0   :  { %721 = vmatprep.subr.mxu0 %v4635_v34  ;;  %792 = vmatprep.subr.mxu1 %v4637_v35 }
  0xa1   :  { %722 = vmatpush1.msra.mxu0 %v4643_v36  ;;  %793 = vmatpush1.msra.mxu1 %v4645_v37 }
  0xa2   :  { %723 = vmatprep.subr.mxu0 %v4651_v39  ;;  %794 = vmatprep.subr.mxu1 %v4653_v40 }
  0xa3   :  { %724 = vmatpush1.msra.mxu0 %v4657_v41  ;;  %795 = vmatpush1.msra.mxu1 %v4659_v42 }
  0xa4   :  { %725 = vmatprep.subr.mxu0 %v4661_v43  ;;  %796 = vmatprep.subr.mxu1 %v4663_v44 }
  0xa5   :  { %726 = vmatpush1.msra.mxu0 %v4669_v45  ;;  %797 = vmatpush1.msra.mxu1 %v4671_v46 }
  0xa6   :  { %727 = vmatprep.subr.mxu0 %v4677_v48  ;;  %798 = vmatprep.subr.mxu1 %v4679_v49 }
  0xa7   :  { %728 = vmatpush1.msra.mxu0 %v4683_v50  ;;  %799 = vmatpush1.msra.mxu1 %v4685_v51 }
  0xa8   :  { %729 = vmatprep.subr.mxu0 %v4687_v52  ;;  %800 = vmatprep.subr.mxu1 %v4689_v53  ;;  %v6770_v52 = vld [vmem:[#allocation39_spill] sm:$0xff] }
  0xa9   :  { %730 = vmatpush1.msra.mxu0 %v4695_v54  ;;  %801 = vmatpush1.msra.mxu1 %v4697_v55 }
  0xaa   :  { %731 = vmatprep.subr.mxu0 %v4703_v57  ;;  %802 = vmatprep.subr.mxu1 %v4705_v58 }
  0xab   :  { %732 = vmatpush1.msra.mxu0 %v4709_v59  ;;  %803 = vmatpush1.msra.mxu1 %v4711_v60 }
  0xac   :  { %733 = vmatprep.subr.mxu0 %v4713_v61  ;;  %804 = vmatprep.subr.mxu1 %v4715_v62 }
  0xad   :  { %734 = vmatpush1.msra.mxu0 %v4721_v63  ;;  %805 = vmatpush1.msra.mxu1 %v6770_v52 }
  0xae   :  { %735 = vmatprep.subr.mxu0 %v4729_v11  ;;  %806 = vmatprep.subr.mxu1 %v4731_v20  ;;  %v183_v20 = vlaneseq }
  0xaf   :  { %736 = vmatpush1.msra.mxu0 %v4735_v29  ;;  %807 = vmatpush1.msra.mxu1 %v4737_v38 }
  0xb0   :  { %737 = vmatprep.subr.mxu0 %v4739_v47  ;;  %808 = vmatprep.subr.mxu1 %v4741_v56  ;;  %v4827_v29 = vshrl.u32 %v183_v20, 7 }
  0xb1   :  { %738 = vmatpush1.msra.mxu0 %v4745_v0  ;;  %771 = vmatprep.mubr.f32.mxu0 %v6769_v2 }
  0xb2   :  { %809 = vmatpush1.msra.mxu1 %v4749_v1  ;;  %842 = vmatprep.mubr.f32.mxu1 %v6769_v2  ;;  %6771 = vst [vmem:[#allocation48_spill] sm:$0xff] %v4827_v29  ;;  %v6579_v56 = vsub.s32 0, %v4827_v29  ;;  %v6582_v0 = vsub.s32 2, %v4827_v29  ;;  %v181_v1 = vld [vmem:[%s6532_s3] sm:$0xf]  ;;  %v6590_v20 = vsub.s32 3, %v4827_v29 }
  0xb3   :  { %884 = vmatprep.subr.mxu0 %v4549_v3  ;;  %955 = vmatprep.subr.mxu1 %v4551_v4  ;;  %v6589_v4 = vsub.s32 1, %v4827_v29 }
  0xb4   :  { %v186_v11 = vrot.slane %v181_v1, %v6579_v56  ;;  %v4848_v52 = vrot.slane %v181_v1, %v6582_v0  ;;  %v4854_v60 = vrot.slane %v181_v1, %v6590_v20 }
  0xb5   :  { %v190_v61 = vrot.slane %v181_v1, %v6589_v4 }
 0x121   :  { %v4829_v38 = vpop.f32.mrf.mxu0  ;;  %v4831_v47 = vpop.f32.mrf.mxu1 }
 0x123   :  { %v4838_v2 = vpop.f32.mrf.mxu0  ;;  %v4840_v3 = vpop.f32.mrf.mxu1 }
 0x127   :  { %v275_v63 = vpop.f32.mrf.mxu0  ;;  %v388_v62 = vpop.f32.mrf.mxu1 }
 0x128   :  { %v4856_v59 = vadd.f32 %v275_v63, %v186_v11  ;;  %v4859_v58 = vadd.f32 %v388_v62, %v4848_v52 }
 0x129   :  { %v277_v57 = vpop.f32.mrf.mxu0  ;;  %v390_v56 = vpop.f32.mrf.mxu1 }
 0x12a   :  { %6772 = vst [vmem:[#allocation49_spill] sm:$0xff] %v4859_v58  ;;  %v4861_v55 = vadd.f32 %v277_v57, %v190_v61  ;;  %v4864_v0 = vadd.f32 %v390_v56, %v4854_v60 }
 0x12c   :  { %6773 = vst [vmem:[#allocation50_spill] sm:$0xff] %v4861_v55  ;;  %6774 = vst [vmem:[#allocation51_spill] sm:$0xff] %v4864_v0 }
 0x12d   :  { %v281_v54 = vpop.f32.mrf.mxu0  ;;  %v394_v53 = vpop.f32.mrf.mxu1 }
 0x12e   :  { %v4866_v51 = vadd.f32 %v281_v54, %v186_v11  ;;  %v4869_v4 = vadd.f32 %v394_v53, %v4848_v52 }
 0x12f   :  { %v283_v1 = vpop.f32.mrf.mxu0  ;;  %v396_v63 = vpop.f32.mrf.mxu1 }
 0x130   :  { %6775 = vst [vmem:[#allocation52_spill] sm:$0xff] %v4866_v51  ;;  %6776 = vst [vmem:[#allocation53_spill] sm:$0xff] %v4869_v4  ;;  %v4871_v20 = vadd.f32 %v283_v1, %v190_v61  ;;  %v4874_v62 = vadd.f32 %v396_v63, %v4854_v60 }
 0x132   :  { %6777 = vst [vmem:[#allocation54_spill] sm:$0xff] %v4871_v20  ;;  %6778 = vst [vmem:[#allocation55_spill] sm:$0xff] %v4874_v62 }
 0x133   :  { %v287_v29 = vpop.f32.mrf.mxu0  ;;  %v400_v57 = vpop.f32.mrf.mxu1 }
 0x134   :  { %v4876_v58 = vadd.f32 %v287_v29, %v186_v11  ;;  %v4879_v56 = vadd.f32 %v400_v57, %v4848_v52 }
 0x135   :  { %v289_v0 = vpop.f32.mrf.mxu0  ;;  %v402_v54 = vpop.f32.mrf.mxu1 }
 0x136   :  { %6779 = vst [vmem:[#allocation56_spill] sm:$0xff] %v4876_v58  ;;  %6780 = vst [vmem:[#allocation57_spill] sm:$0xff] %v4879_v56  ;;  %v4881_v51 = vadd.f32 %v289_v0, %v190_v61  ;;  %v4884_v53 = vadd.f32 %v402_v54, %v4854_v60 }
 0x138   :  { %6781 = vst [vmem:[#allocation58_spill] sm:$0xff] %v4881_v51  ;;  %6782 = vst [vmem:[#allocation59_spill] sm:$0xff] %v4884_v53 }
 0x139   :  { %v293_v4 = vpop.f32.mrf.mxu0  ;;  %v406_v1 = vpop.f32.mrf.mxu1 }
 0x13a   :  { %v4886_v20 = vadd.f32 %v293_v4, %v186_v11  ;;  %v4889_v63 = vadd.f32 %v406_v1, %v4848_v52 }
 0x13b   :  { %v295_v62 = vpop.f32.mrf.mxu0  ;;  %v408_v29 = vpop.f32.mrf.mxu1 }
 0x13c   :  { %6783 = vst [vmem:[#allocation60_spill] sm:$0xff] %v4886_v20  ;;  %6784 = vst [vmem:[#allocation61_spill] sm:$0xff] %v4889_v63  ;;  %v4891_v58 = vadd.f32 %v295_v62, %v190_v61  ;;  %v4894_v57 = vadd.f32 %v408_v29, %v4854_v60 }
 0x13e   :  { %6785 = vst [vmem:[#allocation62_spill] sm:$0xff] %v4891_v58  ;;  %6786 = vst [vmem:[#allocation63_spill] sm:$0xff] %v4894_v57 }
 0x13f   :  { %v299_v56 = vpop.f32.mrf.mxu0  ;;  %v412_v0 = vpop.f32.mrf.mxu1 }
 0x140   :  { %v4896_v51 = vadd.f32 %v299_v56, %v186_v11  ;;  %v4899_v54 = vadd.f32 %v412_v0, %v4848_v52 }
 0x141   :  { %v301_v53 = vpop.f32.mrf.mxu0  ;;  %v414_v4 = vpop.f32.mrf.mxu1 }
 0x142   :  { %6787 = vst [vmem:[#allocation64_spill] sm:$0xff] %v4896_v51  ;;  %6788 = vst [vmem:[#allocation65_spill] sm:$0xff] %v4899_v54  ;;  %v4901_v20 = vadd.f32 %v301_v53, %v190_v61  ;;  %v4904_v1 = vadd.f32 %v414_v4, %v4854_v60 }
 0x144   :  { %6789 = vst [vmem:[#allocation66_spill] sm:$0xff] %v4901_v20  ;;  %6790 = vst [vmem:[#allocation67_spill] sm:$0xff] %v4904_v1 }
 0x145   :  { %v305_v63 = vpop.f32.mrf.mxu0  ;;  %v418_v62 = vpop.f32.mrf.mxu1 }
 0x146   :  { %v4906_v58 = vadd.f32 %v305_v63, %v186_v11  ;;  %v4909_v29 = vadd.f32 %v418_v62, %v4848_v52 }
 0x147   :  { %v307_v57 = vpop.f32.mrf.mxu0  ;;  %v420_v56 = vpop.f32.mrf.mxu1 }
 0x148   :  { %6791 = vst [vmem:[#allocation68_spill] sm:$0xff] %v4906_v58  ;;  %6792 = vst [vmem:[#allocation69_spill] sm:$0xff] %v4909_v29  ;;  %v4911_v51 = vadd.f32 %v307_v57, %v190_v61  ;;  %v4914_v0 = vadd.f32 %v420_v56, %v4854_v60  ;;  %v270_v57 = vadd.f32 %v4829_v38, %v186_v11 }
 0x149   :  { %v272_v56 = vadd.f32 %v4838_v2, %v190_v61 }
 0x14a   :  { %6793 = vst [vmem:[#allocation70_spill] sm:$0xff] %v4911_v51  ;;  %6794 = vst [vmem:[#allocation71_spill] sm:$0xff] %v4914_v0 }
 0x14b   :  { %v311_v54 = vpop.f32.mrf.mxu0  ;;  %v424_v53 = vpop.f32.mrf.mxu1 }
 0x14c   :  { %v4916_v20 = vadd.f32 %v311_v54, %v186_v11  ;;  %v4919_v4 = vadd.f32 %v424_v53, %v4848_v52 }
 0x14d   :  { %v313_v1 = vpop.f32.mrf.mxu0  ;;  %v426_v63 = vpop.f32.mrf.mxu1 }
 0x14e   :  { %6795 = vst [vmem:[#allocation72_spill] sm:$0xff] %v4916_v20  ;;  %6796 = vst [vmem:[#allocation73_spill] sm:$0xff] %v4919_v4  ;;  %v4921_v58 = vadd.f32 %v313_v1, %v190_v61  ;;  %v4924_v62 = vadd.f32 %v426_v63, %v4854_v60  ;;  %v385_v1 = vadd.f32 %v4840_v3, %v4854_v60 }
 0x14f   :  { %v383_v63 = vadd.f32 %v4831_v47, %v4848_v52 }
 0x150   :  { %6797 = vst [vmem:[#allocation74_spill] sm:$0xff] %v4921_v58  ;;  %6798 = vst [vmem:[#allocation75_spill] sm:$0xff] %v4924_v62 }
 0x151   :  { %v597_v29 = vpop.f32.mrf.mxu0  ;;  %v668_v20 = vpop.f32.mrf.mxu1 }
 0x152   :  { %v673_v0 = vadd.f32 %v597_v29, %v270_v57  ;;  %v675_v62 = vadd.f32 %v668_v20, %v383_v63  ;;  %v6800_v20 = vld [vmem:[#allocation27_spill] sm:$0xff]  ;;  %v6805_v63 = vld [vmem:[#allocation32_spill] sm:$0xff] }
 0x153   :  { %v599_v51 = vpop.f32.mrf.mxu0  ;;  %v670_v4 = vpop.f32.mrf.mxu1 }
 0x154   :  { %v3813_v55 = vmul.f32 -1.442695, %v673_v0  ;;  %v674_v54 = vadd.f32 %v599_v51, %v272_v56  ;;  %v676_v58 = vadd.f32 %v670_v4, %v385_v1  ;;  %v6804_v1 = vld [vmem:[#allocation31_spill] sm:$0xff] }
 0x156   :  { %3875 = vpow2.f32 %v3813_v55  ;;  %v3814_v53 = vmul.f32 -1.442695, %v674_v54  ;;  %v3815_v11 = vmul.f32 -1.442695, %v676_v58  ;;  %v6802_v54 = vld [vmem:[#allocation29_spill] sm:$0xff] }
 0x158   :  { %3877 = vpow2.f32 %v3814_v53  ;;  %v6803_v53 = vld [vmem:[#allocation30_spill] sm:$0xff] }
 0x159   :  { %3879 = vpow2.f32 %v3815_v11  ;;  %v6806_v11 = vld [vmem:[#allocation33_spill] sm:$0xff] }
 0x163   :  { %v3876_v38 = vpop.eup %3875 }
 0x164   :  { %v680_v61 = vadd.f32 1.0, %v3876_v38  ;;  %v6807_v38 = vld [vmem:[#allocation34_spill] sm:$0xff] }
 0x165   :  { %v3878_v2 = vpop.eup %3877 }
 0x166   :  { %3881 = vrcp.f32 %v680_v61  ;;  %v686_v51 = vadd.f32 1.0, %v3878_v2  ;;  %v3880_v55 = vpop.eup %3879  ;;  %v6808_v61 = vld [vmem:[#allocation35_spill] sm:$0xff]  ;;  %v6809_v2 = vld [vmem:[#allocation36_spill] sm:$0xff] }
 0x167   :  { %3883 = vtanh.f32 %v675_v62  ;;  %v693_v56 = vadd.f32 1.0, %v3880_v55  ;;  %v6801_v62 = vld [vmem:[#allocation28_spill] sm:$0xff]  ;;  %v6811_v55 = vld [vmem:[#allocation38_spill] sm:$0xff] }
 0x168   :  { %3885 = vrcp.f32 %v686_v51  ;;  %v6810_v51 = vld [vmem:[#allocation37_spill] sm:$0xff] }
 0x169   :  { %3887 = vrcp.f32 %v693_v56  ;;  %v6815_v56 = vld [vmem:[#allocation42_spill] sm:$0xff] }
 0x173   :  { %v3882_v29 = vpop.eup %3881 }
 0x174   :  { %v3884_v0 = vpop.eup %3883 }
 0x175   :  { %v3886_v57 = vpop.eup %3885  ;;  %v697_v3 = vmul.f32 %v3884_v0, %v3882_v29  ;;  %v6812_v29 = vld [vmem:[#allocation39_spill] sm:$0xff]  ;;  %v6813_v0 = vld [vmem:[#allocation40_spill] sm:$0xff] }
 0x176   :  { %v696_v60 = vmul.f32 0.0, %v3886_v57  ;;  %v3888_v52 = vpop.eup %3887  ;;  %v6814_v57 = vld [vmem:[#allocation41_spill] sm:$0xff] }
 0x178   :  { %v4932_v4 = vadd.f32 %v697_v3, %v696_v60  ;;  %v6816_v3 = vld [vmem:[#allocation43_spill] sm:$0xff]  ;;  %v6817_v60 = vld [vmem:[#allocation44_spill] sm:$0xff] }
 0x17a   :  { %3889 = vtanh.f32 %v4932_v4 }
 0x187   :  { %v3890_v58 = vpop.eup %3889 }
 0x188   :  { %v4935_v47 = vmul.f32 %v3890_v58, %v3888_v52  ;;  %v6818_v52 = vld [vmem:[#allocation45_spill] sm:$0xff]  ;;  %v6819_v58 = vld [vmem:[#allocation46_spill] sm:$0xff] }
 0x18a   :  { %6799 = vst [vmem:[#allocation76_spill] sm:$0xff] %v4935_v47  ;;  %772 = vmatmul.mubr.f32.vlgmr.msra.gmra.mxu0 %v4935_v47  ;;  %843 = vmatmul.mubr.f32.vlgmr.msra.gmra.mxu1 %v4935_v47  ;;  %v6820_v47 = vmov 0.0  }
 0x18b   :  { %885 = vmatpush1.msra.mxu0 %v4553_v5  ;;  %956 = vmatpush1.msra.mxu1 %v4555_v6 }
 0x18c   :  { %886 = vmatprep.subr.mxu0 %v4557_v7  ;;  %957 = vmatprep.subr.mxu1 %v4559_v8 }
 0x18d   :  { %887 = vmatpush1.msra.mxu0 %v4565_v9  ;;  %958 = vmatpush1.msra.mxu1 %v4567_v10 }
 0x18e   :  { %888 = vmatprep.subr.mxu0 %v4573_v12  ;;  %959 = vmatprep.subr.mxu1 %v4575_v13 }
 0x18f   :  { %889 = vmatpush1.msra.mxu0 %v4579_v14  ;;  %960 = vmatpush1.msra.mxu1 %v4581_v15 }
 0x190   :  { %890 = vmatprep.subr.mxu0 %v4583_v16  ;;  %961 = vmatprep.subr.mxu1 %v4585_v17 }
 0x191   :  { %891 = vmatpush1.msra.mxu0 %v4591_v18  ;;  %962 = vmatpush1.msra.mxu1 %v4593_v19 }
 0x192   :  { %892 = vmatprep.subr.mxu0 %v4599_v21  ;;  %963 = vmatprep.subr.mxu1 %v4601_v22 }
 0x193   :  { %893 = vmatpush1.msra.mxu0 %v4605_v23  ;;  %964 = vmatpush1.msra.mxu1 %v4607_v24 }
 0x194   :  { %894 = vmatprep.subr.mxu0 %v4609_v25  ;;  %965 = vmatprep.subr.mxu1 %v4611_v26 }
 0x195   :  { %895 = vmatpush1.msra.mxu0 %v4617_v27  ;;  %966 = vmatpush1.msra.mxu1 %v4619_v28 }
 0x196   :  { %896 = vmatprep.subr.mxu0 %v4625_v30  ;;  %967 = vmatprep.subr.mxu1 %v4627_v31 }
 0x197   :  { %897 = vmatpush1.msra.mxu0 %v4631_v32  ;;  %968 = vmatpush1.msra.mxu1 %v4633_v33 }
 0x198   :  { %898 = vmatprep.subr.mxu0 %v4635_v34  ;;  %969 = vmatprep.subr.mxu1 %v4637_v35 }
 0x199   :  { %899 = vmatpush1.msra.mxu0 %v4643_v36  ;;  %970 = vmatpush1.msra.mxu1 %v4645_v37 }
 0x19a   :  { %900 = vmatprep.subr.mxu0 %v4651_v39  ;;  %971 = vmatprep.subr.mxu1 %v4653_v40 }
 0x19b   :  { %901 = vmatpush1.msra.mxu0 %v4657_v41  ;;  %972 = vmatpush1.msra.mxu1 %v4659_v42 }
 0x19c   :  { %902 = vmatprep.subr.mxu0 %v4661_v43  ;;  %973 = vmatprep.subr.mxu1 %v4663_v44 }
 0x19d   :  { %903 = vmatpush1.msra.mxu0 %v4669_v45  ;;  %974 = vmatpush1.msra.mxu1 %v4671_v46 }
 0x19e   :  { %904 = vmatprep.subr.mxu0 %v4677_v48  ;;  %975 = vmatprep.subr.mxu1 %v4679_v49 }
 0x19f   :  { %905 = vmatpush1.msra.mxu0 %v4683_v50  ;;  %976 = vmatpush1.msra.mxu1 %v6800_v20 }
 0x1a0   :  { %906 = vmatprep.subr.mxu0 %v6801_v62  ;;  %977 = vmatprep.subr.mxu1 %v6802_v54 }
 0x1a1   :  { %907 = vmatpush1.msra.mxu0 %v6803_v53  ;;  %978 = vmatpush1.msra.mxu1 %v6804_v1 }
 0x1a2   :  { %908 = vmatprep.subr.mxu0 %v6805_v63  ;;  %979 = vmatprep.subr.mxu1 %v6806_v11  ;;  %v6826_v11 = vld [vmem:[#allocation49_spill] sm:$0xff] }
 0x1a3   :  { %909 = vmatpush1.msra.mxu0 %v6807_v38  ;;  %980 = vmatpush1.msra.mxu1 %v6808_v61  ;;  %v6825_v38 = vld [vmem:[#allocation51_spill] sm:$0xff] }
 0x1a4   :  { %910 = vmatprep.subr.mxu0 %v6809_v2  ;;  %981 = vmatprep.subr.mxu1 %v6810_v51  ;;  %v6821_v51 = vld [vmem:[#allocation47_spill] sm:$0xff] }
 0x1a5   :  { %911 = vmatpush1.msra.mxu0 %v6811_v55  ;;  %982 = vmatpush1.msra.mxu1 %v6812_v29  ;;  %v6822_v29 = vld [vmem:[#allocation25_spill] sm:$0xff] }
 0x1a6   :  { %912 = vmatprep.subr.mxu0 %v6813_v0  ;;  %983 = vmatprep.subr.mxu1 %v6814_v57  ;;  %v6823_v0 = vld [vmem:[#allocation26_spill] sm:$0xff] }
 0x1a7   :  { %913 = vmatpush1.msra.mxu0 %v6815_v56  ;;  %984 = vmatpush1.msra.mxu1 %v6816_v3 }
 0x1a8   :  { %914 = vmatprep.subr.mxu0 %v6817_v60  ;;  %985 = vmatprep.subr.mxu1 %v6818_v52  ;;  %v6824_v60 = vld [vmem:[#allocation50_spill] sm:$0xff] }
 0x1a9   :  { %915 = vmatpush1.msra.mxu0 %v6819_v58  ;;  %948 = vmatprep.mubr.f32.mxu0 %v6820_v47 }
 0x1aa   :  { %986 = vmatpush1.msra.mxu1 %v6821_v51  ;;  %1019 = vmatprep.mubr.f32.mxu1 %v6820_v47 }
 0x1ab   :  { %1061 = vmatprep.subr.mxu0 %v6822_v29  ;;  %1132 = vmatprep.subr.mxu1 %v6823_v0 }
 0x24a   :  { %v773_v57 = vpop.f32.mrf.mxu0  ;;  %v844_v52 = vpop.f32.mrf.mxu1 }
 0x24b   :  { %v849_v56 = vadd.f32 %v773_v57, %v4856_v59  ;;  %v851_v47 = vadd.f32 %v844_v52, %v6826_v11 }
 0x24c   :  { %v775_v3 = vpop.f32.mrf.mxu0  ;;  %v846_v61 = vpop.f32.mrf.mxu1 }
 0x24d   :  { %v3816_v55 = vmul.f32 -1.442695, %v849_v56  ;;  %v850_v2 = vadd.f32 %v775_v3, %v6824_v60  ;;  %v852_v51 = vadd.f32 %v846_v61, %v6825_v38 }
 0x24f   :  { %3891 = vpow2.f32 %v3816_v55  ;;  %v3817_v58 = vmul.f32 -1.442695, %v850_v2  ;;  %v3818_v63 = vmul.f32 -1.442695, %v852_v51 }
 0x251   :  { %3893 = vpow2.f32 %v3817_v58 }
 0x252   :  { %3895 = vtanh.f32 %v851_v47 }
 0x253   :  { %3897 = vpow2.f32 %v3818_v63 }
 0x25c   :  { %v3892_v29 = vpop.eup %3891 }
 0x25d   :  { %v856_v1 = vadd.f32 1.0, %v3892_v29 }
 0x25e   :  { %v3894_v0 = vpop.eup %3893 }
 0x25f   :  { %3899 = vrcp.f32 %v856_v1  ;;  %v862_v59 = vadd.f32 1.0, %v3894_v0  ;;  %v3896_v57 = vpop.eup %3895  ;;  %v6849_v1 = vld [vmem:[#allocation54_spill] sm:$0xff]  ;;  %v6850_v0 = vld [vmem:[#allocation55_spill] sm:$0xff] }
 0x260   :  { %v3898_v56 = vpop.eup %3897 }
 0x261   :  { %3901 = vrcp.f32 %v862_v59  ;;  %v869_v60 = vadd.f32 1.0, %v3898_v56 }
 0x263   :  { %3903 = vrcp.f32 %v869_v60 }
 0x26c   :  { %v3900_v55 = vpop.eup %3899 }
 0x26d   :  { %v873_v3 = vmul.f32 %v3900_v55, %v3896_v57  ;;  %v6851_v57 = vld [vmem:[#allocation53_spill] sm:$0xff] }
 0x26e   :  { %v3902_v2 = vpop.eup %3901 }
 0x26f   :  { %v872_v58 = vmul.f32 %v3902_v2, %v4932_v4 }
 0x270   :  { %v3904_v11 = vpop.eup %3903 }
 0x271   :  { %v5010_v38 = vadd.f32 %v873_v3, %v872_v58 }
 0x273   :  { %3905 = vtanh.f32 %v5010_v38 }
 0x280   :  { %v3906_v47 = vpop.eup %3905 }
 0x281   :  { %v5013_v61 = vmul.f32 %v3906_v47, %v3904_v11 }
 0x283   :  { %6827 = vst [vmem:[#allocation27_spill] sm:$0xff] %v5013_v61  ;;  %949 = vmatmul.mubr.f32.vlgmr.msra.gmra.mxu0 %v5013_v61  ;;  %1020 = vmatmul.mubr.f32.vlgmr.msra.gmra.mxu1 %v5013_v61  ;;  %v5162_v61 = vld [vmem:[#allocation9 + $0x150] sm:$0xff] }
 0x284   :  { %1062 = vmatpush1.msra.mxu0 %v4553_v5  ;;  %1133 = vmatpush1.msra.mxu1 %v4555_v6  ;;  %v6828_v5 = vld [vmem:[#allocation31_spill] sm:$0xff]  ;;  %v6829_v6 = vld [vmem:[#allocation32_spill] sm:$0xff] }
 0x285   :  { %1063 = vmatprep.subr.mxu0 %v4557_v7  ;;  %1134 = vmatprep.subr.mxu1 %v4559_v8  ;;  %v6830_v7 = vld [vmem:[#allocation33_spill] sm:$0xff]  ;;  %v6831_v8 = vld [vmem:[#allocation34_spill] sm:$0xff] }
 0x286   :  { %1064 = vmatpush1.msra.mxu0 %v4565_v9  ;;  %1135 = vmatpush1.msra.mxu1 %v4567_v10  ;;  %v6832_v9 = vld [vmem:[#allocation35_spill] sm:$0xff]  ;;  %v6833_v10 = vld [vmem:[#allocation36_spill] sm:$0xff] }
 0x287   :  { %1065 = vmatprep.subr.mxu0 %v4573_v12  ;;  %1136 = vmatprep.subr.mxu1 %v4575_v13  ;;  %v6834_v12 = vld [vmem:[#allocation37_spill] sm:$0xff]  ;;  %v6835_v13 = vld [vmem:[#allocation38_spill] sm:$0xff] }
 0x288   :  { %1066 = vmatpush1.msra.mxu0 %v4579_v14  ;;  %1137 = vmatpush1.msra.mxu1 %v4581_v15  ;;  %v6836_v14 = vld [vmem:[#allocation39_spill] sm:$0xff]  ;;  %v6837_v15 = vld [vmem:[#allocation40_spill] sm:$0xff] }
 0x289   :  { %1067 = vmatprep.subr.mxu0 %v4583_v16  ;;  %1138 = vmatprep.subr.mxu1 %v4585_v17  ;;  %v6838_v16 = vld [vmem:[#allocation41_spill] sm:$0xff]  ;;  %v6839_v17 = vld [vmem:[#allocation42_spill] sm:$0xff] }
 0x28a   :  { %1068 = vmatpush1.msra.mxu0 %v4591_v18  ;;  %1139 = vmatpush1.msra.mxu1 %v4593_v19  ;;  %v6840_v18 = vld [vmem:[#allocation43_spill] sm:$0xff]  ;;  %v6841_v19 = vld [vmem:[#allocation44_spill] sm:$0xff] }
 0x28b   :  { %1069 = vmatprep.subr.mxu0 %v4599_v21  ;;  %1140 = vmatprep.subr.mxu1 %v4601_v22  ;;  %v6842_v21 = vld [vmem:[#allocation45_spill] sm:$0xff]  ;;  %v6843_v22 = vld [vmem:[#allocation46_spill] sm:$0xff] }
 0x28c   :  { %1070 = vmatpush1.msra.mxu0 %v4605_v23  ;;  %1141 = vmatpush1.msra.mxu1 %v4607_v24  ;;  %v6844_v23 = vmov 0.0   ;;  %v6845_v24 = vld [vmem:[#allocation47_spill] sm:$0xff] }
 0x28d   :  { %1071 = vmatprep.subr.mxu0 %v4609_v25  ;;  %1142 = vmatprep.subr.mxu1 %v4611_v26  ;;  %v5081_v25 = vld [vmem:[#allocation9 + $0x1e8] sm:$0xff]  ;;  %v5084_v26 = vld [vmem:[#allocation9 + $0x1f8] sm:$0xff] }
 0x28e   :  { %1072 = vmatpush1.msra.mxu0 %v4617_v27  ;;  %1143 = vmatpush1.msra.mxu1 %v4619_v28  ;;  %6846 = vst [vmem:[#allocation28_spill] sm:$0xff] %v5081_v25  ;;  %6847 = vst [vmem:[#allocation29_spill] sm:$0xff] %v5084_v26  ;;  %v6848_v28 = vld [vmem:[#allocation52_spill] sm:$0xff] }
 0x28f   :  { %1073 = vmatprep.subr.mxu0 %v4625_v30  ;;  %1144 = vmatprep.subr.mxu1 %v4627_v31 }
 0x290   :  { %1074 = vmatpush1.msra.mxu0 %v4631_v32  ;;  %1145 = vmatpush1.msra.mxu1 %v4633_v33 }
 0x291   :  { %1075 = vmatprep.subr.mxu0 %v4635_v34  ;;  %1146 = vmatprep.subr.mxu1 %v4637_v35 }
 0x292   :  { %1076 = vmatpush1.msra.mxu0 %v4643_v36  ;;  %1147 = vmatpush1.msra.mxu1 %v4645_v37 }
 0x293   :  { %1077 = vmatprep.subr.mxu0 %v4651_v39  ;;  %1148 = vmatprep.subr.mxu1 %v4653_v40 }
 0x294   :  { %1078 = vmatpush1.msra.mxu0 %v4657_v41  ;;  %1149 = vmatpush1.msra.mxu1 %v4659_v42 }
 0x295   :  { %1079 = vmatprep.subr.mxu0 %v4661_v43  ;;  %1150 = vmatprep.subr.mxu1 %v4663_v44 }
 0x296   :  { %1080 = vmatpush1.msra.mxu0 %v4669_v45  ;;  %1151 = vmatpush1.msra.mxu1 %v4671_v46 }
 0x297   :  { %1081 = vmatprep.subr.mxu0 %v4677_v48  ;;  %1152 = vmatprep.subr.mxu1 %v4679_v49 }
 0x298   :  { %1082 = vmatpush1.msra.mxu0 %v4683_v50  ;;  %1153 = vmatpush1.msra.mxu1 %v6800_v20 }
 0x299   :  { %1083 = vmatprep.subr.mxu0 %v6801_v62  ;;  %1154 = vmatprep.subr.mxu1 %v6802_v54 }
 0x29a   :  { %1084 = vmatpush1.msra.mxu0 %v6803_v53  ;;  %1155 = vmatpush1.msra.mxu1 %v6828_v5 }
 0x29b   :  { %1085 = vmatprep.subr.mxu0 %v6829_v6  ;;  %1156 = vmatprep.subr.mxu1 %v6830_v7 }
 0x29c   :  { %1086 = vmatpush1.msra.mxu0 %v6831_v8  ;;  %1157 = vmatpush1.msra.mxu1 %v6832_v9 }
 0x29d   :  { %1087 = vmatprep.subr.mxu0 %v6833_v10  ;;  %1158 = vmatprep.subr.mxu1 %v6834_v12 }
 0x29e   :  { %1088 = vmatpush1.msra.mxu0 %v6835_v13  ;;  %1159 = vmatpush1.msra.mxu1 %v6836_v14 }
 0x29f   :  { %1089 = vmatprep.subr.mxu0 %v6837_v15  ;;  %1160 = vmatprep.subr.mxu1 %v6838_v16 }
 0x2a0   :  { %1090 = vmatpush1.msra.mxu0 %v6839_v17  ;;  %1161 = vmatpush1.msra.mxu1 %v6840_v18 }
 0x2a1   :  { %1091 = vmatprep.subr.mxu0 %v6841_v19  ;;  %1162 = vmatprep.subr.mxu1 %v6842_v21 }
 0x2a2   :  { %1092 = vmatpush1.msra.mxu0 %v6843_v22  ;;  %1125 = vmatprep.mubr.f32.mxu0 %v6844_v23 }
 0x2a3   :  { %1163 = vmatpush1.msra.mxu1 %v6845_v24  ;;  %1196 = vmatprep.mubr.f32.mxu1 %v6844_v23 }
 0x2a4   :  { %1238 = vmatprep.subr.mxu0 %v5081_v25  ;;  %1309 = vmatprep.subr.mxu1 %v5084_v26 }
 0x343   :  { %v950_v27 = vpop.f32.mrf.mxu0  ;;  %v1021_v51 = vpop.f32.mrf.mxu1 }
 0x344   :  { %v1026_v30 = vadd.f32 %v950_v27, %v6848_v28  ;;  %v1028_v56 = vadd.f32 %v1021_v51, %v6851_v57  ;;  %v5111_v57 = vld [vmem:[#allocation9 + $0x1c0] sm:$0xff] }
 0x345   :  { %v952_v31 = vpop.f32.mrf.mxu0  ;;  %v1023_v29 = vpop.f32.mrf.mxu1 }
 0x346   :  { %v3819_v4 = vmul.f32 -1.442695, %v1026_v30  ;;  %v1027_v63 = vadd.f32 %v952_v31, %v6849_v1  ;;  %v1029_v59 = vadd.f32 %v1023_v29, %v6850_v0  ;;  %v5099_v29 = vld [vmem:[#allocation9 + $0x1e0] sm:$0xff]  ;;  %v5102_v0 = vld [vmem:[#allocation9 + $0x1f0] sm:$0xff] }
 0x348   :  { %3907 = vpow2.f32 %v3819_v4  ;;  %v3820_v52 = vmul.f32 -1.442695, %v1027_v63  ;;  %v3821_v55 = vmul.f32 -1.442695, %v1029_v59  ;;  %v5108_v59 = vld [vmem:[#allocation9 + $0x1d8] sm:$0xff] }
 0x34a   :  { %3909 = vpow2.f32 %v3820_v52 }
 0x34b   :  { %3911 = vtanh.f32 %v1028_v56  ;;  %v5114_v56 = vld [vmem:[#allocation9 + $0x1d0] sm:$0xff] }
 0x34c   :  { %3913 = vpow2.f32 %v3821_v55  ;;  %v5117_v55 = vld [vmem:[#allocation9 + $0x1a8] sm:$0xff] }
 0x355   :  { %v3908_v3 = vpop.eup %3907 }
 0x356   :  { %v1033_v2 = vadd.f32 1.0, %v3908_v3  ;;  %v5120_v3 = vld [vmem:[#allocation9 + $0x1b8] sm:$0xff] }
 0x357   :  { %v3910_v60 = vpop.eup %3909 }
 0x358   :  { %3915 = vrcp.f32 %v1033_v2  ;;  %v1039_v58 = vadd.f32 1.0, %v3910_v60  ;;  %v3912_v11 = vpop.eup %3911  ;;  %v5123_v2 = vld [vmem:[#allocation9 + $0x1a0] sm:$0xff]  ;;  %v5126_v60 = vld [vmem:[#allocation9 + $0x1b0] sm:$0xff] }
 0x359   :  { %v3914_v47 = vpop.eup %3913 }
 0x35a   :  { %3917 = vrcp.f32 %v1039_v58  ;;  %v1046_v31 = vadd.f32 1.0, %v3914_v47  ;;  %v5129_v58 = vld [vmem:[#allocation9 + $0x188] sm:$0xff]  ;;  %v5135_v47 = vld [vmem:[#allocation9 + $0x180] sm:$0xff] }
 0x35c   :  { %3919 = vrcp.f32 %v1046_v31  ;;  %v5147_v31 = vld [vmem:[#allocation9 + $0x160] sm:$0xff] }
 0x35d   :  { %6853 = vst [vmem:[#allocation25_spill] sm:$0xff] %v5147_v31 }
 0x365   :  { %v3916_v27 = vpop.eup %3915 }
 0x366   :  { %v1050_v28 = vmul.f32 %v3916_v27, %v3912_v11  ;;  %v5132_v11 = vld [vmem:[#allocation9 + $0x198] sm:$0xff]  ;;  %v5138_v27 = vld [vmem:[#allocation9 + $0x190] sm:$0xff] }
 0x367   :  { %v3918_v30 = vpop.eup %3917 }
 0x368   :  { %v1049_v4 = vmul.f32 %v3918_v30, %v5010_v38  ;;  %v5105_v38 = vld [vmem:[#allocation9 + $0x1c8] sm:$0xff]  ;;  %v5144_v30 = vld [vmem:[#allocation9 + $0x178] sm:$0xff] }
 0x369   :  { %v3920_v63 = vpop.eup %3919 }
 0x36a   :  { %v5092_v1 = vadd.f32 %v1050_v28, %v1049_v4  ;;  %v5141_v28 = vld [vmem:[#allocation9 + $0x168] sm:$0xff]  ;;  %v5150_v4 = vld [vmem:[#allocation9 + $0x170] sm:$0xff] }
 0x36b   :  { %6854 = vst [vmem:[#allocation26_spill] sm:$0xff] %v5150_v4 }
 0x36c   :  { %3921 = vtanh.f32 %v5092_v1 }
 0x379   :  { %v3922_v51 = vpop.eup %3921 }
 0x37a   :  { %v5095_v52 = vmul.f32 %v3922_v51, %v3920_v63  ;;  %v5153_v63 = vld [vmem:[#allocation9 + $0x148] sm:$0xff]  ;;  %v5156_v51 = vld [vmem:[#allocation9 + $0x158] sm:$0xff] }
 0x37c   :  { %6852 = vst [vmem:[#allocation30_spill] sm:$0xff] %v5095_v52  ;;  %1126 = vmatmul.mubr.f32.vlgmr.msra.gmra.mxu0 %v5095_v52  ;;  %1197 = vmatmul.mubr.f32.vlgmr.msra.gmra.mxu1 %v5095_v52  ;;  %v5159_v52 = vld [vmem:[#allocation9 + $0x140] sm:$0xff] }
 0x37d   :  { %1239 = vmatpush1.msra.mxu0 %v5099_v29  ;;  %1310 = vmatpush1.msra.mxu1 %v5102_v0 }
 0x37e   :  { %1240 = vmatprep.subr.mxu0 %v5105_v38  ;;  %1311 = vmatprep.subr.mxu1 %v5108_v59 }
 0x37f   :  { %1241 = vmatpush1.msra.mxu0 %v5111_v57  ;;  %1312 = vmatpush1.msra.mxu1 %v5114_v56 }
 0x380   :  { %1242 = vmatprep.subr.mxu0 %v5117_v55  ;;  %1313 = vmatprep.subr.mxu1 %v5120_v3 }
 0x381   :  { %1243 = vmatpush1.msra.mxu0 %v5123_v2  ;;  %1314 = vmatpush1.msra.mxu1 %v5126_v60 }
 0x382   :  { %1244 = vmatprep.subr.mxu0 %v5129_v58  ;;  %1315 = vmatprep.subr.mxu1 %v5132_v11 }
 0x383   :  { %1245 = vmatpush1.msra.mxu0 %v5135_v47  ;;  %1316 = vmatpush1.msra.mxu1 %v5138_v27 }
 0x384   :  { %1246 = vmatprep.subr.mxu0 %v5141_v28  ;;  %1317 = vmatprep.subr.mxu1 %v5144_v30 }
 0x385   :  { %1247 = vmatpush1.msra.mxu0 %v5147_v31  ;;  %1318 = vmatpush1.msra.mxu1 %v5150_v4  ;;  %v5165_v31 = vld [vmem:[#allocation9 + $0x128] sm:$0xff]  ;;  %v5168_v4 = vld [vmem:[#allocation9 + $0x138] sm:$0xff] }
 0x386   :  { %1248 = vmatprep.subr.mxu0 %v5153_v63  ;;  %1319 = vmatprep.subr.mxu1 %v5156_v51 }
 0x387   :  { %1249 = vmatpush1.msra.mxu0 %v5159_v52  ;;  %1320 = vmatpush1.msra.mxu1 %v5162_v61 }
 0x388   :  { %1250 = vmatprep.subr.mxu0 %v5165_v31  ;;  %1321 = vmatprep.subr.mxu1 %v5168_v4 }
 0x389   :  { %1251 = vmatpush1.msra.mxu0 %v4631_v32  ;;  %1322 = vmatpush1.msra.mxu1 %v4633_v33  ;;  %v6855_v33 = vld [vmem:[#allocation56_spill] sm:$0xff] }
 0x38a   :  { %1252 = vmatprep.subr.mxu0 %v4635_v34  ;;  %1323 = vmatprep.subr.mxu1 %v4637_v35 }
 0x38b   :  { %1253 = vmatpush1.msra.mxu0 %v4643_v36  ;;  %1324 = vmatpush1.msra.mxu1 %v4645_v37  ;;  %v6856_v37 = vld [vmem:[#allocation58_spill] sm:$0xff] }
 0x38c   :  { %1254 = vmatprep.subr.mxu0 %v4651_v39  ;;  %1325 = vmatprep.subr.mxu1 %v4653_v40 }
 0x38d   :  { %1255 = vmatpush1.msra.mxu0 %v4657_v41  ;;  %1326 = vmatpush1.msra.mxu1 %v4659_v42 }
 0x38e   :  { %1256 = vmatprep.subr.mxu0 %v4661_v43  ;;  %1327 = vmatprep.subr.mxu1 %v4663_v44  ;;  %v6857_v43 = vld [vmem:[#allocation59_spill] sm:$0xff] }
 0x38f   :  { %1257 = vmatpush1.msra.mxu0 %v4669_v45  ;;  %1328 = vmatpush1.msra.mxu1 %v4671_v46  ;;  %v6858_v45 = vld [vmem:[#allocation57_spill] sm:$0xff] }
 0x390   :  { %1258 = vmatprep.subr.mxu0 %v4677_v48  ;;  %1329 = vmatprep.subr.mxu1 %v4679_v49 }
 0x391   :  { %1259 = vmatpush1.msra.mxu0 %v4683_v50  ;;  %1330 = vmatpush1.msra.mxu1 %v6800_v20 }
 0x392   :  { %1260 = vmatprep.subr.mxu0 %v6801_v62  ;;  %1331 = vmatprep.subr.mxu1 %v6802_v54 }
 0x393   :  { %1261 = vmatpush1.msra.mxu0 %v6803_v53  ;;  %1332 = vmatpush1.msra.mxu1 %v6828_v5 }
 0x394   :  { %1262 = vmatprep.subr.mxu0 %v6829_v6  ;;  %1333 = vmatprep.subr.mxu1 %v6830_v7 }
 0x395   :  { %1263 = vmatpush1.msra.mxu0 %v6831_v8  ;;  %1334 = vmatpush1.msra.mxu1 %v6832_v9 }
 0x396   :  { %1264 = vmatprep.subr.mxu0 %v6833_v10  ;;  %1335 = vmatprep.subr.mxu1 %v6834_v12 }
 0x397   :  { %1265 = vmatpush1.msra.mxu0 %v6835_v13  ;;  %1336 = vmatpush1.msra.mxu1 %v6836_v14 }
 0x398   :  { %1266 = vmatprep.subr.mxu0 %v6837_v15  ;;  %1337 = vmatprep.subr.mxu1 %v6838_v16  ;;  %v6860_v15 = vld [vmem:[#allocation25_spill] sm:$0xff]  ;;  %v6861_v16 = vld [vmem:[#allocation26_spill] sm:$0xff] }
 0x399   :  { %1267 = vmatpush1.msra.mxu0 %v6839_v17  ;;  %1338 = vmatpush1.msra.mxu1 %v6840_v18  ;;  %v5249_v17 = vld [vmem:[#allocation9 + $0x120] sm:$0xff]  ;;  %v5252_v18 = vld [vmem:[#allocation9 + $0x130] sm:$0xff] }
 0x39a   :  { %1268 = vmatprep.subr.mxu0 %v6841_v19  ;;  %1339 = vmatprep.subr.mxu1 %v6842_v21  ;;  %v5255_v19 = vld [vmem:[#allocation9 + $0x108] sm:$0xff]  ;;  %v5258_v21 = vld [vmem:[#allocation9 + $0x118] sm:$0xff] }
 0x39b   :  { %1269 = vmatpush1.msra.mxu0 %v6843_v22  ;;  %1302 = vmatprep.mubr.f32.mxu0 %v6844_v23  ;;  %v5261_v22 = vld [vmem:[#allocation9 + $0x100] sm:$0xff] }
 0x39c   :  { %1340 = vmatpush1.msra.mxu1 %v6845_v24  ;;  %1373 = vmatprep.mubr.f32.mxu1 %v6844_v23  ;;  %v5264_v24 = vld [vmem:[#allocation9 + $0x110] sm:$0xff] }
 0x39d   :  { %1415 = vmatprep.subr.mxu0 %v5081_v25  ;;  %1486 = vmatprep.subr.mxu1 %v5084_v26 }
 0x43c   :  { %v1127_v32 = vpop.f32.mrf.mxu0  ;;  %v1198_v40 = vpop.f32.mrf.mxu1 }
 0x43d   :  { %v1203_v34 = vadd.f32 %v1127_v32, %v6855_v33  ;;  %v1205_v46 = vadd.f32 %v1198_v40, %v6858_v45  ;;  %v5270_v32 = vld [vmem:[#allocation9 + $0xf8] sm:$0xff]  ;;  %v5273_v33 = vld [vmem:[#allocation9 + $0xe0] sm:$0xff]  ;;  %v5291_v40 = vld [vmem:[#allocation9 + $0xa8] sm:$0xff] }
 0x43e   :  { %v1129_v35 = vpop.f32.mrf.mxu0  ;;  %v1200_v42 = vpop.f32.mrf.mxu1  ;;  %v5306_v45 = vld [vmem:[#allocation9 + $0x98] sm:$0xff] }
 0x43f   :  { %v3822_v36 = vmul.f32 -1.442695, %v1203_v34  ;;  %v1204_v39 = vadd.f32 %v1129_v35, %v6856_v37  ;;  %v1206_v44 = vadd.f32 %v1200_v42, %v6857_v43  ;;  %v5276_v34 = vld [vmem:[#allocation9 + $0xf0] sm:$0xff]  ;;  %v5279_v35 = vld [vmem:[#allocation9 + $0xc8] sm:$0xff]  ;;  %v5285_v37 = vld [vmem:[#allocation9 + $0xc0] sm:$0xff] }
 0x440   :  { %v5297_v42 = vld [vmem:[#allocation9 + $0xa0] sm:$0xff]  ;;  %v5300_v43 = vld [vmem:[#allocation9 + $0xb0] sm:$0xff] }
 0x441   :  { %3923 = vpow2.f32 %v3822_v36  ;;  %v3823_v41 = vmul.f32 -1.442695, %v1204_v39  ;;  %v3824_v48 = vmul.f32 -1.442695, %v1206_v44  ;;  %v5282_v36 = vld [vmem:[#allocation9 + $0xd8] sm:$0xff]  ;;  %v5288_v39 = vld [vmem:[#allocation9 + $0xd0] sm:$0xff] }
 0x442   :  { %v5303_v44 = vld [vmem:[#allocation9 + $0x88] sm:$0xff] }
 0x443   :  { %3925 = vpow2.f32 %v3823_v41  ;;  %v5294_v41 = vld [vmem:[#allocation9 + $0xb8] sm:$0xff] }
 0x444   :  { %3927 = vtanh.f32 %v1205_v46  ;;  %v5309_v46 = vld [vmem:[#allocation9 + $0x80] sm:$0xff] }
 0x445   :  { %3929 = vpow2.f32 %v3824_v48  ;;  %v5312_v48 = vld [vmem:[#allocation9 + $0x90] sm:$0xff] }
 0x446   :  { %6862 = vst [vmem:[#allocation51_spill] sm:$0xff] %v5312_v48 }
 0x44e   :  { %v3924_v49 = vpop.eup %3923 }
 0x44f   :  { %v1210_v50 = vadd.f32 1.0, %v3924_v49  ;;  %v5315_v49 = vld [vmem:[#allocation9 + $0x68] sm:$0xff] }
 0x450   :  { %v3926_v20 = vpop.eup %3925  ;;  %6863 = vst [vmem:[#allocation49_spill] sm:$0xff] %v5315_v49 }
 0x451   :  { %3931 = vrcp.f32 %v1210_v50  ;;  %v1216_v62 = vadd.f32 1.0, %v3926_v20  ;;  %v3928_v54 = vpop.eup %3927  ;;  %v5318_v50 = vld [vmem:[#allocation9 + $0x78] sm:$0xff]  ;;  %v5321_v20 = vld [vmem:[#allocation9 + $0x60] sm:$0xff] }
 0x452   :  { %v3930_v53 = vpop.eup %3929  ;;  %6864 = vst [vmem:[#allocation31_spill] sm:$0xff] %v5318_v50  ;;  %6865 = vst [vmem:[#allocation32_spill] sm:$0xff] %v5321_v20 }
 0x453   :  { %3933 = vrcp.f32 %v1216_v62  ;;  %v1223_v8 = vadd.f32 1.0, %v3930_v53  ;;  %v5324_v62 = vld [vmem:[#allocation9 + $0x70] sm:$0xff]  ;;  %v5330_v53 = vld [vmem:[#allocation9 + $0x58] sm:$0xff] }
 0x454   :  { %6866 = vst [vmem:[#allocation33_spill] sm:$0xff] %v5324_v62  ;;  %6868 = vst [vmem:[#allocation35_spill] sm:$0xff] %v5330_v53 }
 0x455   :  { %3935 = vrcp.f32 %v1223_v8  ;;  %v5342_v8 = vld [vmem:[#allocation9 + $0x38] sm:$0xff] }
 0x456   :  { %6872 = vst [vmem:[#allocation39_spill] sm:$0xff] %v5342_v8 }
 0x45e   :  { %v3932_v5 = vpop.eup %3931 }
 0x45f   :  { %v1227_v6 = vmul.f32 %v3932_v5, %v3928_v54  ;;  %v5327_v54 = vld [vmem:[#allocation9 + $0x48] sm:$0xff]  ;;  %v5333_v5 = vld [vmem:[#allocation9 + $0x40] sm:$0xff] }
 0x460   :  { %v3934_v7 = vpop.eup %3933  ;;  %6867 = vst [vmem:[#allocation34_spill] sm:$0xff] %v5327_v54  ;;  %6869 = vst [vmem:[#allocation36_spill] sm:$0xff] %v5333_v5 }
 0x461   :  { %v1226_v9 = vmul.f32 %v3934_v7, %v5092_v1  ;;  %v5267_v1 = vld [vmem:[#allocation9 + $0xe8] sm:$0xff] }
 0x462   :  { %v3936_v12 = vpop.eup %3935  ;;  %v5339_v7 = vld [vmem:[#allocation9 + $0x28] sm:$0xff] }
 0x463   :  { %v5218_v10 = vadd.f32 %v1227_v6, %v1226_v9  ;;  %v5336_v6 = vld [vmem:[#allocation9 + $0x50] sm:$0xff]  ;;  %6871 = vst [vmem:[#allocation38_spill] sm:$0xff] %v5339_v7  ;;  %v5345_v9 = vld [vmem:[#allocation9 + $0x20] sm:$0xff] }
 0x464   :  { %6870 = vst [vmem:[#allocation37_spill] sm:$0xff] %v5336_v6  ;;  %6873 = vst [vmem:[#allocation40_spill] sm:$0xff] %v5345_v9 }
 0x465   :  { %3937 = vtanh.f32 %v5218_v10 }
 0x472   :  { %v3938_v13 = vpop.eup %3937 }
 0x473   :  { %v5221_v14 = vmul.f32 %v3938_v13, %v3936_v12  ;;  %v5348_v12 = vld [vmem:[#allocation9 + $0x30] sm:$0xff]  ;;  %v5351_v13 = vld [vmem:[#allocation9 + $0x8] sm:$0xff] }
 0x474   :  { %6874 = vst [vmem:[#allocation41_spill] sm:$0xff] %v5348_v12  ;;  %6875 = vst [vmem:[#allocation42_spill] sm:$0xff] %v5351_v13 }
 0x475   :  { %6859 = vst [vmem:[#allocation50_spill] sm:$0xff] %v5221_v14  ;;  %1303 = vmatmul.mubr.f32.vlgmr.msra.gmra.mxu0 %v5221_v14  ;;  %1374 = vmatmul.mubr.f32.vlgmr.msra.gmra.mxu1 %v5221_v14  ;;  %v5354_v14 = vld [vmem:[#allocation9 + $0x18] sm:$0xff] }
 0x476   :  { %1416 = vmatpush1.msra.mxu0 %v5099_v29  ;;  %1487 = vmatpush1.msra.mxu1 %v5102_v0  ;;  %6876 = vst [vmem:[#allocation43_spill] sm:$0xff] %v5354_v14 }
 0x477   :  { %1417 = vmatprep.subr.mxu0 %v5105_v38  ;;  %1488 = vmatprep.subr.mxu1 %v5108_v59 }
 0x478   :  { %1418 = vmatpush1.msra.mxu0 %v5111_v57  ;;  %1489 = vmatpush1.msra.mxu1 %v5114_v56 }
 0x479   :  { %1419 = vmatprep.subr.mxu0 %v5117_v55  ;;  %1490 = vmatprep.subr.mxu1 %v5120_v3 }
 0x47a   :  { %1420 = vmatpush1.msra.mxu0 %v5123_v2  ;;  %1491 = vmatpush1.msra.mxu1 %v5126_v60 }
 0x47b   :  { %1421 = vmatprep.subr.mxu0 %v5129_v58  ;;  %1492 = vmatprep.subr.mxu1 %v5132_v11 }
 0x47c   :  { %1422 = vmatpush1.msra.mxu0 %v5135_v47  ;;  %1493 = vmatpush1.msra.mxu1 %v5138_v27 }
 0x47d   :  { %1423 = vmatprep.subr.mxu0 %v5141_v28  ;;  %1494 = vmatprep.subr.mxu1 %v5144_v30 }
 0x47e   :  { %1424 = vmatpush1.msra.mxu0 %v6860_v15  ;;  %1495 = vmatpush1.msra.mxu1 %v6861_v16 }
 0x47f   :  { %1425 = vmatprep.subr.mxu0 %v5153_v63  ;;  %1496 = vmatprep.subr.mxu1 %v5156_v51 }
 0x480   :  { %1426 = vmatpush1.msra.mxu0 %v5159_v52  ;;  %1497 = vmatpush1.msra.mxu1 %v5162_v61 }
 0x481   :  { %1427 = vmatprep.subr.mxu0 %v5165_v31  ;;  %1498 = vmatprep.subr.mxu1 %v5168_v4 }
 0x482   :  { %1428 = vmatpush1.msra.mxu0 %v5249_v17  ;;  %1499 = vmatpush1.msra.mxu1 %v5252_v18 }
 0x483   :  { %1429 = vmatprep.subr.mxu0 %v5255_v19  ;;  %1500 = vmatprep.subr.mxu1 %v5258_v21 }
 0x484   :  { %1430 = vmatpush1.msra.mxu0 %v5261_v22  ;;  %1501 = vmatpush1.msra.mxu1 %v5264_v24 }
 0x485   :  { %1431 = vmatprep.subr.mxu0 %v5267_v1  ;;  %1502 = vmatprep.subr.mxu1 %v5270_v32 }
 0x486   :  { %1432 = vmatpush1.msra.mxu0 %v5273_v33  ;;  %1503 = vmatpush1.msra.mxu1 %v5276_v34 }
 0x487   :  { %1433 = vmatprep.subr.mxu0 %v5279_v35  ;;  %1504 = vmatprep.subr.mxu1 %v5282_v36 }
 0x488   :  { %1434 = vmatpush1.msra.mxu0 %v5285_v37  ;;  %1505 = vmatpush1.msra.mxu1 %v5288_v39 }
 0x489   :  { %1435 = vmatprep.subr.mxu0 %v5291_v40  ;;  %1506 = vmatprep.subr.mxu1 %v5294_v41 }
 0x48a   :  { %1436 = vmatpush1.msra.mxu0 %v5297_v42  ;;  %1507 = vmatpush1.msra.mxu1 %v5300_v43 }
 0x48b   :  { %1437 = vmatprep.subr.mxu0 %v5303_v44  ;;  %1508 = vmatprep.subr.mxu1 %v5306_v45 }
 0x48c   :  { %1438 = vmatpush1.msra.mxu0 %v5309_v46  ;;  %1509 = vmatpush1.msra.mxu1 %v5312_v48 }
 0x48d   :  { %1439 = vmatprep.subr.mxu0 %v5315_v49  ;;  %1510 = vmatprep.subr.mxu1 %v5318_v50  ;;  %v6882_v50 = vld [vmem:[#allocation61_spill] sm:$0xff] }
 0x48e   :  { %1440 = vmatpush1.msra.mxu0 %v5321_v20  ;;  %1511 = vmatpush1.msra.mxu1 %v5324_v62  ;;  %v6881_v20 = vld [vmem:[#allocation63_spill] sm:$0xff] }
 0x48f   :  { %1441 = vmatprep.subr.mxu0 %v5327_v54  ;;  %1512 = vmatprep.subr.mxu1 %v5330_v53 }
 0x490   :  { %1442 = vmatpush1.msra.mxu0 %v5333_v5  ;;  %1513 = vmatpush1.msra.mxu1 %v5336_v6  ;;  %v6880_v5 = vld [vmem:[#allocation62_spill] sm:$0xff] }
 0x491   :  { %1443 = vmatprep.subr.mxu0 %v5339_v7  ;;  %1514 = vmatprep.subr.mxu1 %v5342_v8  ;;  %v5357_v7 = vld [vmem:[#allocation9] sm:$0xff]  ;;  %v5361_v8 = vld [vmem:[#allocation9 + $0x10] sm:$0xff] }
 0x492   :  { %1444 = vmatpush1.msra.mxu0 %v5345_v9  ;;  %1515 = vmatpush1.msra.mxu1 %v5348_v12  ;;  %6877 = vst [vmem:[#allocation44_spill] sm:$0xff] %v5357_v7  ;;  %6878 = vst [vmem:[#allocation45_spill] sm:$0xff] %v5361_v8  ;;  %v6879_v12 = vld [vmem:[#allocation60_spill] sm:$0xff] }
 0x493   :  { %1445 = vmatprep.subr.mxu0 %v5351_v13  ;;  %1516 = vmatprep.subr.mxu1 %v5354_v14 }
 0x494   :  { %1446 = vmatpush1.msra.mxu0 %v5357_v7  ;;  %1479 = vmatprep.mubr.f32.mxu0 %v6844_v23 }
 0x495   :  { %1517 = vmatpush1.msra.mxu1 %v5361_v8  ;;  %1550 = vmatprep.mubr.f32.mxu1 %v6844_v23 }
 0x496   :  { %1592 = vmatprep.subr.mxu0 %v5081_v25  ;;  %1663 = vmatprep.subr.mxu1 %v5084_v26 }
 0x535   :  { %v1304_v13 = vpop.f32.mrf.mxu0  ;;  %v1375_v7 = vpop.f32.mrf.mxu1 }
 0x536   :  { %v1380_v9 = vadd.f32 %v1304_v13, %v6879_v12  ;;  %v1382_v23 = vadd.f32 %v1375_v7, %v6882_v50  ;;  %v6889_v7 = vld [vmem:[#allocation34_spill] sm:$0xff] }
 0x537   :  { %v1306_v14 = vpop.f32.mrf.mxu0  ;;  %v1377_v62 = vpop.f32.mrf.mxu1 }
 0x538   :  { %v3825_v6 = vmul.f32 -1.442695, %v1380_v9  ;;  %v1381_v53 = vadd.f32 %v1306_v14, %v6880_v5  ;;  %v1383_v8 = vadd.f32 %v1377_v62, %v6881_v20  ;;  %v6888_v62 = vld [vmem:[#allocation33_spill] sm:$0xff] }
 0x53a   :  { %3939 = vpow2.f32 %v3825_v6  ;;  %v3826_v54 = vmul.f32 -1.442695, %v1381_v53  ;;  %v3827_v49 = vmul.f32 -1.442695, %v1383_v8  ;;  %v6890_v8 = vld [vmem:[#allocation35_spill] sm:$0xff] }
 0x53c   :  { %3941 = vpow2.f32 %v3826_v54 }
 0x53d   :  { %3943 = vtanh.f32 %v1382_v23 }
 0x53e   :  { %3945 = vpow2.f32 %v3827_v49  ;;  %v6887_v49 = vld [vmem:[#allocation32_spill] sm:$0xff] }
 0x547   :  { %v3940_v25 = vpop.eup %3939 }
 0x548   :  { %v1387_v48 = vadd.f32 1.0, %v3940_v25 }
 0x549   :  { %v3942_v26 = vpop.eup %3941 }
 0x54a   :  { %3947 = vrcp.f32 %v1387_v48  ;;  %v1393_v12 = vadd.f32 1.0, %v3942_v26  ;;  %v3944_v9 = vpop.eup %3943  ;;  %v6884_v26 = vld [vmem:[#allocation51_spill] sm:$0xff] }
 0x54b   :  { %v3946_v14 = vpop.eup %3945  ;;  %v6886_v48 = vld [vmem:[#allocation31_spill] sm:$0xff] }
 0x54c   :  { %3949 = vrcp.f32 %v1393_v12  ;;  %v1400_v54 = vadd.f32 1.0, %v3946_v14  ;;  %v6891_v12 = vld [vmem:[#allocation36_spill] sm:$0xff]  ;;  %v6893_v14 = vld [vmem:[#allocation38_spill] sm:$0xff] }
 0x54e   :  { %3951 = vrcp.f32 %v1400_v54  ;;  %v6897_v54 = vld [vmem:[#allocation42_spill] sm:$0xff] }
 0x557   :  { %v3948_v5 = vpop.eup %3947 }
 0x558   :  { %v1404_v6 = vmul.f32 %v3948_v5, %v3944_v9  ;;  %v6892_v9 = vld [vmem:[#allocation37_spill] sm:$0xff]  ;;  %v6894_v5 = vld [vmem:[#allocation39_spill] sm:$0xff] }
 0x559   :  { %v3950_v53 = vpop.eup %3949 }
 0x55a   :  { %v1403_v13 = vmul.f32 %v3950_v53, %v5218_v10  ;;  %v6885_v10 = vld [vmem:[#allocation49_spill] sm:$0xff] }
 0x55b   :  { %v3952_v25 = vpop.eup %3951  ;;  %v6896_v53 = vld [vmem:[#allocation41_spill] sm:$0xff] }
 0x55c   :  { %v5372_v20 = vadd.f32 %v1404_v6, %v1403_v13  ;;  %v6895_v6 = vld [vmem:[#allocation40_spill] sm:$0xff]  ;;  %v6898_v13 = vld [vmem:[#allocation43_spill] sm:$0xff] }
 0x55e   :  { %3953 = vtanh.f32 %v5372_v20 }
 0x56b   :  { %v3954_v23 = vpop.eup %3953 }
 0x56c   :  { %v5375_v50 = vmul.f32 %v3954_v23, %v3952_v25  ;;  %v6899_v25 = vld [vmem:[#allocation44_spill] sm:$0xff]  ;;  %v6900_v23 = vmov 0.0  }
 0x56e   :  { %6883 = vst [vmem:[#allocation46_spill] sm:$0xff] %v5375_v50  ;;  %1480 = vmatmul.mubr.f32.vlgmr.msra.gmra.mxu0 %v5375_v50  ;;  %1551 = vmatmul.mubr.f32.vlgmr.msra.gmra.mxu1 %v5375_v50  ;;  %v6901_v50 = vld [vmem:[#allocation45_spill] sm:$0xff] }
 0x56f   :  { %1593 = vmatpush1.msra.mxu0 %v5099_v29  ;;  %1664 = vmatpush1.msra.mxu1 %v5102_v0 }
 0x570   :  { %1594 = vmatprep.subr.mxu0 %v5105_v38  ;;  %1665 = vmatprep.subr.mxu1 %v5108_v59 }
 0x571   :  { %1595 = vmatpush1.msra.mxu0 %v5111_v57  ;;  %1666 = vmatpush1.msra.mxu1 %v5114_v56 }
 0x572   :  { %1596 = vmatprep.subr.mxu0 %v5117_v55  ;;  %1667 = vmatprep.subr.mxu1 %v5120_v3 }
 0x573   :  { %1597 = vmatpush1.msra.mxu0 %v5123_v2  ;;  %1668 = vmatpush1.msra.mxu1 %v5126_v60 }
 0x574   :  { %1598 = vmatprep.subr.mxu0 %v5129_v58  ;;  %1669 = vmatprep.subr.mxu1 %v5132_v11 }
 0x575   :  { %1599 = vmatpush1.msra.mxu0 %v5135_v47  ;;  %1670 = vmatpush1.msra.mxu1 %v5138_v27 }
 0x576   :  { %1600 = vmatprep.subr.mxu0 %v5141_v28  ;;  %1671 = vmatprep.subr.mxu1 %v5144_v30 }
 0x577   :  { %1601 = vmatpush1.msra.mxu0 %v6860_v15  ;;  %1672 = vmatpush1.msra.mxu1 %v6861_v16 }
 0x578   :  { %1602 = vmatprep.subr.mxu0 %v5153_v63  ;;  %1673 = vmatprep.subr.mxu1 %v5156_v51 }
 0x579   :  { %1603 = vmatpush1.msra.mxu0 %v5159_v52  ;;  %1674 = vmatpush1.msra.mxu1 %v5162_v61 }
 0x57a   :  { %1604 = vmatprep.subr.mxu0 %v5165_v31  ;;  %1675 = vmatprep.subr.mxu1 %v5168_v4 }
 0x57b   :  { %1605 = vmatpush1.msra.mxu0 %v5249_v17  ;;  %1676 = vmatpush1.msra.mxu1 %v5252_v18 }
 0x57c   :  { %1606 = vmatprep.subr.mxu0 %v5255_v19  ;;  %1677 = vmatprep.subr.mxu1 %v5258_v21 }
 0x57d   :  { %1607 = vmatpush1.msra.mxu0 %v5261_v22  ;;  %1678 = vmatpush1.msra.mxu1 %v5264_v24 }
 0x57e   :  { %1608 = vmatprep.subr.mxu0 %v5267_v1  ;;  %1679 = vmatprep.subr.mxu1 %v5270_v32 }
 0x57f   :  { %1609 = vmatpush1.msra.mxu0 %v5273_v33  ;;  %1680 = vmatpush1.msra.mxu1 %v5276_v34 }
 0x580   :  { %1610 = vmatprep.subr.mxu0 %v5279_v35  ;;  %1681 = vmatprep.subr.mxu1 %v5282_v36 }
 0x581   :  { %1611 = vmatpush1.msra.mxu0 %v5285_v37  ;;  %1682 = vmatpush1.msra.mxu1 %v5288_v39 }
 0x582   :  { %1612 = vmatprep.subr.mxu0 %v5291_v40  ;;  %1683 = vmatprep.subr.mxu1 %v5294_v41 }
 0x583   :  { %1613 = vmatpush1.msra.mxu0 %v5297_v42  ;;  %1684 = vmatpush1.msra.mxu1 %v5300_v43 }
 0x584   :  { %1614 = vmatprep.subr.mxu0 %v5303_v44  ;;  %1685 = vmatprep.subr.mxu1 %v5306_v45 }
 0x585   :  { %1615 = vmatpush1.msra.mxu0 %v5309_v46  ;;  %1686 = vmatpush1.msra.mxu1 %v6884_v26 }
 0x586   :  { %1616 = vmatprep.subr.mxu0 %v6885_v10  ;;  %1687 = vmatprep.subr.mxu1 %v6886_v48  ;;  %v6907_v48 = vld [vmem:[#allocation65_spill] sm:$0xff] }
 0x587   :  { %1617 = vmatpush1.msra.mxu0 %v6887_v49  ;;  %1688 = vmatpush1.msra.mxu1 %v6888_v62  ;;  %v6906_v49 = vld [vmem:[#allocation67_spill] sm:$0xff] }
 0x588   :  { %1618 = vmatprep.subr.mxu0 %v6889_v7  ;;  %1689 = vmatprep.subr.mxu1 %v6890_v8 }
 0x589   :  { %1619 = vmatpush1.msra.mxu0 %v6891_v12  ;;  %1690 = vmatpush1.msra.mxu1 %v6892_v9  ;;  %v6902_v9 = vld [vmem:[#allocation28_spill] sm:$0xff] }
 0x58a   :  { %1620 = vmatprep.subr.mxu0 %v6893_v14  ;;  %1691 = vmatprep.subr.mxu1 %v6894_v5  ;;  %v6903_v14 = vld [vmem:[#allocation29_spill] sm:$0xff] }
 0x58b   :  { %1621 = vmatpush1.msra.mxu0 %v6895_v6  ;;  %1692 = vmatpush1.msra.mxu1 %v6896_v53  ;;  %v6904_v6 = vld [vmem:[#allocation64_spill] sm:$0xff] }
 0x58c   :  { %1622 = vmatprep.subr.mxu0 %v6897_v54  ;;  %1693 = vmatprep.subr.mxu1 %v6898_v13  ;;  %v6905_v54 = vld [vmem:[#allocation66_spill] sm:$0xff] }
 0x58d   :  { %1623 = vmatpush1.msra.mxu0 %v6899_v25  ;;  %1656 = vmatprep.mubr.f32.mxu0 %v6900_v23 }
 0x58e   :  { %1694 = vmatpush1.msra.mxu1 %v6901_v50  ;;  %1727 = vmatprep.mubr.f32.mxu1 %v6900_v23 }
 0x58f   :  { %1769 = vmatprep.subr.mxu0 %v6902_v9  ;;  %1840 = vmatprep.subr.mxu1 %v6903_v14 }
 0x62e   :  { %v1481_v5 = vpop.f32.mrf.mxu0  ;;  %v1552_v13 = vpop.f32.mrf.mxu1 }
 0x62f   :  { %v1557_v12 = vadd.f32 %v1481_v5, %v6904_v6  ;;  %v1559_v23 = vadd.f32 %v1552_v13, %v6907_v48 }
 0x630   :  { %v1483_v53 = vpop.f32.mrf.mxu0  ;;  %v1554_v62 = vpop.f32.mrf.mxu1 }
 0x631   :  { %v3828_v8 = vmul.f32 -1.442695, %v1557_v12  ;;  %v1558_v7 = vadd.f32 %v1483_v53, %v6905_v54  ;;  %v1560_v50 = vadd.f32 %v1554_v62, %v6906_v49 }
 0x633   :  { %3955 = vpow2.f32 %v3828_v8  ;;  %v3829_v25 = vmul.f32 -1.442695, %v1558_v7  ;;  %v3830_v10 = vmul.f32 -1.442695, %v1560_v50 }
 0x635   :  { %3957 = vpow2.f32 %v3829_v25 }
 0x636   :  { %3959 = vtanh.f32 %v1559_v23 }
 0x637   :  { %3961 = vpow2.f32 %v3830_v10 }
 0x640   :  { %v3956_v9 = vpop.eup %3955 }
 0x641   :  { %v1564_v26 = vadd.f32 1.0, %v3956_v9  ;;  %v2011_v9 = vld [vmem:[#allocation10 + $0x1e0] sm:$0xff] }
 0x642   :  { %v3958_v14 = vpop.eup %3957 }
 0x643   :  { %3963 = vrcp.f32 %v1564_v26  ;;  %v1570_v5 = vadd.f32 1.0, %v3958_v14  ;;  %v3960_v12 = vpop.eup %3959  ;;  %v2013_v14 = vld [vmem:[#allocation10 + $0x1f0] sm:$0xff] }
 0x644   :  { %v3962_v6 = vpop.eup %3961 }
 0x645   :  { %3965 = vrcp.f32 %v1570_v5  ;;  %v1577_v54 = vadd.f32 1.0, %v3962_v6  ;;  %v2008_v5 = vld [vmem:[#allocation10 + $0x1c8] sm:$0xff]  ;;  %v2007_v6 = vld [vmem:[#allocation10 + $0x1c0] sm:$0xff] }
 0x647   :  { %3967 = vrcp.f32 %v1577_v54  ;;  %v2003_v54 = vld [vmem:[#allocation10 + $0x1a0] sm:$0xff] }
 0x650   :  { %v3964_v8 = vpop.eup %3963 }
 0x651   :  { %v1581_v53 = vmul.f32 %v3964_v8, %v3960_v12  ;;  %v2010_v12 = vld [vmem:[#allocation10 + $0x1d8] sm:$0xff]  ;;  %v2009_v8 = vld [vmem:[#allocation10 + $0x1d0] sm:$0xff] }
 0x652   :  { %v3966_v7 = vpop.eup %3965 }
 0x653   :  { %v1580_v25 = vmul.f32 %v3966_v7, %v5372_v20  ;;  %v2006_v7 = vld [vmem:[#allocation10 + $0x1b8] sm:$0xff] }
 0x654   :  { %v3968_v50 = vpop.eup %3967 }
 0x655   :  { %v5450_v49 = vadd.f32 %v1581_v53, %v1580_v25  ;;  %v2004_v53 = vld [vmem:[#allocation10 + $0x1a8] sm:$0xff]  ;;  %v2005_v25 = vld [vmem:[#allocation10 + $0x1b0] sm:$0xff] }
 0x657   :  { %3969 = vtanh.f32 %v5450_v49 }
 0x664   :  { %v3970_v48 = vpop.eup %3969 }
 0x665   :  { %v5453_v62 = vmul.f32 %v3970_v48, %v3968_v50  ;;  %v2002_v50 = vld [vmem:[#allocation10 + $0x198] sm:$0xff]  ;;  %v1999_v48 = vld [vmem:[#allocation10 + $0x180] sm:$0xff] }
 0x667   :  { %1657 = vmatmul.mubr.f32.vlgmr.msra.gmra.mxu0 %v5453_v62  ;;  %1728 = vmatmul.mubr.f32.vlgmr.msra.gmra.mxu1 %v5453_v62 }
 0x668   :  { %1770 = vmatpush1.msra.mxu0 %v5099_v29  ;;  %1841 = vmatpush1.msra.mxu1 %v5102_v0  ;;  %v6910_v29 = vld [vmem:[#allocation31_spill] sm:$0xff]  ;;  %v6911_v0 = vld [vmem:[#allocation32_spill] sm:$0xff] }
 0x669   :  { %1771 = vmatprep.subr.mxu0 %v5105_v38  ;;  %1842 = vmatprep.subr.mxu1 %v5108_v59  ;;  %v6912_v38 = vld [vmem:[#allocation33_spill] sm:$0xff]  ;;  %v6913_v59 = vld [vmem:[#allocation34_spill] sm:$0xff] }
 0x66a   :  { %1772 = vmatpush1.msra.mxu0 %v5111_v57  ;;  %1843 = vmatpush1.msra.mxu1 %v5114_v56  ;;  %v6914_v57 = vld [vmem:[#allocation35_spill] sm:$0xff]  ;;  %v6915_v56 = vld [vmem:[#allocation36_spill] sm:$0xff] }
 0x66b   :  { %1773 = vmatprep.subr.mxu0 %v5117_v55  ;;  %1844 = vmatprep.subr.mxu1 %v5120_v3  ;;  %v6916_v55 = vld [vmem:[#allocation37_spill] sm:$0xff]  ;;  %v6917_v3 = vld [vmem:[#allocation38_spill] sm:$0xff] }
 0x66c   :  { %1774 = vmatpush1.msra.mxu0 %v5123_v2  ;;  %1845 = vmatpush1.msra.mxu1 %v5126_v60  ;;  %v6918_v2 = vld [vmem:[#allocation39_spill] sm:$0xff]  ;;  %v6919_v60 = vld [vmem:[#allocation40_spill] sm:$0xff] }
 0x66d   :  { %1775 = vmatprep.subr.mxu0 %v5129_v58  ;;  %1846 = vmatprep.subr.mxu1 %v5132_v11  ;;  %v6920_v58 = vld [vmem:[#allocation41_spill] sm:$0xff]  ;;  %v6921_v11 = vld [vmem:[#allocation42_spill] sm:$0xff] }
 0x66e   :  { %1776 = vmatpush1.msra.mxu0 %v5135_v47  ;;  %1847 = vmatpush1.msra.mxu1 %v5138_v27  ;;  %v6922_v47 = vld [vmem:[#allocation43_spill] sm:$0xff]  ;;  %v6923_v27 = vld [vmem:[#allocation44_spill] sm:$0xff] }
 0x66f   :  { %1777 = vmatprep.subr.mxu0 %v5141_v28  ;;  %1848 = vmatprep.subr.mxu1 %v5144_v30  ;;  %v6924_v28 = vld [vmem:[#allocation45_spill] sm:$0xff]  ;;  %v6925_v30 = vmov 0.0  }
 0x670   :  { %1778 = vmatpush1.msra.mxu0 %v6860_v15  ;;  %1849 = vmatpush1.msra.mxu1 %v6861_v16 }
 0x671   :  { %1779 = vmatprep.subr.mxu0 %v5153_v63  ;;  %1850 = vmatprep.subr.mxu1 %v5156_v51  ;;  %v6926_v51 = vld [vmem:[#allocation68_spill] sm:$0xff] }
 0x672   :  { %1780 = vmatpush1.msra.mxu0 %v5159_v52  ;;  %1851 = vmatpush1.msra.mxu1 %v5162_v61  ;;  %v6908_v61 = vld [vmem:[#allocation51_spill] sm:$0xff]  ;;  %v6909_v52 = vld [vmem:[#allocation49_spill] sm:$0xff] }
 0x673   :  { %1781 = vmatprep.subr.mxu0 %v5165_v31  ;;  %1852 = vmatprep.subr.mxu1 %v5168_v4  ;;  %v2012_v31 = vld [vmem:[#allocation10 + $0x1e8] sm:$0xff]  ;;  %v2014_v4 = vld [vmem:[#allocation10 + $0x1f8] sm:$0xff] }
 0x674   :  { %1782 = vmatpush1.msra.mxu0 %v5249_v17  ;;  %1853 = vmatpush1.msra.mxu1 %v5252_v18  ;;  %v6927_v18 = vld [vmem:[#allocation70_spill] sm:$0xff] }
 0x675   :  { %1783 = vmatprep.subr.mxu0 %v5255_v19  ;;  %1854 = vmatprep.subr.mxu1 %v5258_v21 }
 0x676   :  { %1784 = vmatpush1.msra.mxu0 %v5261_v22  ;;  %1855 = vmatpush1.msra.mxu1 %v5264_v24 }
 0x677   :  { %1785 = vmatprep.subr.mxu0 %v5267_v1  ;;  %1856 = vmatprep.subr.mxu1 %v5270_v32  ;;  %v6928_v1 = vld [vmem:[#allocation71_spill] sm:$0xff] }
 0x678   :  { %1786 = vmatpush1.msra.mxu0 %v5273_v33  ;;  %1857 = vmatpush1.msra.mxu1 %v5276_v34  ;;  %v6929_v33 = vld [vmem:[#allocation69_spill] sm:$0xff] }
 0x679   :  { %1787 = vmatprep.subr.mxu0 %v5279_v35  ;;  %1858 = vmatprep.subr.mxu1 %v5282_v36 }
 0x67a   :  { %1788 = vmatpush1.msra.mxu0 %v5285_v37  ;;  %1859 = vmatpush1.msra.mxu1 %v5288_v39 }
 0x67b   :  { %1789 = vmatprep.subr.mxu0 %v5291_v40  ;;  %1860 = vmatprep.subr.mxu1 %v5294_v41 }
 0x67c   :  { %1790 = vmatpush1.msra.mxu0 %v5297_v42  ;;  %1861 = vmatpush1.msra.mxu1 %v5300_v43 }
 0x67d   :  { %1791 = vmatprep.subr.mxu0 %v5303_v44  ;;  %1862 = vmatprep.subr.mxu1 %v5306_v45 }
 0x67e   :  { %1792 = vmatpush1.msra.mxu0 %v5309_v46  ;;  %1863 = vmatpush1.msra.mxu1 %v6908_v61  ;;  %v2001_v61 = vld [vmem:[#allocation10 + $0x190] sm:$0xff] }
 0x67f   :  { %1793 = vmatprep.subr.mxu0 %v6909_v52  ;;  %1864 = vmatprep.subr.mxu1 %v6910_v29  ;;  %v1996_v52 = vld [vmem:[#allocation10 + $0x168] sm:$0xff]  ;;  %v1998_v29 = vld [vmem:[#allocation10 + $0x178] sm:$0xff] }
 0x680   :  { %1794 = vmatpush1.msra.mxu0 %v6911_v0  ;;  %1865 = vmatpush1.msra.mxu1 %v6912_v38  ;;  %v1995_v0 = vld [vmem:[#allocation10 + $0x160] sm:$0xff]  ;;  %v1997_v38 = vld [vmem:[#allocation10 + $0x170] sm:$0xff] }
 0x681   :  { %1795 = vmatprep.subr.mxu0 %v6913_v59  ;;  %1866 = vmatprep.subr.mxu1 %v6914_v57  ;;  %v1992_v59 = vld [vmem:[#allocation10 + $0x148] sm:$0xff]  ;;  %v1994_v57 = vld [vmem:[#allocation10 + $0x158] sm:$0xff] }
 0x682   :  { %1796 = vmatpush1.msra.mxu0 %v6915_v56  ;;  %1867 = vmatpush1.msra.mxu1 %v6916_v55  ;;  %v1991_v56 = vld [vmem:[#allocation10 + $0x140] sm:$0xff]  ;;  %v1993_v55 = vld [vmem:[#allocation10 + $0x150] sm:$0xff] }
 0x683   :  { %1797 = vmatprep.subr.mxu0 %v6917_v3  ;;  %1868 = vmatprep.subr.mxu1 %v6918_v2  ;;  %v1988_v3 = vld [vmem:[#allocation10 + $0x128] sm:$0xff]  ;;  %v1990_v2 = vld [vmem:[#allocation10 + $0x138] sm:$0xff] }
 0x684   :  { %1798 = vmatpush1.msra.mxu0 %v6919_v60  ;;  %1869 = vmatpush1.msra.mxu1 %v6920_v58  ;;  %v1987_v60 = vld [vmem:[#allocation10 + $0x120] sm:$0xff]  ;;  %v1989_v58 = vld [vmem:[#allocation10 + $0x130] sm:$0xff] }
 0x685   :  { %1799 = vmatprep.subr.mxu0 %v6921_v11  ;;  %1870 = vmatprep.subr.mxu1 %v6922_v47  ;;  %v1984_v11 = vld [vmem:[#allocation10 + $0x108] sm:$0xff]  ;;  %v1986_v47 = vld [vmem:[#allocation10 + $0x118] sm:$0xff] }
 0x686   :  { %1800 = vmatpush1.msra.mxu0 %v6923_v27  ;;  %1871 = vmatpush1.msra.mxu1 %v6924_v28  ;;  %v1983_v27 = vld [vmem:[#allocation10 + $0x100] sm:$0xff]  ;;  %v1985_v28 = vld [vmem:[#allocation10 + $0x110] sm:$0xff] }
 0x687   :  { %1833 = vmatprep.mubr.f32.mxu0 %v6925_v30  ;;  %1904 = vmatprep.mubr.f32.mxu1 %v6925_v30 }
 0x688   :  { %2037 = vmatprep.subr.mxu0 %v2012_v31  ;;  %2150 = vmatprep.subr.mxu1 %v2014_v4  ;;  %v1980_v31 = vld [vmem:[#allocation10 + $0xe8] sm:$0xff]  ;;  %v1982_v4 = vld [vmem:[#allocation10 + $0xf8] sm:$0xff] }
 0x727   :  { %v1658_v63 = vpop.f32.mrf.mxu0  ;;  %v1729_v21 = vpop.f32.mrf.mxu1 }
 0x728   :  { %v1734_v15 = vadd.f32 %v1658_v63, %v6926_v51  ;;  %v1736_v34 = vadd.f32 %v1729_v21, %v6929_v33  ;;  %v1979_v63 = vld [vmem:[#allocation10 + $0xe0] sm:$0xff]  ;;  %v1981_v51 = vld [vmem:[#allocation10 + $0xf0] sm:$0xff]  ;;  %v1974_v21 = vld [vmem:[#allocation10 + $0xb8] sm:$0xff] }
 0x729   :  { %v1660_v16 = vpop.f32.mrf.mxu0  ;;  %v1731_v24 = vpop.f32.mrf.mxu1  ;;  %v1967_v33 = vld [vmem:[#allocation10 + $0x80] sm:$0xff] }
 0x72a   :  { %v3831_v17 = vmul.f32 -1.442695, %v1734_v15  ;;  %v1735_v19 = vadd.f32 %v1660_v16, %v6927_v18  ;;  %v1737_v32 = vadd.f32 %v1731_v24, %v6928_v1  ;;  %v1976_v15 = vld [vmem:[#allocation10 + $0xc8] sm:$0xff]  ;;  %v1978_v16 = vld [vmem:[#allocation10 + $0xd8] sm:$0xff]  ;;  %v1977_v18 = vld [vmem:[#allocation10 + $0xd0] sm:$0xff] }
 0x72b   :  { %v1973_v24 = vld [vmem:[#allocation10 + $0xb0] sm:$0xff]  ;;  %v1968_v1 = vld [vmem:[#allocation10 + $0x88] sm:$0xff] }
 0x72c   :  { %3971 = vpow2.f32 %v3831_v17  ;;  %v3832_v22 = vmul.f32 -1.442695, %v1735_v19  ;;  %v3833_v35 = vmul.f32 -1.442695, %v1737_v32  ;;  %v1975_v17 = vld [vmem:[#allocation10 + $0xc0] sm:$0xff]  ;;  %v1972_v19 = vld [vmem:[#allocation10 + $0xa8] sm:$0xff] }
 0x72d   :  { %v1970_v32 = vld [vmem:[#allocation10 + $0x98] sm:$0xff] }
 0x72e   :  { %3973 = vpow2.f32 %v3832_v22  ;;  %v1971_v22 = vld [vmem:[#allocation10 + $0xa0] sm:$0xff] }
 0x72f   :  { %3975 = vtanh.f32 %v1736_v34  ;;  %v1969_v34 = vld [vmem:[#allocation10 + $0x90] sm:$0xff] }
 0x730   :  { %3977 = vpow2.f32 %v3833_v35  ;;  %v1964_v35 = vld [vmem:[#allocation10 + $0x68] sm:$0xff] }
 0x739   :  { %v3972_v36 = vpop.eup %3971 }
 0x73a   :  { %v1741_v37 = vadd.f32 1.0, %v3972_v36  ;;  %v1966_v36 = vld [vmem:[#allocation10 + $0x78] sm:$0xff] }
 0x73b   :  { %v3974_v39 = vpop.eup %3973 }
 0x73c   :  { %3979 = vrcp.f32 %v1741_v37  ;;  %v1747_v40 = vadd.f32 1.0, %v3974_v39  ;;  %v3976_v41 = vpop.eup %3975  ;;  %v1963_v37 = vld [vmem:[#allocation10 + $0x60] sm:$0xff]  ;;  %v1965_v39 = vld [vmem:[#allocation10 + $0x70] sm:$0xff] }
 0x73d   :  { %v3978_v42 = vpop.eup %3977 }
 0x73e   :  { %3981 = vrcp.f32 %v1747_v40  ;;  %v1754_v46 = vadd.f32 1.0, %v3978_v42  ;;  %v1960_v40 = vld [vmem:[#allocation10 + $0x48] sm:$0xff]  ;;  %v1959_v42 = vld [vmem:[#allocation10 + $0x40] sm:$0xff] }
 0x740   :  { %3983 = vrcp.f32 %v1754_v46  ;;  %v1955_v46 = vld [vmem:[#allocation10 + $0x20] sm:$0xff] }
 0x749   :  { %v3980_v43 = vpop.eup %3979 }
 0x74a   :  { %v1758_v44 = vmul.f32 %v3980_v43, %v3976_v41  ;;  %v1962_v41 = vld [vmem:[#allocation10 + $0x58] sm:$0xff]  ;;  %v1961_v43 = vld [vmem:[#allocation10 + $0x50] sm:$0xff] }
 0x74b   :  { %v3982_v45 = vpop.eup %3981 }
 0x74c   :  { %v1757_v20 = vmul.f32 %v3982_v45, %v5450_v49  ;;  %v2000_v49 = vld [vmem:[#allocation10 + $0x188] sm:$0xff]  ;;  %v1958_v45 = vld [vmem:[#allocation10 + $0x38] sm:$0xff] }
 0x74d   :  { %v3984_v10 = vpop.eup %3983 }
 0x74e   :  { %v5526_v26 = vadd.f32 %v1758_v44, %v1757_v20  ;;  %v1956_v44 = vld [vmem:[#allocation10 + $0x28] sm:$0xff]  ;;  %v1957_v20 = vld [vmem:[#allocation10 + $0x30] sm:$0xff] }
 0x750   :  { %3985 = vtanh.f32 %v5526_v26 }
 0x75d   :  { %v3986_v13 = vpop.eup %3985 }
 0x75e   :  { %v5529_v23 = vmul.f32 %v3986_v13, %v3984_v10  ;;  %v1952_v10 = vld [vmem:[#allocation10 + $0x8] sm:$0xff]  ;;  %v1954_v13 = vld [vmem:[#allocation10 + $0x18] sm:$0xff] }
 0x760   :  { %1834 = vmatmul.mubr.f32.vlgmr.msra.gmra.mxu0 %v5529_v23  ;;  %1905 = vmatmul.mubr.f32.vlgmr.msra.gmra.mxu1 %v5529_v23 }
 0x761   :  { %2038 = vmatpush1.msra.mxu0 %v2011_v9  ;;  %2151 = vmatpush1.msra.mxu1 %v2013_v14  ;;  %v1951_v9 = vld [vmem:[#allocation10] sm:$0xff]  ;;  %v1953_v14 = vld [vmem:[#allocation10 + $0x10] sm:$0xff] }
 0x762   :  { %2039 = vmatprep.subr.mxu0 %v2008_v5  ;;  %2152 = vmatprep.subr.mxu1 %v2010_v12  ;;  %v6930_v5 = vld [vmem:[#allocation76_spill] sm:$0xff]  ;;  %v6931_v12 = vld [vmem:[#allocation27_spill] sm:$0xff] }
 0x763   :  { %2040 = vmatpush1.msra.mxu0 %v2007_v6  ;;  %2153 = vmatpush1.msra.mxu1 %v2009_v8  ;;  %v6932_v6 = vld [vmem:[#allocation30_spill] sm:$0xff] }
 0x764   :  { %2041 = vmatprep.subr.mxu0 %v2004_v53  ;;  %2154 = vmatprep.subr.mxu1 %v2006_v7  ;;  %v6933_v8 = vld [vmem:[#allocation50_spill] sm:$0xff] }
 0x765   :  { %2042 = vmatpush1.msra.mxu0 %v2003_v54  ;;  %2155 = vmatpush1.msra.mxu1 %v2005_v25  ;;  %v6934_v53 = vld [vmem:[#allocation46_spill] sm:$0xff]  ;;  %v5565_v54 = vld [vmem:[#allocation12 + $0x1f8] sm:$0xff]  ;;  %v5571_v25 = vld [vmem:[#allocation12 + $0x1f0] sm:$0xff] }
 0x766   :  { %2043 = vmatprep.subr.mxu0 %v2000_v49  ;;  %2156 = vmatprep.subr.mxu1 %v2002_v50  ;;  %v5563_v7 = vld [vmem:[#allocation12 + $0x1e8] sm:$0xff]  ;;  %6936 = vst [vmem:[#allocation52_spill] sm:$0xff] %v5565_v54  ;;  %v5577_v49 = vld [vmem:[#allocation12 + $0x1d8] sm:$0xff]  ;;  %v5581_v50 = vld [vmem:[#allocation12 + $0x1c0] sm:$0xff] }
 0x767   :  { %2044 = vmatpush1.msra.mxu0 %v1999_v48  ;;  %2157 = vmatpush1.msra.mxu1 %v2001_v61  ;;  %6935 = vst [vmem:[#allocation47_spill] sm:$0xff] %v5563_v7  ;;  %v5583_v48 = vld [vmem:[#allocation12 + $0x1d0] sm:$0xff]  ;;  %v5587_v61 = vld [vmem:[#allocation12 + $0x1a8] sm:$0xff] }
 0x768   :  { %2045 = vmatprep.subr.mxu0 %v1996_v52  ;;  %2158 = vmatprep.subr.mxu1 %v1998_v29  ;;  %v5589_v52 = vld [vmem:[#allocation12 + $0x1b8] sm:$0xff]  ;;  %v5593_v29 = vld [vmem:[#allocation12 + $0x1a0] sm:$0xff] }
 0x769   :  { %2046 = vmatpush1.msra.mxu0 %v1995_v0  ;;  %2159 = vmatpush1.msra.mxu1 %v1997_v38  ;;  %v5595_v0 = vld [vmem:[#allocation12 + $0x1b0] sm:$0xff]  ;;  %v5599_v38 = vld [vmem:[#allocation12 + $0x188] sm:$0xff] }
 0x76a   :  { %2047 = vmatprep.subr.mxu0 %v1992_v59  ;;  %2160 = vmatprep.subr.mxu1 %v1994_v57  ;;  %v5601_v59 = vld [vmem:[#allocation12 + $0x198] sm:$0xff]  ;;  %v5605_v57 = vld [vmem:[#allocation12 + $0x180] sm:$0xff] }
 0x76b   :  { %2048 = vmatpush1.msra.mxu0 %v1991_v56  ;;  %2161 = vmatpush1.msra.mxu1 %v1993_v55  ;;  %v5607_v56 = vld [vmem:[#allocation12 + $0x190] sm:$0xff]  ;;  %v5611_v55 = vld [vmem:[#allocation12 + $0x168] sm:$0xff] }
 0x76c   :  { %2049 = vmatprep.subr.mxu0 %v1988_v3  ;;  %2162 = vmatprep.subr.mxu1 %v1990_v2  ;;  %v5613_v3 = vld [vmem:[#allocation12 + $0x178] sm:$0xff]  ;;  %v5617_v2 = vld [vmem:[#allocation12 + $0x160] sm:$0xff] }
 0x76d   :  { %2050 = vmatpush1.msra.mxu0 %v1987_v60  ;;  %2163 = vmatpush1.msra.mxu1 %v1989_v58  ;;  %v5619_v60 = vld [vmem:[#allocation12 + $0x170] sm:$0xff]  ;;  %v5623_v58 = vld [vmem:[#allocation12 + $0x148] sm:$0xff] }
 0x76e   :  { %2051 = vmatprep.subr.mxu0 %v1984_v11  ;;  %2164 = vmatprep.subr.mxu1 %v1986_v47  ;;  %v5625_v11 = vld [vmem:[#allocation12 + $0x158] sm:$0xff]  ;;  %v5629_v47 = vld [vmem:[#allocation12 + $0x140] sm:$0xff] }
 0x76f   :  { %2052 = vmatpush1.msra.mxu0 %v1983_v27  ;;  %2165 = vmatpush1.msra.mxu1 %v1985_v28  ;;  %v5631_v27 = vld [vmem:[#allocation12 + $0x150] sm:$0xff]  ;;  %v5635_v28 = vld [vmem:[#allocation12 + $0x128] sm:$0xff] }
 0x770   :  { %2053 = vmatprep.subr.mxu0 %v1980_v31  ;;  %2166 = vmatprep.subr.mxu1 %v1982_v4  ;;  %v5637_v31 = vld [vmem:[#allocation12 + $0x138] sm:$0xff]  ;;  %v5641_v4 = vld [vmem:[#allocation12 + $0x120] sm:$0xff] }
 0x771   :  { %2054 = vmatpush1.msra.mxu0 %v1979_v63  ;;  %2167 = vmatpush1.msra.mxu1 %v1981_v51  ;;  %v5643_v63 = vld [vmem:[#allocation12 + $0x130] sm:$0xff]  ;;  %v5647_v51 = vld [vmem:[#allocation12 + $0x108] sm:$0xff] }
 0x772   :  { %2055 = vmatprep.subr.mxu0 %v1976_v15  ;;  %2168 = vmatprep.subr.mxu1 %v1978_v16  ;;  %v5649_v15 = vld [vmem:[#allocation12 + $0x118] sm:$0xff]  ;;  %v5653_v16 = vld [vmem:[#allocation12 + $0x100] sm:$0xff] }
 0x773   :  { %2056 = vmatpush1.msra.mxu0 %v1975_v17  ;;  %2169 = vmatpush1.msra.mxu1 %v1977_v18  ;;  %v5655_v17 = vld [vmem:[#allocation12 + $0x110] sm:$0xff]  ;;  %v5659_v18 = vld [vmem:[#allocation12 + $0xe8] sm:$0xff] }
 0x774   :  { %2057 = vmatprep.subr.mxu0 %v1972_v19  ;;  %2170 = vmatprep.subr.mxu1 %v1974_v21  ;;  %v5661_v19 = vld [vmem:[#allocation12 + $0xf8] sm:$0xff]  ;;  %v5665_v21 = vld [vmem:[#allocation12 + $0xe0] sm:$0xff] }
 0x775   :  { %2058 = vmatpush1.msra.mxu0 %v1971_v22  ;;  %2171 = vmatpush1.msra.mxu1 %v1973_v24  ;;  %v5667_v22 = vld [vmem:[#allocation12 + $0xf0] sm:$0xff]  ;;  %v5671_v24 = vld [vmem:[#allocation12 + $0xc8] sm:$0xff] }
 0x776   :  { %2059 = vmatprep.subr.mxu0 %v1968_v1  ;;  %2172 = vmatprep.subr.mxu1 %v1970_v32  ;;  %v5673_v1 = vld [vmem:[#allocation12 + $0xd8] sm:$0xff]  ;;  %v5677_v32 = vld [vmem:[#allocation12 + $0xc0] sm:$0xff] }
 0x777   :  { %2060 = vmatpush1.msra.mxu0 %v1967_v33  ;;  %2173 = vmatpush1.msra.mxu1 %v1969_v34  ;;  %v5679_v33 = vld [vmem:[#allocation12 + $0xd0] sm:$0xff]  ;;  %v5683_v34 = vld [vmem:[#allocation12 + $0xa8] sm:$0xff] }
 0x778   :  { %2061 = vmatprep.subr.mxu0 %v1964_v35  ;;  %2174 = vmatprep.subr.mxu1 %v1966_v36  ;;  %v5685_v35 = vld [vmem:[#allocation12 + $0xb8] sm:$0xff]  ;;  %v5689_v36 = vld [vmem:[#allocation12 + $0xa0] sm:$0xff] }
 0x779   :  { %2062 = vmatpush1.msra.mxu0 %v1963_v37  ;;  %2175 = vmatpush1.msra.mxu1 %v1965_v39  ;;  %v5691_v37 = vld [vmem:[#allocation12 + $0xb0] sm:$0xff]  ;;  %v5695_v39 = vld [vmem:[#allocation12 + $0x88] sm:$0xff] }
 0x77a   :  { %2063 = vmatprep.subr.mxu0 %v1960_v40  ;;  %2176 = vmatprep.subr.mxu1 %v1962_v41  ;;  %6937 = vst [vmem:[#allocation54_spill] sm:$0xff] %v5691_v37  ;;  %6938 = vst [vmem:[#allocation55_spill] sm:$0xff] %v5695_v39  ;;  %v5697_v40 = vld [vmem:[#allocation12 + $0x98] sm:$0xff]  ;;  %v5701_v41 = vld [vmem:[#allocation12 + $0x80] sm:$0xff] }
 0x77b   :  { %2064 = vmatpush1.msra.mxu0 %v1959_v42  ;;  %2177 = vmatpush1.msra.mxu1 %v1961_v43  ;;  %6939 = vst [vmem:[#allocation53_spill] sm:$0xff] %v5697_v40  ;;  %6940 = vst [vmem:[#allocation56_spill] sm:$0xff] %v5701_v41  ;;  %v5703_v42 = vld [vmem:[#allocation12 + $0x90] sm:$0xff]  ;;  %v5707_v43 = vld [vmem:[#allocation12 + $0x68] sm:$0xff] }
 0x77c   :  { %2065 = vmatprep.subr.mxu0 %v1956_v44  ;;  %2178 = vmatprep.subr.mxu1 %v1958_v45  ;;  %6941 = vst [vmem:[#allocation58_spill] sm:$0xff] %v5703_v42  ;;  %6942 = vst [vmem:[#allocation59_spill] sm:$0xff] %v5707_v43  ;;  %v5709_v44 = vld [vmem:[#allocation12 + $0x78] sm:$0xff]  ;;  %v5713_v45 = vld [vmem:[#allocation12 + $0x60] sm:$0xff] }
 0x77d   :  { %2066 = vmatpush1.msra.mxu0 %v1955_v46  ;;  %2179 = vmatpush1.msra.mxu1 %v1957_v20  ;;  %6943 = vst [vmem:[#allocation57_spill] sm:$0xff] %v5709_v44  ;;  %6944 = vst [vmem:[#allocation25_spill] sm:$0xff] %v5713_v45  ;;  %v5715_v46 = vld [vmem:[#allocation12 + $0x70] sm:$0xff]  ;;  %v5719_v20 = vld [vmem:[#allocation12 + $0x48] sm:$0xff] }
 0x77e   :  { %2067 = vmatprep.subr.mxu0 %v1952_v10  ;;  %2180 = vmatprep.subr.mxu1 %v1954_v13  ;;  %6945 = vst [vmem:[#allocation26_spill] sm:$0xff] %v5715_v46  ;;  %6946 = vst [vmem:[#allocation60_spill] sm:$0xff] %v5719_v20  ;;  %v5721_v10 = vld [vmem:[#allocation12 + $0x58] sm:$0xff]  ;;  %v5725_v13 = vld [vmem:[#allocation12 + $0x40] sm:$0xff] }
 0x77f   :  { %2068 = vmatpush1.msra.mxu0 %v1951_v9  ;;  %2101 = vmatprep.mubr.f32.mxu0 %v6925_v30  ;;  %6947 = vst [vmem:[#allocation62_spill] sm:$0xff] %v5721_v10  ;;  %6948 = vst [vmem:[#allocation63_spill] sm:$0xff] %v5725_v13  ;;  %v5727_v9 = vld [vmem:[#allocation12 + $0x50] sm:$0xff] }
 0x780   :  { %2181 = vmatpush1.msra.mxu1 %v1953_v14  ;;  %2214 = vmatprep.mubr.f32.mxu1 %v6925_v30  ;;  %6949 = vst [vmem:[#allocation61_spill] sm:$0xff] %v5727_v9  ;;  %v5731_v14 = vld [vmem:[#allocation12 + $0x28] sm:$0xff] }
 0x781   :  { %2102 = vmatmul.mubr.f32.vlgmr.msra.gmra.mxu0 %v6930_v5  ;;  %2215 = vmatmul.mubr.f32.vlgmr.msra.gmra.mxu1 %v6930_v5  ;;  %6950 = vst [vmem:[#allocation28_spill] sm:$0xff] %v5731_v14  ;;  %v5733_v5 = vld [vmem:[#allocation12 + $0x38] sm:$0xff] }
 0x782   :  { %2107 = vmatprep.mubr.f32.mxu0 %v6925_v30  ;;  %2220 = vmatprep.mubr.f32.mxu1 %v6925_v30  ;;  %6951 = vst [vmem:[#allocation29_spill] sm:$0xff] %v5733_v5 }
 0x783   :  { %2365 = vmatprep.subr.mxu0 %v5563_v7  ;;  %2436 = vmatprep.subr.mxu1 %v5565_v54 }
 0x784   :  { %2437 = vmatpush1.msra.mxu1 %v5571_v25 }
 0x785   :  { %2108 = vmatmul.mubr.f32.gmra.mxu0 %v6931_v12  ;;  %2221 = vmatmul.mubr.f32.gmra.mxu1 %v6931_v12  ;;  %v5737_v12 = vld [vmem:[#allocation12 + $0x20] sm:$0xff] }
 0x786   :  { %2113 = vmatprep.mubr.f32.mxu0 %v6925_v30  ;;  %2226 = vmatprep.mubr.f32.mxu1 %v6925_v30  ;;  %6952 = vst [vmem:[#allocation64_spill] sm:$0xff] %v5737_v12 }
 0x787   :  { %2438 = vmatprep.subr.mxu1 %v5577_v49 }
 0x788   :  { %2439 = vmatpush1.msra.mxu1 %v5583_v48 }
 0x789   :  { %2114 = vmatmul.mubr.f32.gmra.mxu0 %v6932_v6  ;;  %2227 = vmatmul.mubr.f32.gmra.mxu1 %v6932_v6  ;;  %v5739_v6 = vld [vmem:[#allocation12 + $0x30] sm:$0xff] }
 0x78a   :  { %2119 = vmatprep.mubr.f32.mxu0 %v6925_v30  ;;  %2232 = vmatprep.mubr.f32.mxu1 %v6925_v30  ;;  %6953 = vst [vmem:[#allocation66_spill] sm:$0xff] %v5739_v6 }
 0x78b   :  { %2440 = vmatprep.subr.mxu1 %v5589_v52 }
 0x78c   :  { %2441 = vmatpush1.msra.mxu1 %v5595_v0 }
 0x78d   :  { %2120 = vmatmul.mubr.f32.gmra.mxu0 %v6933_v8  ;;  %2233 = vmatmul.mubr.f32.gmra.mxu1 %v6933_v8  ;;  %v5743_v8 = vld [vmem:[#allocation12 + $0x8] sm:$0xff] }
 0x78e   :  { %2125 = vmatprep.mubr.f32.mxu0 %v6925_v30  ;;  %2238 = vmatprep.mubr.f32.mxu1 %v6925_v30  ;;  %6954 = vst [vmem:[#allocation67_spill] sm:$0xff] %v5743_v8 }
 0x78f   :  { %2442 = vmatprep.subr.mxu1 %v5601_v59 }
 0x790   :  { %2443 = vmatpush1.msra.mxu1 %v5607_v56 }
 0x791   :  { %2126 = vmatmul.mubr.f32.gmra.mxu0 %v6934_v53  ;;  %2239 = vmatmul.mubr.f32.gmra.mxu1 %v6934_v53  ;;  %v5745_v53 = vld [vmem:[#allocation12 + $0x18] sm:$0xff] }
 0x792   :  { %2131 = vmatprep.mubr.f32.mxu0 %v6925_v30  ;;  %2244 = vmatprep.mubr.f32.mxu1 %v6925_v30  ;;  %6955 = vst [vmem:[#allocation65_spill] sm:$0xff] %v5745_v53 }
 0x793   :  { %2444 = vmatprep.subr.mxu1 %v5613_v3 }
 0x794   :  { %2445 = vmatpush1.msra.mxu1 %v5619_v60 }
 0x795   :  { %2132 = vmatmul.mubr.f32.gmra.mxu0 %v5453_v62  ;;  %2245 = vmatmul.mubr.f32.gmra.mxu1 %v5453_v62  ;;  %v5569_v62 = vld [vmem:[#allocation12 + $0x1e0] sm:$0xff] }
 0x796   :  { %2137 = vmatprep.mubr.f32.mxu0 %v6925_v30  ;;  %2250 = vmatprep.mubr.f32.mxu1 %v6925_v30 }
 0x797   :  { %2366 = vmatpush1.msra.mxu0 %v5569_v62  ;;  %2446 = vmatprep.subr.mxu1 %v5625_v11 }
 0x798   :  { %2447 = vmatpush1.msra.mxu1 %v5631_v27 }
 0x799   :  { %2138 = vmatmul.mubr.f32.gmra.mxu0 %v5529_v23  ;;  %2251 = vmatmul.mubr.f32.gmra.mxu1 %v5529_v23  ;;  %v5575_v23 = vld [vmem:[#allocation12 + $0x1c8] sm:$0xff] }
 0x79a   :  { %2143 = vmatprep.mubr.f32.mxu0 %v6925_v30  ;;  %2256 = vmatprep.mubr.f32.mxu1 %v6925_v30 }
 0x79b   :  { %2367 = vmatprep.subr.mxu0 %v5575_v23  ;;  %2448 = vmatprep.subr.mxu1 %v5637_v31 }
 0x79c   :  { %2368 = vmatpush1.msra.mxu0 %v5581_v50  ;;  %2449 = vmatpush1.msra.mxu1 %v5643_v63 }
 0x79d   :  { %2369 = vmatprep.subr.mxu0 %v5587_v61  ;;  %2450 = vmatprep.subr.mxu1 %v5649_v15 }
 0x79e   :  { %2370 = vmatpush1.msra.mxu0 %v5593_v29  ;;  %2451 = vmatpush1.msra.mxu1 %v5655_v17 }
 0x79f   :  { %2371 = vmatprep.subr.mxu0 %v5599_v38  ;;  %2452 = vmatprep.subr.mxu1 %v5661_v19 }
 0x7a0   :  { %2372 = vmatpush1.msra.mxu0 %v5605_v57  ;;  %2453 = vmatpush1.msra.mxu1 %v5667_v22 }
 0x7a1   :  { %2373 = vmatprep.subr.mxu0 %v5611_v55  ;;  %2454 = vmatprep.subr.mxu1 %v5673_v1 }
 0x7a2   :  { %2374 = vmatpush1.msra.mxu0 %v5617_v2  ;;  %2455 = vmatpush1.msra.mxu1 %v5679_v33 }
 0x7a3   :  { %2375 = vmatprep.subr.mxu0 %v5623_v58  ;;  %2456 = vmatprep.subr.mxu1 %v5685_v35 }
 0x7a4   :  { %2376 = vmatpush1.msra.mxu0 %v5629_v47  ;;  %2457 = vmatpush1.msra.mxu1 %v5691_v37 }
 0x7a5   :  { %2377 = vmatprep.subr.mxu0 %v5635_v28  ;;  %2458 = vmatprep.subr.mxu1 %v5697_v40 }
 0x7a6   :  { %2378 = vmatpush1.msra.mxu0 %v5641_v4  ;;  %2459 = vmatpush1.msra.mxu1 %v5703_v42 }
 0x7a7   :  { %2379 = vmatprep.subr.mxu0 %v5647_v51  ;;  %2460 = vmatprep.subr.mxu1 %v5709_v44  ;;  %v6960_v44 = vld [vmem:[#allocation75_spill] sm:$0xff] }
 0x7a8   :  { %2380 = vmatpush1.msra.mxu0 %v5653_v16  ;;  %2461 = vmatpush1.msra.mxu1 %v5715_v46 }
 0x7a9   :  { %2381 = vmatprep.subr.mxu0 %v5659_v18  ;;  %2462 = vmatprep.subr.mxu1 %v5721_v10 }
 0x7aa   :  { %2382 = vmatpush1.msra.mxu0 %v5665_v21  ;;  %2463 = vmatpush1.msra.mxu1 %v5727_v9  ;;  %v5747_v9 = vld [vmem:[#allocation12] sm:$0xff] }
 0x7ab   :  { %2383 = vmatprep.subr.mxu0 %v5671_v24  ;;  %2464 = vmatprep.subr.mxu1 %v5733_v5  ;;  %6956 = vst [vmem:[#allocation51_spill] sm:$0xff] %v5747_v9 }
 0x7ac   :  { %2384 = vmatpush1.msra.mxu0 %v5677_v32  ;;  %2465 = vmatpush1.msra.mxu1 %v5739_v6 }
 0x7ad   :  { %2385 = vmatprep.subr.mxu0 %v5683_v34  ;;  %2466 = vmatprep.subr.mxu1 %v5745_v53 }
 0x7ae   :  { %2386 = vmatpush1.msra.mxu0 %v5689_v36 }
 0x7af   :  { %2387 = vmatprep.subr.mxu0 %v5695_v39 }
 0x7b0   :  { %2388 = vmatpush1.msra.mxu0 %v5701_v41 }
 0x7b1   :  { %2389 = vmatprep.subr.mxu0 %v5707_v43  ;;  %v6961_v43 = vld [vmem:[#allocation73_spill] sm:$0xff] }
 0x7b2   :  { %2390 = vmatpush1.msra.mxu0 %v5713_v45 }
 0x7b3   :  { %2391 = vmatprep.subr.mxu0 %v5719_v20  ;;  %v6959_v20 = vld [vmem:[#allocation74_spill] sm:$0xff] }
 0x7b4   :  { %2392 = vmatpush1.msra.mxu0 %v5725_v13 }
 0x7b5   :  { %2393 = vmatprep.subr.mxu0 %v5731_v14  ;;  %v5751_v14 = vld [vmem:[#allocation12 + $0x10] sm:$0xff] }
 0x7b6   :  { %2394 = vmatpush1.msra.mxu0 %v5737_v12  ;;  %6957 = vst [vmem:[#allocation49_spill] sm:$0xff] %v5751_v14  ;;  %2467 = vmatpush1.msra.mxu1 %v5751_v14  ;;  %v6958_v12 = vld [vmem:[#allocation72_spill] sm:$0xff] }
 0x7b7   :  { %2395 = vmatprep.subr.mxu0 %v5743_v8  ;;  %2610 = vmatprep.subr.mxu1 %v5565_v54 }
 0x7b8   :  { %2396 = vmatpush1.msra.mxu0 %v5747_v9 }
 0x7b9   :  { %2539 = vmatprep.subr.mxu0 %v5563_v7 }
 0x820   :  { %v1835_v6 = vpop.f32.mrf.mxu0  ;;  %v1906_v8 = vpop.f32.mrf.mxu1 }
 0x821   :  { %v1911_v5 = vadd.f32 %v1835_v6, %v6958_v12  ;;  %v1913_v14 = vadd.f32 %v1906_v8, %v6961_v43  ;;  %v6968_v8 = vld [vmem:[#allocation60_spill] sm:$0xff] }
 0x822   :  { %v1837_v13 = vpop.f32.mrf.mxu0  ;;  %v1908_v45 = vpop.f32.mrf.mxu1 }
 0x823   :  { %v3834_v10 = vmul.f32 -1.442695, %v1911_v5  ;;  %v1912_v46 = vadd.f32 %v1837_v13, %v6959_v20  ;;  %v1914_v9 = vadd.f32 %v1908_v45, %v6960_v44 }
 0x825   :  { %3987 = vpow2.f32 %v3834_v10  ;;  %v3835_v53 = vmul.f32 -1.442695, %v1912_v46  ;;  %v3836_v42 = vmul.f32 -1.442695, %v1914_v9  ;;  %v6966_v9 = vld [vmem:[#allocation25_spill] sm:$0xff] }
 0x827   :  { %3989 = vpow2.f32 %v3835_v53 }
 0x828   :  { %3991 = vtanh.f32 %v1913_v14  ;;  %v6967_v14 = vld [vmem:[#allocation26_spill] sm:$0xff] }
 0x829   :  { %3993 = vpow2.f32 %v3836_v42  ;;  %v6965_v42 = vld [vmem:[#allocation57_spill] sm:$0xff] }
 0x832   :  { %v3988_v7 = vpop.eup %3987 }
 0x833   :  { %v1918_v41 = vadd.f32 1.0, %v3988_v7 }
 0x834   :  { %v3990_v54 = vpop.eup %3989 }
 0x835   :  { %3995 = vrcp.f32 %v1918_v41  ;;  %v1924_v12 = vadd.f32 1.0, %v3990_v54  ;;  %v3992_v5 = vpop.eup %3991  ;;  %v6963_v54 = vld [vmem:[#allocation58_spill] sm:$0xff]  ;;  %v6964_v41 = vld [vmem:[#allocation59_spill] sm:$0xff] }
 0x836   :  { %v3994_v20 = vpop.eup %3993 }
 0x837   :  { %3997 = vrcp.f32 %v1924_v12  ;;  %v1931_v6 = vadd.f32 1.0, %v3994_v20  ;;  %v6969_v12 = vld [vmem:[#allocation62_spill] sm:$0xff]  ;;  %v6971_v20 = vld [vmem:[#allocation61_spill] sm:$0xff] }
 0x839   :  { %3999 = vrcp.f32 %v1931_v6  ;;  %v6975_v6 = vld [vmem:[#allocation66_spill] sm:$0xff] }
 0x842   :  { %v3996_v10 = vpop.eup %3995 }
 0x843   :  { %v1935_v13 = vmul.f32 %v3996_v10, %v3992_v5  ;;  %v6970_v5 = vld [vmem:[#allocation63_spill] sm:$0xff]  ;;  %v6972_v10 = vld [vmem:[#allocation28_spill] sm:$0xff] }
 0x844   :  { %v3998_v46 = vpop.eup %3997 }
 0x845   :  { %v1934_v53 = vmul.f32 %v3998_v46, %v5526_v26  ;;  %v6962_v26 = vld [vmem:[#allocation56_spill] sm:$0xff] }
 0x846   :  { %v4000_v43 = vpop.eup %3999  ;;  %v6974_v46 = vld [vmem:[#allocation64_spill] sm:$0xff] }
 0x847   :  { %v1936_v44 = vadd.f32 %v1935_v13, %v1934_v53  ;;  %v6973_v13 = vld [vmem:[#allocation29_spill] sm:$0xff]  ;;  %v6976_v53 = vld [vmem:[#allocation67_spill] sm:$0xff] }
 0x849   :  { %4001 = vtanh.f32 %v1936_v44  ;;  %1942 = vst [vmem:[#allocation14] sm:$0xff] %v1936_v44  ;;  %v6977_v44 = vld [vmem:[#allocation65_spill] sm:$0xff] }
 0x856   :  { %v4002_v7 = vpop.eup %4001 }
 0x857   :  { %v1938_v45 = vmul.f32 %v4002_v7, %v4000_v43  ;;  %v6978_v43 = vld [vmem:[#allocation51_spill] sm:$0xff]  ;;  %v6979_v7 = vld [vmem:[#allocation49_spill] sm:$0xff] }
 0x859   :  { %2144 = vmatmul.mubr.f32.gmra.mxu0 %v1938_v45  ;;  %1941 = vst [vmem:[#allocation13] sm:$0xff] %v1938_v45  ;;  %2257 = vmatmul.mubr.f32.gmra.mxu1 %v1938_v45  ;;  %v6980_v45 = vld [vmem:[#allocation47_spill] sm:$0xff] }
 0x85a   :  { %2429 = vmatprep.mubr.f32.mxu0 %v6925_v30  ;;  %2500 = vmatprep.mubr.f32.mxu1 %v6925_v30 }
 0x85d   :  { %2430 = vmatmul.mubr.f32.vlgmr.msra.gmra.mxu0 %v6925_v30  ;;  %2501 = vmatmul.mubr.f32.vlgmr.msra.gmra.mxu1 %v6925_v30 }
 0x85e   :  { %2540 = vmatpush1.msra.mxu0 %v5569_v62  ;;  %2611 = vmatpush1.msra.mxu1 %v5571_v25 }
 0x85f   :  { %2541 = vmatprep.subr.mxu0 %v5575_v23  ;;  %2612 = vmatprep.subr.mxu1 %v5577_v49 }
 0x860   :  { %2542 = vmatpush1.msra.mxu0 %v5581_v50  ;;  %2613 = vmatpush1.msra.mxu1 %v5583_v48 }
 0x861   :  { %2543 = vmatprep.subr.mxu0 %v5587_v61  ;;  %2614 = vmatprep.subr.mxu1 %v5589_v52 }
 0x862   :  { %2544 = vmatpush1.msra.mxu0 %v5593_v29  ;;  %2615 = vmatpush1.msra.mxu1 %v5595_v0 }
 0x863   :  { %2545 = vmatprep.subr.mxu0 %v5599_v38  ;;  %2616 = vmatprep.subr.mxu1 %v5601_v59 }
 0x864   :  { %2546 = vmatpush1.msra.mxu0 %v5605_v57  ;;  %2617 = vmatpush1.msra.mxu1 %v5607_v56 }
 0x865   :  { %2547 = vmatprep.subr.mxu0 %v5611_v55  ;;  %2618 = vmatprep.subr.mxu1 %v5613_v3 }
 0x866   :  { %2548 = vmatpush1.msra.mxu0 %v5617_v2  ;;  %2619 = vmatpush1.msra.mxu1 %v5619_v60 }
 0x867   :  { %2549 = vmatprep.subr.mxu0 %v5623_v58  ;;  %2620 = vmatprep.subr.mxu1 %v5625_v11 }
 0x868   :  { %2550 = vmatpush1.msra.mxu0 %v5629_v47  ;;  %2621 = vmatpush1.msra.mxu1 %v5631_v27 }
 0x869   :  { %2551 = vmatprep.subr.mxu0 %v5635_v28  ;;  %2622 = vmatprep.subr.mxu1 %v5637_v31 }
 0x86a   :  { %2552 = vmatpush1.msra.mxu0 %v5641_v4  ;;  %2623 = vmatpush1.msra.mxu1 %v5643_v63 }
 0x86b   :  { %2553 = vmatprep.subr.mxu0 %v5647_v51  ;;  %2624 = vmatprep.subr.mxu1 %v5649_v15 }
 0x86c   :  { %2554 = vmatpush1.msra.mxu0 %v5653_v16  ;;  %2625 = vmatpush1.msra.mxu1 %v5655_v17 }
 0x86d   :  { %2555 = vmatprep.subr.mxu0 %v5659_v18  ;;  %2626 = vmatprep.subr.mxu1 %v5661_v19 }
 0x86e   :  { %2556 = vmatpush1.msra.mxu0 %v5665_v21  ;;  %2627 = vmatpush1.msra.mxu1 %v5667_v22 }
 0x86f   :  { %2557 = vmatprep.subr.mxu0 %v5671_v24  ;;  %2628 = vmatprep.subr.mxu1 %v5673_v1 }
 0x870   :  { %2558 = vmatpush1.msra.mxu0 %v5677_v32  ;;  %2629 = vmatpush1.msra.mxu1 %v5679_v33 }
 0x871   :  { %2559 = vmatprep.subr.mxu0 %v5683_v34  ;;  %2630 = vmatprep.subr.mxu1 %v5685_v35 }
 0x872   :  { %2560 = vmatpush1.msra.mxu0 %v5689_v36  ;;  %2631 = vmatpush1.msra.mxu1 %v5691_v37 }
 0x873   :  { %2561 = vmatprep.subr.mxu0 %v5695_v39  ;;  %2632 = vmatprep.subr.mxu1 %v5697_v40 }
 0x874   :  { %2562 = vmatpush1.msra.mxu0 %v6962_v26  ;;  %2633 = vmatpush1.msra.mxu1 %v6963_v54 }
 0x875   :  { %2563 = vmatprep.subr.mxu0 %v6964_v41  ;;  %2634 = vmatprep.subr.mxu1 %v6965_v42 }
 0x876   :  { %2564 = vmatpush1.msra.mxu0 %v6966_v9  ;;  %2635 = vmatpush1.msra.mxu1 %v6967_v14 }
 0x877   :  { %2565 = vmatprep.subr.mxu0 %v6968_v8  ;;  %2636 = vmatprep.subr.mxu1 %v6969_v12 }
 0x878   :  { %2566 = vmatpush1.msra.mxu0 %v6970_v5  ;;  %2637 = vmatpush1.msra.mxu1 %v6971_v20 }
 0x879   :  { %2567 = vmatprep.subr.mxu0 %v6972_v10  ;;  %2638 = vmatprep.subr.mxu1 %v6973_v13  ;;  %v6981_v10 = vld [vmem:[#allocation52_spill] sm:$0xff]  ;;  %v2103_v13 = vpop.f32.mrf.mxu0 }
 0x87a   :  { %2568 = vmatpush1.msra.mxu0 %v6974_v46  ;;  %2639 = vmatpush1.msra.mxu1 %v6975_v6  ;;  %v2216_v46 = vpop.f32.mrf.mxu1 }
 0x87b   :  { %2569 = vmatprep.subr.mxu0 %v6976_v53  ;;  %2640 = vmatprep.subr.mxu1 %v6977_v44  ;;  %v2105_v20 = vpop.f32.mrf.mxu0 }
 0x87c   :  { %2570 = vmatpush1.msra.mxu0 %v6978_v43  ;;  %2603 = vmatprep.mubr.f32.mxu0 %v6925_v30  ;;  %v2218_v6 = vpop.f32.mrf.mxu1 }
 0x87d   :  { %2641 = vmatpush1.msra.mxu1 %v6979_v7  ;;  %2674 = vmatprep.mubr.f32.mxu1 %v6925_v30  ;;  %v5832_v5 = vpop.f32.mrf.mxu0 }
 0x87e   :  { %2713 = vmatprep.subr.mxu0 %v6980_v45  ;;  %2784 = vmatprep.subr.mxu1 %v6981_v10  ;;  %6982 = vst [vmem:[#allocation31_spill] sm:$0xff] %v5832_v5  ;;  %v5834_v53 = vpop.f32.mrf.mxu1 }
 0x87f   :  { %6983 = vst [vmem:[#allocation32_spill] sm:$0xff] %v5834_v53  ;;  %v5836_v44 = vpop.f32.mrf.mxu0 }
 0x880   :  { %6984 = vst [vmem:[#allocation33_spill] sm:$0xff] %v5836_v44  ;;  %v5838_v43 = vpop.f32.mrf.mxu1 }
 0x881   :  { %6985 = vst [vmem:[#allocation34_spill] sm:$0xff] %v5838_v43  ;;  %v5840_v12 = vpop.f32.mrf.mxu0 }
 0x882   :  { %6986 = vst [vmem:[#allocation35_spill] sm:$0xff] %v5840_v12  ;;  %v5842_v7 = vpop.f32.mrf.mxu1 }
 0x883   :  { %6987 = vst [vmem:[#allocation36_spill] sm:$0xff] %v5842_v7  ;;  %v5844_v30 = vpop.f32.mrf.mxu0 }
 0x884   :  { %6988 = vst [vmem:[#allocation37_spill] sm:$0xff] %v5844_v30  ;;  %v5846_v45 = vpop.f32.mrf.mxu1 }
 0x885   :  { %6989 = vst [vmem:[#allocation38_spill] sm:$0xff] %v5846_v45  ;;  %v5848_v10 = vpop.f32.mrf.mxu0 }
 0x886   :  { %6990 = vst [vmem:[#allocation39_spill] sm:$0xff] %v5848_v10  ;;  %v5850_v8 = vpop.f32.mrf.mxu1 }
 0x887   :  { %6991 = vst [vmem:[#allocation40_spill] sm:$0xff] %v5850_v8  ;;  %v5852_v14 = vpop.f32.mrf.mxu0 }
 0x888   :  { %6992 = vst [vmem:[#allocation41_spill] sm:$0xff] %v5852_v14  ;;  %v5854_v5 = vpop.f32.mrf.mxu1 }
 0x889   :  { %6993 = vst [vmem:[#allocation42_spill] sm:$0xff] %v5854_v5  ;;  %v5856_v53 = vpop.f32.mrf.mxu0 }
 0x88a   :  { %6994 = vst [vmem:[#allocation43_spill] sm:$0xff] %v5856_v53  ;;  %v5858_v44 = vpop.f32.mrf.mxu1 }
 0x88b   :  { %6995 = vst [vmem:[#allocation44_spill] sm:$0xff] %v5858_v44  ;;  %v5860_v43 = vpop.f32.mrf.mxu0  ;;  %v2015_v44 = vld [vmem:[%s6535_s6] sm:$0xf]  ;;  %s4461_s6 = smov [#allocation14]  }
 0x88c   :  { %6996 = vst [vmem:[#allocation45_spill] sm:$0xff] %v5860_v43  ;;  %v5862_v12 = vpop.f32.mrf.mxu1  ;;  %v7005_v43 = vld [vmem:[#allocation48_spill] sm:$0xff]  ;;  %s3771_s17 = sshll.u32 %s4461_s6, 4  ;;  %s3772_s17 = int_to_ptr.vmem [resolvable:$true] %s3771_s17 }
 0x88d   :  { %6997 = vst [vmem:[#allocation68_spill] sm:$0xff] %v5862_v12  ;;  %v5864_v7 = vpop.f32.mrf.mxu0  ;;  %v7006_v12 = vsub.s32 0, %v7005_v43  ;;  %s4359_s23 = scalar_lea.vmem %s3772_s17, 128  ;;  %p4364_p12 = scmp.lt.s32.totalorder %s3772_s17, %s3772_s17 }
 0x88e   :  { %6998 = vst [vmem:[#allocation70_spill] sm:$0xff] %v5864_v7  ;;  %v5866_v30 = vpop.f32.mrf.mxu1  ;;  %p4360_p11 = scmp.ne.s32.totalorder %s3772_s17, %s4359_s23  ;;  %p4365_p13 = scmp.lt.s32.totalorder %s4359_s23, %s4359_s23 }
 0x88f   :  { %6999 = vst [vmem:[#allocation71_spill] sm:$0xff] %v5866_v30  ;;  %v5868_v45 = vpop.f32.mrf.mxu0  ;;  %v5883_v5 = vrot.slane %v2015_v44, %v7006_v12 }
 0x890   :  { %7000 = vst [vmem:[#allocation69_spill] sm:$0xff] %v5868_v45  ;;  %v5870_v10 = vpop.f32.mrf.mxu1  ;;  %p4366_p0 = por %p4365_p13, %p4364_p12 }
 0x891   :  { %7001 = vst [vmem:[#allocation76_spill] sm:$0xff] %v5870_v10  ;;  %v5872_v8 = vpop.f32.mrf.mxu0  ;;  %7007 = vst [vmem:[#allocation46_spill] sm:$0xff] %v5883_v5  ;;  %v7010_v10 = vsub.s32 1, %v7005_v43  ;;  %v2104_v9 = vadd.f32 %v2103_v13, %v5883_v5 }
 0x892   :  { %7002 = vst [vmem:[#allocation27_spill] sm:$0xff] %v5872_v8  ;;  %v5874_v14 = vpop.f32.mrf.mxu1  ;;  %p4367_p1 = pnand %p4366_p0, %p4360_p11 }
 0x893   :  { %7003 = vst [vmem:[#allocation30_spill] sm:$0xff] %v5874_v14  ;;  %v5879_v53 = vpop.f32.mrf.mxu0  ;;  %v5891_v45 = vrot.slane %v2015_v44, %v7010_v10  ;;  %v7014_v10 = vsub.s32 3, %v7005_v43 }
 0x894   :  { %7004 = vst [vmem:[#allocation50_spill] sm:$0xff] %v5879_v53  ;;  %v5885_v7 = vpop.f32.mrf.mxu1 }
 0x895   :  { %7008 = vst [vmem:[#allocation72_spill] sm:$0xff] %v5885_v7  ;;  %v2106_v53 = vadd.f32 %v2105_v20, %v5891_v45  ;;  %v5903_v39 = vrot.slane %v2015_v44, %v7014_v10 }
 0x897   :  { %7015 = vst [vmem:[#allocation77_spill] sm:$0xff] %v5903_v39  ;;  %v2219_v13 = vadd.f32 %v2218_v6, %v5903_v39 }
 0x919   :  { %v5887_v30 = vpop.f32.mrf.mxu0  ;;  %v5893_v8 = vpop.f32.mrf.mxu1 }
 0x91a   :  { %7009 = vst [vmem:[#allocation74_spill] sm:$0xff] %v5887_v30  ;;  %7011 = vst [vmem:[#allocation75_spill] sm:$0xff] %v5893_v8 }
 0x91b   :  { %v5895_v14 = vpop.f32.mrf.mxu0  ;;  %v5899_v41 = vpop.f32.mrf.mxu1 }
 0x91c   :  { %7012 = vst [vmem:[#allocation73_spill] sm:$0xff] %v5895_v14  ;;  %7013 = vst [vmem:[#allocation48_spill] sm:$0xff] %v5899_v41  ;;  %v7016_v14 = vsub.s32 2, %v7005_v43 }
 0x91d   :  { %v2431_v42 = vpop.f32.mrf.mxu0  ;;  %v2502_v30 = vpop.f32.mrf.mxu1 }
 0x91e   :  { %v2507_v12 = vadd.f32 %v2431_v42, %v2104_v9  ;;  %v5908_v20 = vrot.slane %v2015_v44, %v7016_v14 }
 0x91f   :  { %v2433_v54 = vpop.f32.mrf.mxu0  ;;  %v2504_v8 = vpop.f32.mrf.mxu1 }
 0x920   :  { %v3837_v7 = vmul.f32 -1.442695, %v2507_v12  ;;  %v2508_v26 = vadd.f32 %v2433_v54, %v2106_v53  ;;  %v2510_v41 = vadd.f32 %v2504_v8, %v2219_v13  ;;  %v2217_v42 = vadd.f32 %v2216_v46, %v5908_v20  ;;  %v7018_v13 = vld [vmem:[#allocation53_spill] sm:$0xff] }
 0x922   :  { %4003 = vpow2.f32 %v3837_v7  ;;  %v3838_v40 = vmul.f32 -1.442695, %v2508_v26  ;;  %v3839_v9 = vmul.f32 -1.442695, %v2510_v41  ;;  %v2509_v53 = vadd.f32 %v2502_v30, %v2217_v42  ;;  %v7019_v42 = vld [vmem:[#allocation56_spill] sm:$0xff] }
 0x924   :  { %4005 = vpow2.f32 %v3838_v40 }
 0x925   :  { %4007 = vpow2.f32 %v3839_v9  ;;  %v7020_v9 = vld [vmem:[#allocation58_spill] sm:$0xff] }
 0x92f   :  { %v4004_v54 = vpop.eup %4003 }
 0x930   :  { %v2514_v7 = vadd.f32 1.0, %v4004_v54  ;;  %v7021_v54 = vld [vmem:[#allocation59_spill] sm:$0xff] }
 0x931   :  { %v4006_v26 = vpop.eup %4005 }
 0x932   :  { %4009 = vrcp.f32 %v2514_v7  ;;  %v2520_v12 = vadd.f32 1.0, %v4006_v26  ;;  %v4008_v40 = vpop.eup %4007  ;;  %v7023_v7 = vld [vmem:[#allocation25_spill] sm:$0xff]  ;;  %v7024_v26 = vld [vmem:[#allocation26_spill] sm:$0xff] }
 0x933   :  { %4011 = vtanh.f32 %v2509_v53  ;;  %v2527_v43 = vadd.f32 1.0, %v4008_v40  ;;  %v7022_v53 = vld [vmem:[#allocation57_spill] sm:$0xff]  ;;  %v7026_v40 = vld [vmem:[#allocation62_spill] sm:$0xff] }
 0x934   :  { %4013 = vrcp.f32 %v2520_v12  ;;  %v7025_v12 = vld [vmem:[#allocation60_spill] sm:$0xff] }
 0x935   :  { %4015 = vrcp.f32 %v2527_v43  ;;  %v7029_v43 = vld [vmem:[#allocation28_spill] sm:$0xff] }
 0x93f   :  { %v4010_v10 = vpop.eup %4009 }
 0x940   :  { %v4012_v6 = vpop.eup %4011 }
 0x941   :  { %v4014_v39 = vpop.eup %4013  ;;  %v2531_v14 = vmul.f32 %v4012_v6, %v4010_v10  ;;  %v7027_v10 = vld [vmem:[#allocation63_spill] sm:$0xff]  ;;  %v7028_v6 = vld [vmem:[#allocation61_spill] sm:$0xff] }
 0x942   :  { %v2530_v44 = vmul.f32 0.0, %v4014_v39  ;;  %v4016_v30 = vpop.eup %4015  ;;  %v7017_v39 = vld [vmem:[#allocation55_spill] sm:$0xff] }
 0x944   :  { %v5911_v8 = vadd.f32 %v2531_v14, %v2530_v44  ;;  %v7030_v14 = vld [vmem:[#allocation29_spill] sm:$0xff]  ;;  %v7031_v44 = vld [vmem:[#allocation64_spill] sm:$0xff] }
 0x946   :  { %4017 = vtanh.f32 %v5911_v8 }
 0x953   :  { %v4018_v41 = vpop.eup %4017 }
 0x954   :  { %v2534_v46 = vmul.f32 %v4018_v41, %v4016_v30  ;;  %v7032_v30 = vld [vmem:[#allocation66_spill] sm:$0xff]  ;;  %v7033_v41 = vld [vmem:[#allocation67_spill] sm:$0xff] }
 0x956   :  { %2604 = vmatmul.mubr.f32.vlgmr.msra.gmra.mxu0 %v2534_v46  ;;  %2675 = vmatmul.mubr.f32.vlgmr.msra.gmra.mxu1 %v2534_v46  ;;  %v7034_v46 = vld [vmem:[#allocation65_spill] sm:$0xff] }
 0x957   :  { %2714 = vmatpush1.msra.mxu0 %v5569_v62  ;;  %2785 = vmatpush1.msra.mxu1 %v5571_v25 }
 0x958   :  { %2715 = vmatprep.subr.mxu0 %v5575_v23  ;;  %2786 = vmatprep.subr.mxu1 %v5577_v49 }
 0x959   :  { %2716 = vmatpush1.msra.mxu0 %v5581_v50  ;;  %2787 = vmatpush1.msra.mxu1 %v5583_v48 }
 0x95a   :  { %2717 = vmatprep.subr.mxu0 %v5587_v61  ;;  %2788 = vmatprep.subr.mxu1 %v5589_v52 }
 0x95b   :  { %2718 = vmatpush1.msra.mxu0 %v5593_v29  ;;  %2789 = vmatpush1.msra.mxu1 %v5595_v0 }
 0x95c   :  { %2719 = vmatprep.subr.mxu0 %v5599_v38  ;;  %2790 = vmatprep.subr.mxu1 %v5601_v59 }
 0x95d   :  { %2720 = vmatpush1.msra.mxu0 %v5605_v57  ;;  %2791 = vmatpush1.msra.mxu1 %v5607_v56 }
 0x95e   :  { %2721 = vmatprep.subr.mxu0 %v5611_v55  ;;  %2792 = vmatprep.subr.mxu1 %v5613_v3 }
 0x95f   :  { %2722 = vmatpush1.msra.mxu0 %v5617_v2  ;;  %2793 = vmatpush1.msra.mxu1 %v5619_v60 }
 0x960   :  { %2723 = vmatprep.subr.mxu0 %v5623_v58  ;;  %2794 = vmatprep.subr.mxu1 %v5625_v11 }
 0x961   :  { %2724 = vmatpush1.msra.mxu0 %v5629_v47  ;;  %2795 = vmatpush1.msra.mxu1 %v5631_v27 }
 0x962   :  { %2725 = vmatprep.subr.mxu0 %v5635_v28  ;;  %2796 = vmatprep.subr.mxu1 %v5637_v31 }
 0x963   :  { %2726 = vmatpush1.msra.mxu0 %v5641_v4  ;;  %2797 = vmatpush1.msra.mxu1 %v5643_v63 }
 0x964   :  { %2727 = vmatprep.subr.mxu0 %v5647_v51  ;;  %2798 = vmatprep.subr.mxu1 %v5649_v15 }
 0x965   :  { %2728 = vmatpush1.msra.mxu0 %v5653_v16  ;;  %2799 = vmatpush1.msra.mxu1 %v5655_v17 }
 0x966   :  { %2729 = vmatprep.subr.mxu0 %v5659_v18  ;;  %2800 = vmatprep.subr.mxu1 %v5661_v19 }
 0x967   :  { %2730 = vmatpush1.msra.mxu0 %v5665_v21  ;;  %2801 = vmatpush1.msra.mxu1 %v5667_v22 }
 0x968   :  { %2731 = vmatprep.subr.mxu0 %v5671_v24  ;;  %2802 = vmatprep.subr.mxu1 %v5673_v1 }
 0x969   :  { %2732 = vmatpush1.msra.mxu0 %v5677_v32  ;;  %2803 = vmatpush1.msra.mxu1 %v5679_v33 }
 0x96a   :  { %2733 = vmatprep.subr.mxu0 %v5683_v34  ;;  %2804 = vmatprep.subr.mxu1 %v5685_v35 }
 0x96b   :  { %2734 = vmatpush1.msra.mxu0 %v5689_v36  ;;  %2805 = vmatpush1.msra.mxu1 %v5691_v37 }
 0x96c   :  { %2735 = vmatprep.subr.mxu0 %v7017_v39  ;;  %2806 = vmatprep.subr.mxu1 %v7018_v13  ;;  %v7044_v13 = vld [vmem:[#allocation32_spill] sm:$0xff] }
 0x96d   :  { %2736 = vmatpush1.msra.mxu0 %v7019_v42  ;;  %2807 = vmatpush1.msra.mxu1 %v7020_v9  ;;  %v7042_v9 = vld [vmem:[#allocation77_spill] sm:$0xff] }
 0x96e   :  { %2737 = vmatprep.subr.mxu0 %v7021_v54  ;;  %2808 = vmatprep.subr.mxu1 %v7022_v53 }
 0x96f   :  { %2738 = vmatpush1.msra.mxu0 %v7023_v7  ;;  %2809 = vmatpush1.msra.mxu1 %v7024_v26  ;;  %v7035_v26 = vld [vmem:[#allocation51_spill] sm:$0xff] }
 0x970   :  { %2739 = vmatprep.subr.mxu0 %v7025_v12  ;;  %2810 = vmatprep.subr.mxu1 %v7026_v40  ;;  %v7036_v12 = vmov 0.0   ;;  %v7037_v40 = vld [vmem:[#allocation49_spill] sm:$0xff] }
 0x971   :  { %2740 = vmatpush1.msra.mxu0 %v7027_v10  ;;  %2811 = vmatpush1.msra.mxu1 %v7028_v6  ;;  %v7038_v6 = vld [vmem:[#allocation47_spill] sm:$0xff] }
 0x972   :  { %2741 = vmatprep.subr.mxu0 %v7029_v43  ;;  %2812 = vmatprep.subr.mxu1 %v7030_v14  ;;  %v7039_v43 = vld [vmem:[#allocation52_spill] sm:$0xff] }
 0x973   :  { %2742 = vmatpush1.msra.mxu0 %v7031_v44  ;;  %2813 = vmatpush1.msra.mxu1 %v7032_v30  ;;  %v7040_v44 = vld [vmem:[#allocation31_spill] sm:$0xff] }
 0x974   :  { %2743 = vmatprep.subr.mxu0 %v7033_v41  ;;  %2814 = vmatprep.subr.mxu1 %v7034_v46  ;;  %v2110_v14 = vadd.f32 %v7040_v44, %v5883_v5  ;;  %v7041_v41 = vld [vmem:[#allocation33_spill] sm:$0xff]  ;;  %v2223_v44 = vadd.f32 %v7044_v13, %v5908_v20 }
 0x975   :  { %2744 = vmatpush1.msra.mxu0 %v7035_v26  ;;  %2777 = vmatprep.mubr.f32.mxu0 %v7036_v12  ;;  %v2112_v10 = vadd.f32 %v7041_v41, %v5891_v45 }
 0x976   :  { %2815 = vmatpush1.msra.mxu1 %v7037_v40  ;;  %2848 = vmatprep.mubr.f32.mxu1 %v7036_v12 }
 0x977   :  { %2887 = vmatprep.subr.mxu0 %v7038_v6  ;;  %2958 = vmatprep.subr.mxu1 %v7039_v43  ;;  %v7043_v6 = vld [vmem:[#allocation34_spill] sm:$0xff] }
 0x978   :  { %v2225_v42 = vadd.f32 %v7043_v6, %v7042_v9 }
 0xa16   :  { %v2605_v30 = vpop.f32.mrf.mxu0  ;;  %v2676_v54 = vpop.f32.mrf.mxu1 }
 0xa17   :  { %v2681_v46 = vadd.f32 %v2605_v30, %v2110_v14  ;;  %v2683_v5 = vadd.f32 %v2676_v54, %v2223_v44  ;;  %v7059_v54 = vld [vmem:[#allocation29_spill] sm:$0xff]  ;;  %v7062_v44 = vld [vmem:[#allocation67_spill] sm:$0xff] }
 0xa18   :  { %v2607_v7 = vpop.f32.mrf.mxu0  ;;  %v2678_v12 = vpop.f32.mrf.mxu1 }
 0xa19   :  { %v3840_v26 = vmul.f32 -1.442695, %v2681_v46  ;;  %v2682_v53 = vadd.f32 %v2607_v7, %v2112_v10  ;;  %v2684_v43 = vadd.f32 %v2678_v12, %v2225_v42  ;;  %v7061_v46 = vld [vmem:[#allocation66_spill] sm:$0xff] }
 0xa1b   :  { %4019 = vpow2.f32 %v3840_v26  ;;  %v3841_v40 = vmul.f32 -1.442695, %v2682_v53  ;;  %v3842_v39 = vmul.f32 -1.442695, %v2684_v43  ;;  %v7060_v43 = vld [vmem:[#allocation64_spill] sm:$0xff] }
 0xa1d   :  { %4021 = vpow2.f32 %v3841_v40 }
 0xa1e   :  { %4023 = vtanh.f32 %v2683_v5 }
 0xa1f   :  { %4025 = vpow2.f32 %v3842_v39  ;;  %v7058_v39 = vld [vmem:[#allocation28_spill] sm:$0xff] }
 0xa28   :  { %v4020_v37 = vpop.eup %4019 }
 0xa29   :  { %v2688_v41 = vadd.f32 1.0, %v4020_v37 }
 0xa2a   :  { %v4022_v14 = vpop.eup %4021 }
 0xa2b   :  { %4027 = vrcp.f32 %v2688_v41  ;;  %v2694_v7 = vadd.f32 1.0, %v4022_v14  ;;  %v4024_v53 = vpop.eup %4023  ;;  %v7063_v41 = vld [vmem:[#allocation65_spill] sm:$0xff]  ;;  %v7064_v14 = vld [vmem:[#allocation51_spill] sm:$0xff] }
 0xa2c   :  { %v4026_v26 = vpop.eup %4025 }
 0xa2d   :  { %4029 = vrcp.f32 %v2694_v7  ;;  %v2701_v6 = vadd.f32 1.0, %v4026_v26  ;;  %v7065_v7 = vmov 0.0   ;;  %v7067_v26 = vld [vmem:[#allocation47_spill] sm:$0xff] }
 0xa2f   :  { %4031 = vrcp.f32 %v2701_v6 }
 0xa38   :  { %v4028_v40 = vpop.eup %4027 }
 0xa39   :  { %v2705_v10 = vmul.f32 %v4028_v40, %v4024_v53  ;;  %v7066_v53 = vld [vmem:[#allocation49_spill] sm:$0xff]  ;;  %v7068_v40 = vld [vmem:[#allocation52_spill] sm:$0xff] }
 0xa3a   :  { %v4030_v30 = vpop.eup %4029 }
 0xa3b   :  { %v2704_v42 = vmul.f32 %v4030_v30, %v5911_v8  ;;  %v7057_v8 = vld [vmem:[#allocation61_spill] sm:$0xff]  ;;  %v7070_v30 = vld [vmem:[#allocation35_spill] sm:$0xff] }
 0xa3c   :  { %v4032_v37 = vpop.eup %4031 }
 0xa3d   :  { %v5989_v12 = vadd.f32 %v2705_v10, %v2704_v42  ;;  %v7069_v10 = vld [vmem:[#allocation46_spill] sm:$0xff] }
 0xa3e   :  { %v2116_v6 = vadd.f32 %v7070_v30, %v7069_v10 }
 0xa3f   :  { %4033 = vtanh.f32 %v5989_v12 }
 0xa4c   :  { %v4034_v5 = vpop.eup %4033 }
 0xa4d   :  { %v2708_v13 = vmul.f32 %v4034_v5, %v4032_v37  ;;  %v7071_v37 = vld [vmem:[#allocation37_spill] sm:$0xff] }
 0xa4e   :  { %v2118_v5 = vadd.f32 %v7071_v37, %v5891_v45 }
 0xa4f   :  { %2778 = vmatmul.mubr.f32.vlgmr.msra.gmra.mxu0 %v2708_v13  ;;  %2849 = vmatmul.mubr.f32.vlgmr.msra.gmra.mxu1 %v2708_v13 }
 0xa50   :  { %2888 = vmatpush1.msra.mxu0 %v5569_v62  ;;  %2959 = vmatpush1.msra.mxu1 %v5571_v25  ;;  %v7045_v62 = vld [vmem:[#allocation54_spill] sm:$0xff]  ;;  %v7046_v25 = vld [vmem:[#allocation55_spill] sm:$0xff] }
 0xa51   :  { %2889 = vmatprep.subr.mxu0 %v5575_v23  ;;  %2960 = vmatprep.subr.mxu1 %v5577_v49  ;;  %v7047_v23 = vld [vmem:[#allocation53_spill] sm:$0xff]  ;;  %v7048_v49 = vld [vmem:[#allocation56_spill] sm:$0xff] }
 0xa52   :  { %2890 = vmatpush1.msra.mxu0 %v5581_v50  ;;  %2961 = vmatpush1.msra.mxu1 %v5583_v48  ;;  %v7049_v50 = vld [vmem:[#allocation58_spill] sm:$0xff]  ;;  %v7050_v48 = vld [vmem:[#allocation59_spill] sm:$0xff] }
 0xa53   :  { %2891 = vmatprep.subr.mxu0 %v5587_v61  ;;  %2962 = vmatprep.subr.mxu1 %v5589_v52  ;;  %v7051_v61 = vld [vmem:[#allocation57_spill] sm:$0xff] }
 0xa54   :  { %2892 = vmatpush1.msra.mxu0 %v5593_v29  ;;  %2963 = vmatpush1.msra.mxu1 %v5595_v0  ;;  %v7052_v52 = vld [vmem:[#allocation25_spill] sm:$0xff]  ;;  %v7053_v29 = vld [vmem:[#allocation26_spill] sm:$0xff]  ;;  %v7054_v0 = vld [vmem:[#allocation60_spill] sm:$0xff] }
 0xa55   :  { %2893 = vmatprep.subr.mxu0 %v5599_v38  ;;  %2964 = vmatprep.subr.mxu1 %v5601_v59  ;;  %v7055_v38 = vld [vmem:[#allocation62_spill] sm:$0xff]  ;;  %v7056_v59 = vld [vmem:[#allocation63_spill] sm:$0xff] }
 0xa56   :  { %2894 = vmatpush1.msra.mxu0 %v5605_v57  ;;  %2965 = vmatpush1.msra.mxu1 %v5607_v56 }
 0xa57   :  { %2895 = vmatprep.subr.mxu0 %v5611_v55  ;;  %2966 = vmatprep.subr.mxu1 %v5613_v3 }
 0xa58   :  { %2896 = vmatpush1.msra.mxu0 %v5617_v2  ;;  %2967 = vmatpush1.msra.mxu1 %v5619_v60 }
 0xa59   :  { %2897 = vmatprep.subr.mxu0 %v5623_v58  ;;  %2968 = vmatprep.subr.mxu1 %v5625_v11 }
 0xa5a   :  { %2898 = vmatpush1.msra.mxu0 %v5629_v47  ;;  %2969 = vmatpush1.msra.mxu1 %v5631_v27 }
 0xa5b   :  { %2899 = vmatprep.subr.mxu0 %v5635_v28  ;;  %2970 = vmatprep.subr.mxu1 %v5637_v31 }
 0xa5c   :  { %2900 = vmatpush1.msra.mxu0 %v5641_v4  ;;  %2971 = vmatpush1.msra.mxu1 %v5643_v63 }
 0xa5d   :  { %2901 = vmatprep.subr.mxu0 %v5647_v51  ;;  %2972 = vmatprep.subr.mxu1 %v5649_v15 }
 0xa5e   :  { %2902 = vmatpush1.msra.mxu0 %v5653_v16  ;;  %2973 = vmatpush1.msra.mxu1 %v5655_v17 }
 0xa5f   :  { %2903 = vmatprep.subr.mxu0 %v5659_v18  ;;  %2974 = vmatprep.subr.mxu1 %v5661_v19 }
 0xa60   :  { %2904 = vmatpush1.msra.mxu0 %v5665_v21  ;;  %2975 = vmatpush1.msra.mxu1 %v5667_v22 }
 0xa61   :  { %2905 = vmatprep.subr.mxu0 %v5671_v24  ;;  %2976 = vmatprep.subr.mxu1 %v5673_v1 }
 0xa62   :  { %2906 = vmatpush1.msra.mxu0 %v5677_v32  ;;  %2977 = vmatpush1.msra.mxu1 %v5679_v33 }
 0xa63   :  { %2907 = vmatprep.subr.mxu0 %v5683_v34  ;;  %2978 = vmatprep.subr.mxu1 %v5685_v35 }
 0xa64   :  { %2908 = vmatpush1.msra.mxu0 %v5689_v36  ;;  %2979 = vmatpush1.msra.mxu1 %v7045_v62 }
 0xa65   :  { %2909 = vmatprep.subr.mxu0 %v7046_v25  ;;  %2980 = vmatprep.subr.mxu1 %v7047_v23 }
 0xa66   :  { %2910 = vmatpush1.msra.mxu0 %v7048_v49  ;;  %2981 = vmatpush1.msra.mxu1 %v7049_v50 }
 0xa67   :  { %2911 = vmatprep.subr.mxu0 %v7050_v48  ;;  %2982 = vmatprep.subr.mxu1 %v7051_v61 }
 0xa68   :  { %2912 = vmatpush1.msra.mxu0 %v7052_v52  ;;  %2983 = vmatpush1.msra.mxu1 %v7053_v29 }
 0xa69   :  { %2913 = vmatprep.subr.mxu0 %v7054_v0  ;;  %2984 = vmatprep.subr.mxu1 %v7055_v38 }
 0xa6a   :  { %2914 = vmatpush1.msra.mxu0 %v7056_v59  ;;  %2985 = vmatpush1.msra.mxu1 %v7057_v8 }
 0xa6b   :  { %2915 = vmatprep.subr.mxu0 %v7058_v39  ;;  %2986 = vmatprep.subr.mxu1 %v7059_v54  ;;  %v7073_v54 = vld [vmem:[#allocation36_spill] sm:$0xff] }
 0xa6c   :  { %2916 = vmatpush1.msra.mxu0 %v7060_v43  ;;  %2987 = vmatpush1.msra.mxu1 %v7061_v46  ;;  %v2229_v30 = vadd.f32 %v7073_v54, %v5908_v20 }
 0xa6d   :  { %2917 = vmatprep.subr.mxu0 %v7062_v44  ;;  %2988 = vmatprep.subr.mxu1 %v7063_v41 }
 0xa6e   :  { %2918 = vmatpush1.msra.mxu0 %v7064_v14  ;;  %2951 = vmatprep.mubr.f32.mxu0 %v7065_v7 }
 0xa6f   :  { %2989 = vmatpush1.msra.mxu1 %v7066_v53  ;;  %3022 = vmatprep.mubr.f32.mxu1 %v7065_v7 }
 0xa70   :  { %3061 = vmatprep.subr.mxu0 %v7067_v26  ;;  %3132 = vmatprep.subr.mxu1 %v7068_v40  ;;  %v7072_v26 = vld [vmem:[#allocation38_spill] sm:$0xff] }
 0xa71   :  { %v2231_v43 = vadd.f32 %v7072_v26, %v7042_v9  ;;  %v6076_v26 = vld [vmem:[#allocation12 + $0x1c8] sm:$0xff] }
 0xb0f   :  { %v2779_v42 = vpop.f32.mrf.mxu0  ;;  %v2850_v46 = vpop.f32.mrf.mxu1 }
 0xb10   :  { %v2855_v13 = vadd.f32 %v2779_v42, %v2116_v6  ;;  %v2857_v10 = vadd.f32 %v2850_v46, %v2229_v30  ;;  %v6085_v30 = vld [vmem:[#allocation12 + $0x1d0] sm:$0xff] }
 0xb11   :  { %v2781_v41 = vpop.f32.mrf.mxu0  ;;  %v2852_v7 = vpop.f32.mrf.mxu1 }
 0xb12   :  { %v3843_v14 = vmul.f32 -1.442695, %v2855_v13  ;;  %v2856_v44 = vadd.f32 %v2781_v41, %v2118_v5  ;;  %v2858_v40 = vadd.f32 %v2852_v7, %v2231_v43 }
 0xb14   :  { %4035 = vpow2.f32 %v3843_v14  ;;  %v3844_v53 = vmul.f32 -1.442695, %v2856_v44  ;;  %v3845_v39 = vmul.f32 -1.442695, %v2858_v40  ;;  %v6082_v40 = vld [vmem:[#allocation12 + $0x1c0] sm:$0xff] }
 0xb16   :  { %4037 = vpow2.f32 %v3844_v53 }
 0xb17   :  { %4039 = vtanh.f32 %v2857_v10  ;;  %v6073_v10 = vld [vmem:[#allocation12 + $0x1f0] sm:$0xff] }
 0xb18   :  { %4041 = vpow2.f32 %v3845_v39  ;;  %v6070_v39 = vld [vmem:[#allocation12 + $0x1e0] sm:$0xff] }
 0xb21   :  { %v4036_v8 = vpop.eup %4035 }
 0xb22   :  { %v2862_v37 = vadd.f32 1.0, %v4036_v8 }
 0xb23   :  { %v4038_v6 = vpop.eup %4037 }
 0xb24   :  { %4043 = vrcp.f32 %v2862_v37  ;;  %v2868_v41 = vadd.f32 1.0, %v4038_v6  ;;  %v4040_v44 = vpop.eup %4039  ;;  %v6088_v37 = vld [vmem:[#allocation12 + $0x1a8] sm:$0xff]  ;;  %v6091_v6 = vld [vmem:[#allocation12 + $0x1b8] sm:$0xff] }
 0xb25   :  { %v4042_v14 = vpop.eup %4041 }
 0xb26   :  { %4045 = vrcp.f32 %v2868_v41  ;;  %v2875_v13 = vadd.f32 1.0, %v4042_v14  ;;  %v6094_v41 = vld [vmem:[#allocation12 + $0x1a0] sm:$0xff]  ;;  %v6100_v14 = vld [vmem:[#allocation12 + $0x188] sm:$0xff] }
 0xb28   :  { %4047 = vrcp.f32 %v2875_v13 }
 0xb31   :  { %v4044_v53 = vpop.eup %4043 }
 0xb32   :  { %v2879_v42 = vmul.f32 %v4044_v53, %v4040_v44  ;;  %v6097_v44 = vld [vmem:[#allocation12 + $0x1b0] sm:$0xff]  ;;  %v6103_v53 = vld [vmem:[#allocation12 + $0x198] sm:$0xff] }
 0xb33   :  { %v4046_v5 = vpop.eup %4045 }
 0xb34   :  { %v2878_v43 = vmul.f32 %v4046_v5, %v5989_v12  ;;  %v6079_v12 = vld [vmem:[#allocation12 + $0x1d8] sm:$0xff] }
 0xb35   :  { %v4048_v8 = vpop.eup %4047 }
 0xb36   :  { %v6067_v7 = vadd.f32 %v2879_v42, %v2878_v43 }
 0xb38   :  { %4049 = vtanh.f32 %v6067_v7 }
 0xb45   :  { %v4050_v54 = vpop.eup %4049 }
 0xb46   :  { %v2882_v46 = vmul.f32 %v4050_v54, %v4048_v8 }
 0xb48   :  { %2952 = vmatmul.mubr.f32.vlgmr.msra.gmra.mxu0 %v2882_v46  ;;  %3023 = vmatmul.mubr.f32.vlgmr.msra.gmra.mxu1 %v2882_v46  ;;  %v6191_v46 = vld [vmem:[#allocation12 + $0x190] sm:$0xff] }
 0xb49   :  { %3062 = vmatpush1.msra.mxu0 %v6070_v39  ;;  %3133 = vmatpush1.msra.mxu1 %v6073_v10 }
 0xb4a   :  { %3063 = vmatprep.subr.mxu0 %v6076_v26  ;;  %3134 = vmatprep.subr.mxu1 %v6079_v12 }
 0xb4b   :  { %3064 = vmatpush1.msra.mxu0 %v6082_v40  ;;  %3135 = vmatpush1.msra.mxu1 %v6085_v30 }
 0xb4c   :  { %3065 = vmatprep.subr.mxu0 %v6088_v37  ;;  %3136 = vmatprep.subr.mxu1 %v6091_v6 }
 0xb4d   :  { %3066 = vmatpush1.msra.mxu0 %v6094_v41  ;;  %3137 = vmatpush1.msra.mxu1 %v6097_v44 }
 0xb4e   :  { %3067 = vmatprep.subr.mxu0 %v6100_v14  ;;  %3138 = vmatprep.subr.mxu1 %v6103_v53 }
 0xb4f   :  { %3068 = vmatpush1.msra.mxu0 %v5605_v57  ;;  %3139 = vmatpush1.msra.mxu1 %v5607_v56  ;;  %v7074_v57 = vld [vmem:[#allocation61_spill] sm:$0xff]  ;;  %v7075_v56 = vld [vmem:[#allocation28_spill] sm:$0xff] }
 0xb50   :  { %3069 = vmatprep.subr.mxu0 %v5611_v55  ;;  %3140 = vmatprep.subr.mxu1 %v5613_v3  ;;  %v7076_v55 = vld [vmem:[#allocation29_spill] sm:$0xff]  ;;  %v7077_v3 = vld [vmem:[#allocation64_spill] sm:$0xff] }
 0xb51   :  { %3070 = vmatpush1.msra.mxu0 %v5617_v2  ;;  %3141 = vmatpush1.msra.mxu1 %v5619_v60  ;;  %v7078_v2 = vld [vmem:[#allocation66_spill] sm:$0xff]  ;;  %v7079_v60 = vld [vmem:[#allocation67_spill] sm:$0xff] }
 0xb52   :  { %3071 = vmatprep.subr.mxu0 %v5623_v58  ;;  %3142 = vmatprep.subr.mxu1 %v5625_v11  ;;  %v7080_v58 = vld [vmem:[#allocation65_spill] sm:$0xff]  ;;  %v7081_v11 = vld [vmem:[#allocation51_spill] sm:$0xff] }
 0xb53   :  { %3072 = vmatpush1.msra.mxu0 %v5629_v47  ;;  %3143 = vmatpush1.msra.mxu1 %v5631_v27  ;;  %v7082_v47 = vmov 0.0   ;;  %v7083_v27 = vld [vmem:[#allocation49_spill] sm:$0xff] }
 0xb54   :  { %3073 = vmatprep.subr.mxu0 %v5635_v28  ;;  %3144 = vmatprep.subr.mxu1 %v5637_v31  ;;  %v6158_v28 = vld [vmem:[#allocation12 + $0x1e8] sm:$0xff]  ;;  %v6161_v31 = vld [vmem:[#allocation12 + $0x1f8] sm:$0xff] }
 0xb55   :  { %3074 = vmatpush1.msra.mxu0 %v5641_v4  ;;  %3145 = vmatpush1.msra.mxu1 %v5643_v63  ;;  %7084 = vst [vmem:[#allocation31_spill] sm:$0xff] %v6158_v28  ;;  %7085 = vst [vmem:[#allocation33_spill] sm:$0xff] %v6161_v31  ;;  %v7086_v4 = vld [vmem:[#allocation46_spill] sm:$0xff]  ;;  %v7087_v63 = vld [vmem:[#allocation39_spill] sm:$0xff] }
 0xb56   :  { %3075 = vmatprep.subr.mxu0 %v5647_v51  ;;  %3146 = vmatprep.subr.mxu1 %v5649_v15  ;;  %v2122_v51 = vadd.f32 %v7087_v63, %v7086_v4  ;;  %v6221_v63 = vld [vmem:[#allocation12 + $0x138] sm:$0xff] }
 0xb57   :  { %3076 = vmatpush1.msra.mxu0 %v5653_v16  ;;  %3147 = vmatpush1.msra.mxu1 %v5655_v17  ;;  %v7088_v16 = vld [vmem:[#allocation41_spill] sm:$0xff] }
 0xb58   :  { %3077 = vmatprep.subr.mxu0 %v5659_v18  ;;  %3148 = vmatprep.subr.mxu1 %v5661_v19  ;;  %v2124_v17 = vadd.f32 %v7088_v16, %v5891_v45  ;;  %v6230_v16 = vld [vmem:[#allocation12 + $0x108] sm:$0xff] }
 0xb59   :  { %3078 = vmatpush1.msra.mxu0 %v5665_v21  ;;  %3149 = vmatpush1.msra.mxu1 %v5667_v22 }
 0xb5a   :  { %3079 = vmatprep.subr.mxu0 %v5671_v24  ;;  %3150 = vmatprep.subr.mxu1 %v5673_v1 }
 0xb5b   :  { %3080 = vmatpush1.msra.mxu0 %v5677_v32  ;;  %3151 = vmatpush1.msra.mxu1 %v5679_v33  ;;  %v7089_v33 = vld [vmem:[#allocation42_spill] sm:$0xff] }
 0xb5c   :  { %3081 = vmatprep.subr.mxu0 %v5683_v34  ;;  %3152 = vmatprep.subr.mxu1 %v5685_v35  ;;  %v2237_v34 = vadd.f32 %v7089_v33, %v7042_v9  ;;  %v6257_v33 = vld [vmem:[#allocation12 + $0xd8] sm:$0xff] }
 0xb5d   :  { %3082 = vmatpush1.msra.mxu0 %v5689_v36  ;;  %3153 = vmatpush1.msra.mxu1 %v7045_v62  ;;  %v7090_v36 = vld [vmem:[#allocation40_spill] sm:$0xff] }
 0xb5e   :  { %3083 = vmatprep.subr.mxu0 %v7046_v25  ;;  %3154 = vmatprep.subr.mxu1 %v7047_v23  ;;  %v2235_v62 = vadd.f32 %v7090_v36, %v5908_v20  ;;  %v6266_v36 = vld [vmem:[#allocation12 + $0xa8] sm:$0xff] }
 0xb5f   :  { %3084 = vmatpush1.msra.mxu0 %v7048_v49  ;;  %3155 = vmatpush1.msra.mxu1 %v7049_v50 }
 0xb60   :  { %3085 = vmatprep.subr.mxu0 %v7050_v48  ;;  %3156 = vmatprep.subr.mxu1 %v7051_v61 }
 0xb61   :  { %3086 = vmatpush1.msra.mxu0 %v7052_v52  ;;  %3157 = vmatpush1.msra.mxu1 %v7053_v29 }
 0xb62   :  { %3087 = vmatprep.subr.mxu0 %v7054_v0  ;;  %3158 = vmatprep.subr.mxu1 %v7055_v38 }
 0xb63   :  { %3088 = vmatpush1.msra.mxu0 %v7056_v59  ;;  %3159 = vmatpush1.msra.mxu1 %v7074_v57  ;;  %v6194_v57 = vld [vmem:[#allocation12 + $0x168] sm:$0xff] }
 0xb64   :  { %3089 = vmatprep.subr.mxu0 %v7075_v56  ;;  %3160 = vmatprep.subr.mxu1 %v7076_v55  ;;  %v6197_v56 = vld [vmem:[#allocation12 + $0x178] sm:$0xff]  ;;  %v6200_v55 = vld [vmem:[#allocation12 + $0x160] sm:$0xff] }
 0xb65   :  { %3090 = vmatpush1.msra.mxu0 %v7077_v3  ;;  %3161 = vmatpush1.msra.mxu1 %v7078_v2  ;;  %v6203_v3 = vld [vmem:[#allocation12 + $0x170] sm:$0xff]  ;;  %v6206_v2 = vld [vmem:[#allocation12 + $0x148] sm:$0xff] }
 0xb66   :  { %3091 = vmatprep.subr.mxu0 %v7079_v60  ;;  %3162 = vmatprep.subr.mxu1 %v7080_v58  ;;  %v6209_v60 = vld [vmem:[#allocation12 + $0x158] sm:$0xff]  ;;  %v6212_v58 = vld [vmem:[#allocation12 + $0x140] sm:$0xff] }
 0xb67   :  { %3092 = vmatpush1.msra.mxu0 %v7081_v11  ;;  %3125 = vmatprep.mubr.f32.mxu0 %v7082_v47  ;;  %v6215_v11 = vld [vmem:[#allocation12 + $0x150] sm:$0xff] }
 0xb68   :  { %3163 = vmatpush1.msra.mxu1 %v7083_v27  ;;  %3196 = vmatprep.mubr.f32.mxu1 %v7082_v47  ;;  %v6218_v27 = vld [vmem:[#allocation12 + $0x128] sm:$0xff] }
 0xb69   :  { %3235 = vmatprep.subr.mxu0 %v6158_v28  ;;  %3306 = vmatprep.subr.mxu1 %v6161_v31 }
 0xc08   :  { %v2953_v15 = vpop.f32.mrf.mxu0  ;;  %v3024_v24 = vpop.f32.mrf.mxu1 }
 0xc09   :  { %v3029_v18 = vadd.f32 %v2953_v15, %v2122_v51  ;;  %v3031_v25 = vadd.f32 %v3024_v24, %v2235_v62  ;;  %v6224_v51 = vld [vmem:[#allocation12 + $0x120] sm:$0xff]  ;;  %v6227_v15 = vld [vmem:[#allocation12 + $0x130] sm:$0xff]  ;;  %v6269_v62 = vld [vmem:[#allocation12 + $0xb8] sm:$0xff] }
 0xc0a   :  { %v2955_v19 = vpop.f32.mrf.mxu0  ;;  %v3026_v32 = vpop.f32.mrf.mxu1  ;;  %v6248_v24 = vld [vmem:[#allocation12 + $0xe0] sm:$0xff] }
 0xc0b   :  { %v3846_v21 = vmul.f32 -1.442695, %v3029_v18  ;;  %v3030_v22 = vadd.f32 %v2955_v19, %v2124_v17  ;;  %v3032_v35 = vadd.f32 %v3026_v32, %v2237_v34  ;;  %v6233_v17 = vld [vmem:[#allocation12 + $0x118] sm:$0xff]  ;;  %v6236_v18 = vld [vmem:[#allocation12 + $0x100] sm:$0xff]  ;;  %v6239_v19 = vld [vmem:[#allocation12 + $0x110] sm:$0xff] }
 0xc0c   :  { %v6254_v32 = vld [vmem:[#allocation12 + $0xc8] sm:$0xff]  ;;  %v6260_v34 = vld [vmem:[#allocation12 + $0xc0] sm:$0xff] }
 0xc0d   :  { %4051 = vpow2.f32 %v3846_v21  ;;  %v3847_v1 = vmul.f32 -1.442695, %v3030_v22  ;;  %v3848_v23 = vmul.f32 -1.442695, %v3032_v35  ;;  %v6242_v21 = vld [vmem:[#allocation12 + $0xe8] sm:$0xff]  ;;  %v6245_v22 = vld [vmem:[#allocation12 + $0xf8] sm:$0xff] }
 0xc0e   :  { %v6263_v35 = vld [vmem:[#allocation12 + $0xd0] sm:$0xff] }
 0xc0f   :  { %4053 = vpow2.f32 %v3847_v1  ;;  %v6251_v1 = vld [vmem:[#allocation12 + $0xf0] sm:$0xff] }
 0xc10   :  { %4055 = vtanh.f32 %v3031_v25  ;;  %v6272_v25 = vld [vmem:[#allocation12 + $0xa0] sm:$0xff] }
 0xc11   :  { %4057 = vpow2.f32 %v3848_v23  ;;  %v6275_v23 = vld [vmem:[#allocation12 + $0xb0] sm:$0xff] }
 0xc12   :  { %7091 = vst [vmem:[#allocation77_spill] sm:$0xff] %v6275_v23 }
 0xc1a   :  { %v4052_v49 = vpop.eup %4051 }
 0xc1b   :  { %v3036_v50 = vadd.f32 1.0, %v4052_v49  ;;  %v6278_v49 = vld [vmem:[#allocation12 + $0x88] sm:$0xff] }
 0xc1c   :  { %v4054_v48 = vpop.eup %4053  ;;  %7092 = vst [vmem:[#allocation34_spill] sm:$0xff] %v6278_v49 }
 0xc1d   :  { %4059 = vrcp.f32 %v3036_v50  ;;  %v3042_v61 = vadd.f32 1.0, %v4054_v48  ;;  %v4056_v52 = vpop.eup %4055  ;;  %v6281_v50 = vld [vmem:[#allocation12 + $0x98] sm:$0xff]  ;;  %v6284_v48 = vld [vmem:[#allocation12 + $0x80] sm:$0xff] }
 0xc1e   :  { %v4058_v29 = vpop.eup %4057  ;;  %7093 = vst [vmem:[#allocation32_spill] sm:$0xff] %v6281_v50  ;;  %7094 = vst [vmem:[#allocation54_spill] sm:$0xff] %v6284_v48 }
 0xc1f   :  { %4061 = vrcp.f32 %v3042_v61  ;;  %v3049_v42 = vadd.f32 1.0, %v4058_v29  ;;  %v6287_v61 = vld [vmem:[#allocation12 + $0x90] sm:$0xff]  ;;  %v6293_v29 = vld [vmem:[#allocation12 + $0x78] sm:$0xff] }
 0xc20   :  { %7095 = vst [vmem:[#allocation55_spill] sm:$0xff] %v6287_v61  ;;  %7097 = vst [vmem:[#allocation56_spill] sm:$0xff] %v6293_v29 }
 0xc21   :  { %4063 = vrcp.f32 %v3049_v42  ;;  %v6305_v42 = vld [vmem:[#allocation12 + $0x58] sm:$0xff] }
 0xc22   :  { %7101 = vst [vmem:[#allocation25_spill] sm:$0xff] %v6305_v42 }
 0xc2a   :  { %v4060_v0 = vpop.eup %4059 }
 0xc2b   :  { %v3053_v38 = vmul.f32 %v4060_v0, %v4056_v52  ;;  %v6290_v52 = vld [vmem:[#allocation12 + $0x68] sm:$0xff]  ;;  %v6296_v0 = vld [vmem:[#allocation12 + $0x60] sm:$0xff] }
 0xc2c   :  { %v4062_v59 = vpop.eup %4061  ;;  %7096 = vst [vmem:[#allocation53_spill] sm:$0xff] %v6290_v52  ;;  %7098 = vst [vmem:[#allocation58_spill] sm:$0xff] %v6296_v0 }
 0xc2d   :  { %v3052_v5 = vmul.f32 %v4062_v59, %v6067_v7  ;;  %v6188_v7 = vld [vmem:[#allocation12 + $0x180] sm:$0xff]  ;;  %v6302_v59 = vld [vmem:[#allocation12 + $0x48] sm:$0xff] }
 0xc2e   :  { %v4064_v43 = vpop.eup %4063  ;;  %7100 = vst [vmem:[#allocation57_spill] sm:$0xff] %v6302_v59 }
 0xc2f   :  { %v6173_v13 = vadd.f32 %v3053_v38, %v3052_v5  ;;  %v6299_v38 = vld [vmem:[#allocation12 + $0x70] sm:$0xff]  ;;  %v6308_v5 = vld [vmem:[#allocation12 + $0x40] sm:$0xff] }
 0xc30   :  { %7099 = vst [vmem:[#allocation59_spill] sm:$0xff] %v6299_v38  ;;  %7102 = vst [vmem:[#allocation26_spill] sm:$0xff] %v6308_v5 }
 0xc31   :  { %4065 = vtanh.f32 %v6173_v13 }
 0xc3e   :  { %v4066_v8 = vpop.eup %4065 }
 0xc3f   :  { %v3056_v54 = vmul.f32 %v4066_v8, %v4064_v43  ;;  %v6311_v43 = vld [vmem:[#allocation12 + $0x50] sm:$0xff]  ;;  %v6314_v8 = vld [vmem:[#allocation12 + $0x28] sm:$0xff] }
 0xc40   :  { %7103 = vst [vmem:[#allocation60_spill] sm:$0xff] %v6311_v43  ;;  %7104 = vst [vmem:[#allocation62_spill] sm:$0xff] %v6314_v8 }
 0xc41   :  { %3126 = vmatmul.mubr.f32.vlgmr.msra.gmra.mxu0 %v3056_v54  ;;  %3197 = vmatmul.mubr.f32.vlgmr.msra.gmra.mxu1 %v3056_v54  ;;  %v6317_v54 = vld [vmem:[#allocation12 + $0x38] sm:$0xff] }
 0xc42   :  { %3236 = vmatpush1.msra.mxu0 %v6070_v39  ;;  %3307 = vmatpush1.msra.mxu1 %v6073_v10  ;;  %7105 = vst [vmem:[#allocation63_spill] sm:$0xff] %v6317_v54 }
 0xc43   :  { %3237 = vmatprep.subr.mxu0 %v6076_v26  ;;  %3308 = vmatprep.subr.mxu1 %v6079_v12 }
 0xc44   :  { %3238 = vmatpush1.msra.mxu0 %v6082_v40  ;;  %3309 = vmatpush1.msra.mxu1 %v6085_v30 }
 0xc45   :  { %3239 = vmatprep.subr.mxu0 %v6088_v37  ;;  %3310 = vmatprep.subr.mxu1 %v6091_v6 }
 0xc46   :  { %3240 = vmatpush1.msra.mxu0 %v6094_v41  ;;  %3311 = vmatpush1.msra.mxu1 %v6097_v44 }
 0xc47   :  { %3241 = vmatprep.subr.mxu0 %v6100_v14  ;;  %3312 = vmatprep.subr.mxu1 %v6103_v53 }
 0xc48   :  { %3242 = vmatpush1.msra.mxu0 %v6188_v7  ;;  %3313 = vmatpush1.msra.mxu1 %v6191_v46 }
 0xc49   :  { %3243 = vmatprep.subr.mxu0 %v6194_v57  ;;  %3314 = vmatprep.subr.mxu1 %v6197_v56 }
 0xc4a   :  { %3244 = vmatpush1.msra.mxu0 %v6200_v55  ;;  %3315 = vmatpush1.msra.mxu1 %v6203_v3 }
 0xc4b   :  { %3245 = vmatprep.subr.mxu0 %v6206_v2  ;;  %3316 = vmatprep.subr.mxu1 %v6209_v60 }
 0xc4c   :  { %3246 = vmatpush1.msra.mxu0 %v6212_v58  ;;  %3317 = vmatpush1.msra.mxu1 %v6215_v11 }
 0xc4d   :  { %3247 = vmatprep.subr.mxu0 %v6218_v27  ;;  %3318 = vmatprep.subr.mxu1 %v6221_v63 }
 0xc4e   :  { %3248 = vmatpush1.msra.mxu0 %v6224_v51  ;;  %3319 = vmatpush1.msra.mxu1 %v6227_v15 }
 0xc4f   :  { %3249 = vmatprep.subr.mxu0 %v6230_v16  ;;  %3320 = vmatprep.subr.mxu1 %v6233_v17 }
 0xc50   :  { %3250 = vmatpush1.msra.mxu0 %v6236_v18  ;;  %3321 = vmatpush1.msra.mxu1 %v6239_v19 }
 0xc51   :  { %3251 = vmatprep.subr.mxu0 %v6242_v21  ;;  %3322 = vmatprep.subr.mxu1 %v6245_v22 }
 0xc52   :  { %3252 = vmatpush1.msra.mxu0 %v6248_v24  ;;  %3323 = vmatpush1.msra.mxu1 %v6251_v1 }
 0xc53   :  { %3253 = vmatprep.subr.mxu0 %v6254_v32  ;;  %3324 = vmatprep.subr.mxu1 %v6257_v33 }
 0xc54   :  { %3254 = vmatpush1.msra.mxu0 %v6260_v34  ;;  %3325 = vmatpush1.msra.mxu1 %v6263_v35 }
 0xc55   :  { %3255 = vmatprep.subr.mxu0 %v6266_v36  ;;  %3326 = vmatprep.subr.mxu1 %v6269_v62 }
 0xc56   :  { %3256 = vmatpush1.msra.mxu0 %v6272_v25  ;;  %3327 = vmatpush1.msra.mxu1 %v6275_v23 }
 0xc57   :  { %3257 = vmatprep.subr.mxu0 %v6278_v49  ;;  %3328 = vmatprep.subr.mxu1 %v6281_v50  ;;  %v7115_v50 = vld [vmem:[#allocation44_spill] sm:$0xff] }
 0xc58   :  { %3258 = vmatpush1.msra.mxu0 %v6284_v48  ;;  %3329 = vmatpush1.msra.mxu1 %v6287_v61 }
 0xc59   :  { %3259 = vmatprep.subr.mxu0 %v6290_v52  ;;  %3330 = vmatprep.subr.mxu1 %v6293_v29 }
 0xc5a   :  { %3260 = vmatpush1.msra.mxu0 %v6296_v0  ;;  %3331 = vmatpush1.msra.mxu1 %v6299_v38 }
 0xc5b   :  { %3261 = vmatprep.subr.mxu0 %v6302_v59  ;;  %3332 = vmatprep.subr.mxu1 %v6305_v42  ;;  %v6320_v59 = vld [vmem:[#allocation12 + $0x20] sm:$0xff]  ;;  %v6323_v42 = vld [vmem:[#allocation12 + $0x30] sm:$0xff] }
 0xc5c   :  { %3262 = vmatpush1.msra.mxu0 %v6308_v5  ;;  %3333 = vmatpush1.msra.mxu1 %v6311_v43  ;;  %7106 = vst [vmem:[#allocation47_spill] sm:$0xff] %v6320_v59  ;;  %7107 = vst [vmem:[#allocation52_spill] sm:$0xff] %v6323_v42  ;;  %v6326_v5 = vld [vmem:[#allocation12 + $0x8] sm:$0xff]  ;;  %v6329_v43 = vld [vmem:[#allocation12 + $0x18] sm:$0xff] }
 0xc5d   :  { %3263 = vmatprep.subr.mxu0 %v6314_v8  ;;  %3334 = vmatprep.subr.mxu1 %v6317_v54  ;;  %7108 = vst [vmem:[#allocation35_spill] sm:$0xff] %v6326_v5  ;;  %7109 = vst [vmem:[#allocation37_spill] sm:$0xff] %v6329_v43  ;;  %v6332_v8 = vld [vmem:[#allocation12] sm:$0xff]  ;;  %v6336_v54 = vld [vmem:[#allocation12 + $0x10] sm:$0xff] }
 0xc5e   :  { %3264 = vmatpush1.msra.mxu0 %v6320_v59  ;;  %3335 = vmatpush1.msra.mxu1 %v6323_v42  ;;  %7110 = vst [vmem:[#allocation38_spill] sm:$0xff] %v6332_v8  ;;  %7111 = vst [vmem:[#allocation36_spill] sm:$0xff] %v6336_v54  ;;  %v7113_v59 = vld [vmem:[#allocation45_spill] sm:$0xff] }
 0xc5f   :  { %3265 = vmatprep.subr.mxu0 %v6326_v5  ;;  %3336 = vmatprep.subr.mxu1 %v6329_v43  ;;  %v7112_v5 = vld [vmem:[#allocation43_spill] sm:$0xff]  ;;  %v2130_v38 = vadd.f32 %v7113_v59, %v5891_v45 }
 0xc60   :  { %3266 = vmatpush1.msra.mxu0 %v6332_v8  ;;  %3299 = vmatprep.mubr.f32.mxu0 %v7082_v47  ;;  %v2128_v42 = vadd.f32 %v7112_v5, %v7086_v4  ;;  %v2241_v5 = vadd.f32 %v7115_v50, %v5908_v20  ;;  %v7118_v50 = vld [vmem:[#allocation32_spill] sm:$0xff] }
 0xc61   :  { %3337 = vmatpush1.msra.mxu1 %v6336_v54  ;;  %3370 = vmatprep.mubr.f32.mxu1 %v7082_v47 }
 0xc62   :  { %3409 = vmatprep.subr.mxu0 %v6158_v28  ;;  %3480 = vmatprep.subr.mxu1 %v6161_v31  ;;  %v7114_v28 = vld [vmem:[#allocation68_spill] sm:$0xff] }
 0xc63   :  { %v2243_v48 = vadd.f32 %v7114_v28, %v7042_v9 }
 0xd01   :  { %v3127_v43 = vpop.f32.mrf.mxu0  ;;  %v3198_v61 = vpop.f32.mrf.mxu1 }
 0xd02   :  { %v3203_v8 = vadd.f32 %v3127_v43, %v2128_v42  ;;  %v3205_v4 = vadd.f32 %v3198_v61, %v2241_v5  ;;  %v7119_v61 = vld [vmem:[#allocation54_spill] sm:$0xff]  ;;  %v7121_v5 = vld [vmem:[#allocation53_spill] sm:$0xff] }
 0xd03   :  { %v3129_v0 = vpop.f32.mrf.mxu0  ;;  %v3200_v47 = vpop.f32.mrf.mxu1 }
 0xd04   :  { %v3849_v29 = vmul.f32 -1.442695, %v3203_v8  ;;  %v3204_v52 = vadd.f32 %v3129_v0, %v2130_v38  ;;  %v3206_v31 = vadd.f32 %v3200_v47, %v2243_v48 }
 0xd06   :  { %4067 = vpow2.f32 %v3849_v29  ;;  %v3850_v54 = vmul.f32 -1.442695, %v3204_v52  ;;  %v3851_v49 = vmul.f32 -1.442695, %v3206_v31 }
 0xd08   :  { %4069 = vpow2.f32 %v3850_v54  ;;  %v7120_v54 = vld [vmem:[#allocation55_spill] sm:$0xff] }
 0xd09   :  { %4071 = vtanh.f32 %v3205_v4 }
 0xd0a   :  { %4073 = vpow2.f32 %v3851_v49  ;;  %v7117_v49 = vld [vmem:[#allocation34_spill] sm:$0xff] }
 0xd13   :  { %v4068_v23 = vpop.eup %4067 }
 0xd14   :  { %v3210_v59 = vadd.f32 1.0, %v4068_v23 }
 0xd15   :  { %v4070_v42 = vpop.eup %4069 }
 0xd16   :  { %4075 = vrcp.f32 %v3210_v59  ;;  %v3216_v29 = vadd.f32 1.0, %v4070_v42  ;;  %v4072_v52 = vpop.eup %4071  ;;  %v7122_v59 = vld [vmem:[#allocation56_spill] sm:$0xff]  ;;  %v7123_v42 = vld [vmem:[#allocation58_spill] sm:$0xff] }
 0xd17   :  { %v4074_v0 = vpop.eup %4073 }
 0xd18   :  { %4077 = vrcp.f32 %v3216_v29  ;;  %v3223_v28 = vadd.f32 1.0, %v4074_v0  ;;  %v7124_v29 = vld [vmem:[#allocation59_spill] sm:$0xff]  ;;  %v7126_v0 = vld [vmem:[#allocation25_spill] sm:$0xff] }
 0xd1a   :  { %4079 = vrcp.f32 %v3223_v28  ;;  %v7130_v28 = vld [vmem:[#allocation63_spill] sm:$0xff] }
 0xd23   :  { %v4076_v38 = vpop.eup %4075 }
 0xd24   :  { %v3227_v43 = vmul.f32 %v4076_v38, %v4072_v52  ;;  %v7125_v52 = vld [vmem:[#allocation57_spill] sm:$0xff]  ;;  %v7127_v38 = vld [vmem:[#allocation26_spill] sm:$0xff] }
 0xd25   :  { %v4078_v8 = vpop.eup %4077 }
 0xd26   :  { %v3226_v47 = vmul.f32 %v4078_v8, %v6173_v13  ;;  %v7116_v13 = vld [vmem:[#allocation77_spill] sm:$0xff]  ;;  %v7129_v8 = vld [vmem:[#allocation62_spill] sm:$0xff] }
 0xd27   :  { %v4080_v31 = vpop.eup %4079 }
 0xd28   :  { %v6351_v48 = vadd.f32 %v3227_v43, %v3226_v47  ;;  %v7128_v43 = vld [vmem:[#allocation60_spill] sm:$0xff]  ;;  %v7131_v47 = vld [vmem:[#allocation47_spill] sm:$0xff] }
 0xd2a   :  { %4081 = vtanh.f32 %v6351_v48 }
 0xd37   :  { %v4082_v4 = vpop.eup %4081 }
 0xd38   :  { %v3230_v23 = vmul.f32 %v4082_v4, %v4080_v31  ;;  %v7132_v31 = vld [vmem:[#allocation52_spill] sm:$0xff]  ;;  %v7133_v4 = vld [vmem:[#allocation35_spill] sm:$0xff] }
 0xd3a   :  { %3300 = vmatmul.mubr.f32.vlgmr.msra.gmra.mxu0 %v3230_v23  ;;  %3371 = vmatmul.mubr.f32.vlgmr.msra.gmra.mxu1 %v3230_v23  ;;  %v7134_v23 = vld [vmem:[#allocation37_spill] sm:$0xff] }
 0xd3b   :  { %3410 = vmatpush1.msra.mxu0 %v6070_v39  ;;  %3481 = vmatpush1.msra.mxu1 %v6073_v10 }
 0xd3c   :  { %3411 = vmatprep.subr.mxu0 %v6076_v26  ;;  %3482 = vmatprep.subr.mxu1 %v6079_v12 }
 0xd3d   :  { %3412 = vmatpush1.msra.mxu0 %v6082_v40  ;;  %3483 = vmatpush1.msra.mxu1 %v6085_v30 }
 0xd3e   :  { %3413 = vmatprep.subr.mxu0 %v6088_v37  ;;  %3484 = vmatprep.subr.mxu1 %v6091_v6 }
 0xd3f   :  { %3414 = vmatpush1.msra.mxu0 %v6094_v41  ;;  %3485 = vmatpush1.msra.mxu1 %v6097_v44 }
 0xd40   :  { %3415 = vmatprep.subr.mxu0 %v6100_v14  ;;  %3486 = vmatprep.subr.mxu1 %v6103_v53 }
 0xd41   :  { %3416 = vmatpush1.msra.mxu0 %v6188_v7  ;;  %3487 = vmatpush1.msra.mxu1 %v6191_v46 }
 0xd42   :  { %3417 = vmatprep.subr.mxu0 %v6194_v57  ;;  %3488 = vmatprep.subr.mxu1 %v6197_v56 }
 0xd43   :  { %3418 = vmatpush1.msra.mxu0 %v6200_v55  ;;  %3489 = vmatpush1.msra.mxu1 %v6203_v3 }
 0xd44   :  { %3419 = vmatprep.subr.mxu0 %v6206_v2  ;;  %3490 = vmatprep.subr.mxu1 %v6209_v60 }
 0xd45   :  { %3420 = vmatpush1.msra.mxu0 %v6212_v58  ;;  %3491 = vmatpush1.msra.mxu1 %v6215_v11 }
 0xd46   :  { %3421 = vmatprep.subr.mxu0 %v6218_v27  ;;  %3492 = vmatprep.subr.mxu1 %v6221_v63 }
 0xd47   :  { %3422 = vmatpush1.msra.mxu0 %v6224_v51  ;;  %3493 = vmatpush1.msra.mxu1 %v6227_v15 }
 0xd48   :  { %3423 = vmatprep.subr.mxu0 %v6230_v16  ;;  %3494 = vmatprep.subr.mxu1 %v6233_v17 }
 0xd49   :  { %3424 = vmatpush1.msra.mxu0 %v6236_v18  ;;  %3495 = vmatpush1.msra.mxu1 %v6239_v19 }
 0xd4a   :  { %3425 = vmatprep.subr.mxu0 %v6242_v21  ;;  %3496 = vmatprep.subr.mxu1 %v6245_v22 }
 0xd4b   :  { %3426 = vmatpush1.msra.mxu0 %v6248_v24  ;;  %3497 = vmatpush1.msra.mxu1 %v6251_v1 }
 0xd4c   :  { %3427 = vmatprep.subr.mxu0 %v6254_v32  ;;  %3498 = vmatprep.subr.mxu1 %v6257_v33 }
 0xd4d   :  { %3428 = vmatpush1.msra.mxu0 %v6260_v34  ;;  %3499 = vmatpush1.msra.mxu1 %v6263_v35 }
 0xd4e   :  { %3429 = vmatprep.subr.mxu0 %v6266_v36  ;;  %3500 = vmatprep.subr.mxu1 %v6269_v62 }
 0xd4f   :  { %3430 = vmatpush1.msra.mxu0 %v6272_v25  ;;  %3501 = vmatpush1.msra.mxu1 %v7116_v13 }
 0xd50   :  { %3431 = vmatprep.subr.mxu0 %v7117_v49  ;;  %3502 = vmatprep.subr.mxu1 %v7118_v50  ;;  %v7144_v50 = vld [vmem:[#allocation71_spill] sm:$0xff] }
 0xd51   :  { %3432 = vmatpush1.msra.mxu0 %v7119_v61  ;;  %3503 = vmatpush1.msra.mxu1 %v7120_v54 }
 0xd52   :  { %3433 = vmatprep.subr.mxu0 %v7121_v5  ;;  %3504 = vmatprep.subr.mxu1 %v7122_v59 }
 0xd53   :  { %3434 = vmatpush1.msra.mxu0 %v7123_v42  ;;  %3505 = vmatpush1.msra.mxu1 %v7124_v29  ;;  %v7135_v29 = vld [vmem:[#allocation38_spill] sm:$0xff] }
 0xd54   :  { %3435 = vmatprep.subr.mxu0 %v7125_v52  ;;  %3506 = vmatprep.subr.mxu1 %v7126_v0  ;;  %v7136_v52 = vmov 0.0   ;;  %v7137_v0 = vld [vmem:[#allocation36_spill] sm:$0xff] }
 0xd55   :  { %3436 = vmatpush1.msra.mxu0 %v7127_v38  ;;  %3507 = vmatpush1.msra.mxu1 %v7128_v43  ;;  %v7138_v43 = vld [vmem:[#allocation31_spill] sm:$0xff] }
 0xd56   :  { %3437 = vmatprep.subr.mxu0 %v7129_v8  ;;  %3508 = vmatprep.subr.mxu1 %v7130_v28  ;;  %v7139_v8 = vld [vmem:[#allocation33_spill] sm:$0xff]  ;;  %v7140_v28 = vld [vmem:[#allocation46_spill] sm:$0xff] }
 0xd57   :  { %3438 = vmatpush1.msra.mxu0 %v7131_v47  ;;  %3509 = vmatpush1.msra.mxu1 %v7132_v31  ;;  %v7141_v47 = vld [vmem:[#allocation70_spill] sm:$0xff] }
 0xd58   :  { %3439 = vmatprep.subr.mxu0 %v7133_v4  ;;  %3510 = vmatprep.subr.mxu1 %v7134_v23  ;;  %v2134_v38 = vadd.f32 %v7141_v47, %v7140_v28  ;;  %v7142_v4 = vld [vmem:[#allocation69_spill] sm:$0xff]  ;;  %v2247_v47 = vadd.f32 %v7144_v50, %v5908_v20 }
 0xd59   :  { %3440 = vmatpush1.msra.mxu0 %v7135_v29  ;;  %3473 = vmatprep.mubr.f32.mxu0 %v7136_v52  ;;  %v2136_v42 = vadd.f32 %v7142_v4, %v5891_v45 }
 0xd5a   :  { %3511 = vmatpush1.msra.mxu1 %v7137_v0  ;;  %3544 = vmatprep.mubr.f32.mxu1 %v7136_v52 }
 0xd5b   :  { %3583 = vmatprep.subr.mxu0 %v7138_v43  ;;  %3654 = vmatprep.subr.mxu1 %v7139_v8  ;;  %v7143_v43 = vld [vmem:[#allocation76_spill] sm:$0xff] }
 0xd5c   :  { %v2249_v61 = vadd.f32 %v7143_v43, %v7042_v9 }
 0xdfa   :  { %v3301_v31 = vpop.f32.mrf.mxu0  ;;  %v3372_v54 = vpop.f32.mrf.mxu1 }
 0xdfb   :  { %v3377_v23 = vadd.f32 %v3301_v31, %v2134_v38  ;;  %v3379_v28 = vadd.f32 %v3372_v54, %v2247_v47 }
 0xdfc   :  { %v3303_v59 = vpop.f32.mrf.mxu0  ;;  %v3374_v52 = vpop.f32.mrf.mxu1 }
 0xdfd   :  { %v3852_v29 = vmul.f32 -1.442695, %v3377_v23  ;;  %v3378_v5 = vadd.f32 %v3303_v59, %v2136_v42  ;;  %v3380_v8 = vadd.f32 %v3374_v52, %v2249_v61 }
 0xdff   :  { %4083 = vpow2.f32 %v3852_v29  ;;  %v3853_v0 = vmul.f32 -1.442695, %v3378_v5  ;;  %v3854_v49 = vmul.f32 -1.442695, %v3380_v8 }
 0xe01   :  { %4085 = vpow2.f32 %v3853_v0 }
 0xe02   :  { %4087 = vtanh.f32 %v3379_v28 }
 0xe03   :  { %4089 = vpow2.f32 %v3854_v49 }
 0xe0c   :  { %v4084_v13 = vpop.eup %4083 }
 0xe0d   :  { %v3384_v4 = vadd.f32 1.0, %v4084_v13 }
 0xe0e   :  { %v4086_v38 = vpop.eup %4085 }
 0xe0f   :  { %4091 = vrcp.f32 %v3384_v4  ;;  %v3390_v59 = vadd.f32 1.0, %v4086_v38  ;;  %v4088_v5 = vpop.eup %4087 }
 0xe10   :  { %v4090_v42 = vpop.eup %4089 }
 0xe11   :  { %4093 = vrcp.f32 %v3390_v59  ;;  %v3397_v23 = vadd.f32 1.0, %v4090_v42 }
 0xe13   :  { %4095 = vrcp.f32 %v3397_v23 }
 0xe1c   :  { %v4092_v29 = vpop.eup %4091 }
 0xe1d   :  { %v3401_v0 = vmul.f32 %v4092_v29, %v4088_v5 }
 0xe1e   :  { %v4094_v31 = vpop.eup %4093 }
 0xe1f   :  { %v3400_v61 = vmul.f32 %v4094_v31, %v6351_v48 }
 0xe20   :  { %v4096_v13 = vpop.eup %4095 }
 0xe21   :  { %v6429_v52 = vadd.f32 %v3401_v0, %v3400_v61 }
 0xe23   :  { %4097 = vtanh.f32 %v6429_v52 }
 0xe30   :  { %v4098_v50 = vpop.eup %4097 }
 0xe31   :  { %v3404_v54 = vmul.f32 %v4098_v50, %v4096_v13 }
 0xe33   :  { %3474 = vmatmul.mubr.f32.vlgmr.msra.gmra.mxu0 %v3404_v54  ;;  %3545 = vmatmul.mubr.f32.vlgmr.msra.gmra.mxu1 %v3404_v54 }
 0xe34   :  { %3584 = vmatpush1.msra.mxu0 %v6070_v39  ;;  %3655 = vmatpush1.msra.mxu1 %v6073_v10  ;;  %v7145_v39 = vld [vmem:[#allocation77_spill] sm:$0xff]  ;;  %v7146_v10 = vld [vmem:[#allocation34_spill] sm:$0xff] }
 0xe35   :  { %3585 = vmatprep.subr.mxu0 %v6076_v26  ;;  %3656 = vmatprep.subr.mxu1 %v6079_v12  ;;  %v7147_v26 = vld [vmem:[#allocation32_spill] sm:$0xff]  ;;  %v7148_v12 = vld [vmem:[#allocation54_spill] sm:$0xff] }
 0xe36   :  { %3586 = vmatpush1.msra.mxu0 %v6082_v40  ;;  %3657 = vmatpush1.msra.mxu1 %v6085_v30  ;;  %v7149_v40 = vld [vmem:[#allocation55_spill] sm:$0xff]  ;;  %v7150_v30 = vld [vmem:[#allocation53_spill] sm:$0xff] }
 0xe37   :  { %3587 = vmatprep.subr.mxu0 %v6088_v37  ;;  %3658 = vmatprep.subr.mxu1 %v6091_v6  ;;  %v7151_v37 = vld [vmem:[#allocation56_spill] sm:$0xff]  ;;  %v7152_v6 = vld [vmem:[#allocation58_spill] sm:$0xff] }
 0xe38   :  { %3588 = vmatpush1.msra.mxu0 %v6094_v41  ;;  %3659 = vmatpush1.msra.mxu1 %v6097_v44  ;;  %v7153_v41 = vld [vmem:[#allocation59_spill] sm:$0xff]  ;;  %v7154_v44 = vld [vmem:[#allocation57_spill] sm:$0xff] }
 0xe39   :  { %3589 = vmatprep.subr.mxu0 %v6100_v14  ;;  %3660 = vmatprep.subr.mxu1 %v6103_v53  ;;  %v7155_v14 = vld [vmem:[#allocation25_spill] sm:$0xff]  ;;  %v7156_v53 = vld [vmem:[#allocation26_spill] sm:$0xff] }
 0xe3a   :  { %3590 = vmatpush1.msra.mxu0 %v6188_v7  ;;  %3661 = vmatpush1.msra.mxu1 %v6191_v46  ;;  %v7157_v7 = vld [vmem:[#allocation60_spill] sm:$0xff]  ;;  %v7158_v46 = vld [vmem:[#allocation62_spill] sm:$0xff] }
 0xe3b   :  { %3591 = vmatprep.subr.mxu0 %v6194_v57  ;;  %3662 = vmatprep.subr.mxu1 %v6197_v56  ;;  %v7159_v57 = vld [vmem:[#allocation63_spill] sm:$0xff] }
 0xe3c   :  { %3592 = vmatpush1.msra.mxu0 %v6200_v55  ;;  %3663 = vmatpush1.msra.mxu1 %v6203_v3  ;;  %v7160_v56 = vld [vmem:[#allocation47_spill] sm:$0xff]  ;;  %v7161_v55 = vld [vmem:[#allocation52_spill] sm:$0xff] }
 0xe3d   :  { %3593 = vmatprep.subr.mxu0 %v6206_v2  ;;  %3664 = vmatprep.subr.mxu1 %v6209_v60  ;;  %v7162_v3 = vld [vmem:[#allocation35_spill] sm:$0xff]  ;;  %v7163_v2 = vld [vmem:[#allocation37_spill] sm:$0xff]  ;;  %v7164_v60 = vld [vmem:[#allocation38_spill] sm:$0xff] }
 0xe3e   :  { %3594 = vmatpush1.msra.mxu0 %v6212_v58  ;;  %3665 = vmatpush1.msra.mxu1 %v6215_v11  ;;  %v7165_v58 = vmov 0.0   ;;  %v7166_v11 = vld [vmem:[#allocation36_spill] sm:$0xff] }
 0xe3f   :  { %3595 = vmatprep.subr.mxu0 %v6218_v27  ;;  %3666 = vmatprep.subr.mxu1 %v6221_v63  ;;  %v7167_v27 = vld [vmem:[#allocation46_spill] sm:$0xff]  ;;  %v7168_v63 = vld [vmem:[#allocation27_spill] sm:$0xff] }
 0xe40   :  { %3596 = vmatpush1.msra.mxu0 %v6224_v51  ;;  %3667 = vmatpush1.msra.mxu1 %v6227_v15  ;;  %v2140_v51 = vadd.f32 %v7168_v63, %v7167_v27 }
 0xe41   :  { %3597 = vmatprep.subr.mxu0 %v6230_v16  ;;  %3668 = vmatprep.subr.mxu1 %v6233_v17  ;;  %v7169_v16 = vld [vmem:[#allocation50_spill] sm:$0xff] }
 0xe42   :  { %3598 = vmatpush1.msra.mxu0 %v6236_v18  ;;  %3669 = vmatpush1.msra.mxu1 %v6239_v19  ;;  %v2142_v17 = vadd.f32 %v7169_v16, %v5891_v45 }
 0xe43   :  { %3599 = vmatprep.subr.mxu0 %v6242_v21  ;;  %3670 = vmatprep.subr.mxu1 %v6245_v22 }
 0xe44   :  { %3600 = vmatpush1.msra.mxu0 %v6248_v24  ;;  %3671 = vmatpush1.msra.mxu1 %v6251_v1 }
 0xe45   :  { %3601 = vmatprep.subr.mxu0 %v6254_v32  ;;  %3672 = vmatprep.subr.mxu1 %v6257_v33  ;;  %v7170_v33 = vld [vmem:[#allocation72_spill] sm:$0xff] }
 0xe46   :  { %3602 = vmatpush1.msra.mxu0 %v6260_v34  ;;  %3673 = vmatpush1.msra.mxu1 %v6263_v35  ;;  %v2255_v34 = vadd.f32 %v7170_v33, %v7042_v9 }
 0xe47   :  { %3603 = vmatprep.subr.mxu0 %v6266_v36  ;;  %3674 = vmatprep.subr.mxu1 %v6269_v62  ;;  %v7171_v36 = vld [vmem:[#allocation30_spill] sm:$0xff] }
 0xe48   :  { %3604 = vmatpush1.msra.mxu0 %v6272_v25  ;;  %3675 = vmatpush1.msra.mxu1 %v7145_v39  ;;  %v2253_v62 = vadd.f32 %v7171_v36, %v5908_v20 }
 0xe49   :  { %3605 = vmatprep.subr.mxu0 %v7146_v10  ;;  %3676 = vmatprep.subr.mxu1 %v7147_v26 }
 0xe4a   :  { %3606 = vmatpush1.msra.mxu0 %v7148_v12  ;;  %3677 = vmatpush1.msra.mxu1 %v7149_v40 }
 0xe4b   :  { %3607 = vmatprep.subr.mxu0 %v7150_v30  ;;  %3678 = vmatprep.subr.mxu1 %v7151_v37 }
 0xe4c   :  { %3608 = vmatpush1.msra.mxu0 %v7152_v6  ;;  %3679 = vmatpush1.msra.mxu1 %v7153_v41 }
 0xe4d   :  { %3609 = vmatprep.subr.mxu0 %v7154_v44  ;;  %3680 = vmatprep.subr.mxu1 %v7155_v14 }
 0xe4e   :  { %3610 = vmatpush1.msra.mxu0 %v7156_v53  ;;  %3681 = vmatpush1.msra.mxu1 %v7157_v7 }
 0xe4f   :  { %3611 = vmatprep.subr.mxu0 %v7158_v46  ;;  %3682 = vmatprep.subr.mxu1 %v7159_v57 }
 0xe50   :  { %3612 = vmatpush1.msra.mxu0 %v7160_v56  ;;  %3683 = vmatpush1.msra.mxu1 %v7161_v55 }
 0xe51   :  { %3613 = vmatprep.subr.mxu0 %v7162_v3  ;;  %3684 = vmatprep.subr.mxu1 %v7163_v2 }
 0xe52   :  { %3614 = vmatpush1.msra.mxu0 %v7164_v60  ;;  %3647 = vmatprep.mubr.f32.mxu0 %v7165_v58 }
 0xe53   :  { %3685 = vmatpush1.msra.mxu1 %v7166_v11  ;;  %3718 = vmatprep.mubr.f32.mxu1 %v7165_v58 }
 0xef3   :  { %v3475_v15 = vpop.f32.mrf.mxu0  ;;  %v3546_v24 = vpop.f32.mrf.mxu1 }
 0xef4   :  { %v3551_v18 = vadd.f32 %v3475_v15, %v2140_v51  ;;  %v3553_v25 = vadd.f32 %v3546_v24, %v2253_v62 }
 0xef5   :  { %v3477_v19 = vpop.f32.mrf.mxu0  ;;  %v3548_v32 = vpop.f32.mrf.mxu1 }
 0xef6   :  { %v3855_v21 = vmul.f32 -1.442695, %v3551_v18  ;;  %v3552_v22 = vadd.f32 %v3477_v19, %v2142_v17  ;;  %v3554_v35 = vadd.f32 %v3548_v32, %v2255_v34 }
 0xef8   :  { %4099 = vpow2.f32 %v3855_v21  ;;  %v3856_v1 = vmul.f32 -1.442695, %v3552_v22  ;;  %v3857_v48 = vmul.f32 -1.442695, %v3554_v35 }
 0xefa   :  { %4101 = vpow2.f32 %v3856_v1 }
 0xefb   :  { %4103 = vtanh.f32 %v3553_v25 }
 0xefc   :  { %4105 = vpow2.f32 %v3857_v48 }
 0xf05   :  { %v4100_v49 = vpop.eup %4099 }
 0xf06   :  { %v3558_v28 = vadd.f32 1.0, %v4100_v49 }
 0xf07   :  { %v4102_v43 = vpop.eup %4101 }
 0xf08   :  { %4107 = vrcp.f32 %v3558_v28  ;;  %v3564_v8 = vadd.f32 1.0, %v4102_v43  ;;  %v4104_v47 = vpop.eup %4103 }
 0xf09   :  { %v4106_v4 = vpop.eup %4105 }
 0xf0a   :  { %4109 = vrcp.f32 %v3564_v8  ;;  %v3571_v42 = vadd.f32 1.0, %v4106_v4 }
 0xf0c   :  { %4111 = vrcp.f32 %v3571_v42 }
 0xf15   :  { %v4108_v38 = vpop.eup %4107 }
 0xf16   :  { %v3575_v59 = vmul.f32 %v4108_v38, %v4104_v47 }
 0xf17   :  { %v4110_v5 = vpop.eup %4109 }
 0xf18   :  { %v3574_v29 = vmul.f32 %v4110_v5, %v6429_v52 }
 0xf19   :  { %v4112_v31 = vpop.eup %4111 }
 0xf1a   :  { %v6505_v0 = vadd.f32 %v3575_v59, %v3574_v29 }
 0xf1c   :  { %4113 = vtanh.f32 %v6505_v0 }
 0xf29   :  { %v4114_v23 = vpop.eup %4113 }
 0xf2a   :  { %v3578_v61 = vmul.f32 %v4114_v23, %v4112_v31 }
 0xf2c   :  { %3648 = vmatmul.mubr.f32.vlgmr.msra.gmra.mxu0 %v3578_v61  ;;  %3719 = vmatmul.mubr.f32.vlgmr.msra.gmra.mxu1 %v3578_v61 }
 0xf2d   :  { %4370 = shalt.err (!%p4367_p1)
}
 0xf2e   :  { %3774 = dma.vmem_to_hbm [thread:$0]  %s3772_s17, 128, %s6537_s8, [#allocation15]  }
 0xf2f   :  { %s4379_s26 = scalar_lea.vmem %s3762_s22, 128  ;;  %p4384_p3 = scmp.lt.s32.totalorder %s3762_s22, %s3762_s22 }
 0xf30   :  { %p4380_p2 = scmp.ne.s32.totalorder %s3762_s22, %s4379_s26  ;;  %p4385_p4 = scmp.lt.s32.totalorder %s4379_s26, %s4379_s26 }
 0xf32   :  { %p4386_p5 = por %p4385_p4, %p4384_p3 }
 0xf34   :  { %p4387_p6 = pnand %p4386_p5, %p4380_p2 }
 0xf36   :  { %4390 = shalt.err (!%p4387_p6)
}
 0xf37   :  { %3764 = dma.vmem_to_hbm [thread:$0]  %s3762_s22, 128, %s6536_s7, [#allocation6]   ;;  %v7172_v52 = vld [vmem:[#allocation74_spill] sm:$0xff]  ;;  %v7173_v54 = vld [vmem:[#allocation73_spill] sm:$0xff]  ;;  %v7174_v41 = vld [vmem:[#allocation48_spill] sm:$0xff] }
 0xf38   :  { %v2146_v13 = vadd.f32 %v7172_v52, %v7167_v27  ;;  %v2148_v39 = vadd.f32 %v7173_v54, %v5891_v45  ;;  %v2261_v44 = vadd.f32 %v7174_v41, %v7042_v9  ;;  %v7175_v53 = vld [vmem:[#allocation75_spill] sm:$0xff]  ;;  %s4463_s7 = smov [#allocation17]  }
 0xf39   :  { %v2259_v7 = vadd.f32 %v7175_v53, %v5908_v20  ;;  %s3791_s8 = sshll.u32 %s4463_s7, 4  ;;  %s3792_s8 = int_to_ptr.vmem [resolvable:$true] %s3791_s8 }
 0xf3a   :  { %s4399_s28 = scalar_lea.vmem %s3792_s8, 128  ;;  %p4404_p8 = scmp.lt.s32.totalorder %s3792_s8, %s3792_s8 }
 0xf3b   :  { %p4400_p7 = scmp.ne.s32.totalorder %s3792_s8, %s4399_s28  ;;  %p4405_p9 = scmp.lt.s32.totalorder %s4399_s28, %s4399_s28 }
 0xf3d   :  { %p4406_p10 = por %p4405_p9, %p4404_p8 }
 0xf3f   :  { %p4407_p11 = pnand %p4406_p10, %p4400_p7 }
 0xfec   :  { %v3649_v50 = vpop.f32.mrf.mxu0  ;;  %v3720_v30 = vpop.f32.mrf.mxu1 }
 0xfed   :  { %v3725_v10 = vadd.f32 %v3649_v50, %v2146_v13  ;;  %v3727_v46 = vadd.f32 %v3720_v30, %v2259_v7 }
 0xfee   :  { %v3651_v26 = vpop.f32.mrf.mxu0  ;;  %v3722_v6 = vpop.f32.mrf.mxu1 }
 0xfef   :  { %v3858_v12 = vmul.f32 -1.442695, %v3725_v10  ;;  %v3726_v40 = vadd.f32 %v3651_v26, %v2148_v39  ;;  %v3728_v14 = vadd.f32 %v3722_v6, %v2261_v44 }
 0xff1   :  { %4115 = vpow2.f32 %v3858_v12  ;;  %v3859_v37 = vmul.f32 -1.442695, %v3726_v40  ;;  %v3860_v57 = vmul.f32 -1.442695, %v3728_v14 }
 0xff3   :  { %4117 = vpow2.f32 %v3859_v37 }
 0xff4   :  { %4119 = vtanh.f32 %v3727_v46 }
 0xff5   :  { %4121 = vpow2.f32 %v3860_v57 }
 0xffe   :  { %v4116_v56 = vpop.eup %4115 }
 0xfff   :  { %v3732_v45 = vadd.f32 1.0, %v4116_v56 }
0x1000   :  { %v4118_v55 = vpop.eup %4117 }
0x1001   :  { %4123 = vrcp.f32 %v3732_v45  ;;  %v3738_v3 = vadd.f32 1.0, %v4118_v55  ;;  %v4120_v2 = vpop.eup %4119 }
0x1002   :  { %v4122_v60 = vpop.eup %4121 }
0x1003   :  { %4125 = vrcp.f32 %v3738_v3  ;;  %v3745_v9 = vadd.f32 1.0, %v4122_v60 }
0x1005   :  { %4127 = vrcp.f32 %v3745_v9 }
0x100e   :  { %v4124_v58 = vpop.eup %4123 }
0x100f   :  { %v3749_v11 = vmul.f32 %v4124_v58, %v4120_v2 }
0x1010   :  { %v4126_v27 = vpop.eup %4125 }
0x1011   :  { %v3748_v20 = vmul.f32 %v4126_v27, %v6505_v0 }
0x1013   :  { %v3750_v63 = vadd.f32 %v3749_v11, %v3748_v20 }
0x1015   :  { %4129 = vtanh.f32 %v3750_v63  ;;  %3754 = vst [vmem:[#allocation17] sm:$0xff] %v3750_v63 }
0x1016   :  { %4410 = shalt.err (!%p4407_p11)
}
0x1017   :  { %3794 = dma.vmem_to_hbm [thread:$0]  %s3792_s8, 128, %s6539_s10, [#allocation18]   ;;  %v4128_v51 = vpop.eup %4127 }
0x1018   :  { %s4464_s11 = smov [#allocation16]  }
0x1019   :  { %s3781_s12 = sshll.u32 %s4464_s11, 4  ;;  %s3782_s12 = int_to_ptr.vmem [resolvable:$true] %s3781_s12 }
0x101a   :  { %s4419_s13 = scalar_lea.vmem %s3782_s12, 128  ;;  %p4424_p13 = scmp.lt.s32.totalorder %s3782_s12, %s3782_s12 }
0x101b   :  { %p4420_p12 = scmp.ne.s32.totalorder %s3782_s12, %s4419_s13  ;;  %p4425_p0 = scmp.lt.s32.totalorder %s4419_s13, %s4419_s13 }
0x101d   :  { %p4426_p1 = por %p4425_p0, %p4424_p13 }
0x101f   :  { %p4427_p2 = pnand %p4426_p1, %p4420_p12 }
0x1022   :  { %v4130_v15 = vpop.eup %4129 }
0x1023   :  { %v3752_v16 = vmul.f32 %v4130_v15, %v4128_v51 }
0x1025   :  { %3753 = vst [vmem:[#allocation16] sm:$0xff] %v3752_v16 }
0x1026   :  { %4430 = shalt.err (!%p4427_p2)
}
0x1027   :  { %3784 = dma.vmem_to_hbm [thread:$0]  %s3782_s12, 128, %s6538_s9, [#allocation15]  }
0x1028   :  { %4445 = dma.done.wait [#allocation6], 128  }
0x1029   :  { %4446 = vsyncadd [#allocation6], 4294967168 }
0x102a   :  { %4447 = dma.done.wait [#allocation15], 256  }
0x102b   :  { %4448 = vsyncadd [#allocation15], 4294967040 }
0x102c   :  { %4449 = dma.done.wait [#allocation18], 128  }
0x102d   :  { %4450 = vsyncadd [#allocation18], 4294967168 }
0x102e   :  { %3807 = vsyncpa [#allocation5], 1 }
0x102f   :  { %3808 = vsyncpa [#allocation8], 1 }
0x1030   :  { %3809 = vsyncpa [#allocation11], 1 }
0x1031   :  { %3810 = vsyncpa [#allocation6], 1 }
0x1032   :  { %3811 = vsyncpa [#allocation15], 1 }
0x1033   :  { %3812 = vsyncpa [#allocation18], 1 }

</bundles_post_ra>
